<compile_context>
chip_gen: v6e
topology: v6e:2x2x1
jax: 0.10.0
libtpu: 0.0.40
codegen_flags: <defaults>
</compile_context>

<pallas_src>
from functools import partial

import jax
import jax.numpy as jnp
from jax import lax
from jax.experimental import pallas as pl
from jax.experimental.pallas import tpu as pltpu

n_embd = 384
block_size = 256  # max supported T (positional table length)


def _round_up(x, m):
    return (x + m - 1) // m * m


def _bigram_kernel(idx_ref, emb_ref, w_ref, b_ref, o_ref):
    # idx_ref: (Nblk, 1) int32     flattened (batch*T) token ids for this block
    # emb_ref: (Vp+Tp, C) bf16     rows [0,Vp): token table (padded), [Vp,Vp+Tp): pos rows
    # w_ref:   (C, Vp)    bf16     lm_head weight (stored transposed vs torch)
    # b_ref:   (1, Vp)    f32      lm_head bias (padded cols = -1e30)
    # o_ref:   (Nblk, Vp) f32      logits for this block
    nblk = idx_ref.shape[0]
    ksel = emb_ref.shape[0]          # Vp + Tp
    vp = w_ref.shape[1]
    tp = ksel - vp                   # static Python int

    ids = idx_ref[...]                                              # (Nblk, 1) int32

    # Fused embedding gather + positional add as ONE one-hot matmul on the MXU:
    # each row of `sel` has a 1 at its token id and a 1 at Vp + (row mod Tp).
    row = lax.broadcasted_iota(jnp.int32, (nblk, 1), 0)
    pos_id = vp + lax.rem(row, tp)                                  # (Nblk, 1) int32
    col = lax.broadcasted_iota(jnp.int32, (nblk, ksel), 1)
    hit = jnp.logical_or(col == ids, col == pos_id)                 # int32/bool compares
    sel = jnp.where(hit, 1.0, 0.0).astype(jnp.bfloat16)             # (Nblk, Vp+Tp)

    x = jnp.dot(sel, emb_ref[...],
                preferred_element_type=jnp.float32)                 # (Nblk, C) = tok+pos

    # lm_head: (Nblk, C) @ (C, Vp) + bias  -> lane-dense (Nblk, 128*k) output.
    logits = jnp.dot(x.astype(jnp.bfloat16), w_ref[...],
                     preferred_element_type=jnp.float32)            # (Nblk, Vp)
    o_ref[...] = (logits + b_ref[...]).astype(o_ref.dtype)


def prepare_params(tok_table, pos_table, w_lm, b_lm):
    """One-time padding / casting of parameters (hoisted out of the hot path)."""
    V, C = tok_table.shape
    P = pos_table.shape[0]
    assert C == n_embd and P >= 1
    Vp = _round_up(V, 128)           # lane-dense vocab / MXU N-dim
    Pp = _round_up(P, 8)

    bf16 = jnp.bfloat16
    emb = jnp.zeros((Vp + Pp, C), bf16)
    emb = emb.at[:V, :].set(tok_table.astype(bf16))                 # token rows
    emb = emb.at[Vp:Vp + P, :].set(pos_table.astype(bf16))          # positional rows
    w_p = jnp.zeros((C, Vp), bf16).at[:, :V].set(w_lm.astype(bf16))
    # Padded bias columns get -1e30 so padded logits never win a softmax/logsumexp.
    b_p = jnp.full((1, Vp), -1e30, jnp.float32).at[0, :V].set(b_lm.astype(jnp.float32))

    return {"emb": emb, "w": w_p, "b": b_p, "V": V, "Vp": Vp, "P": P, "C": C}


@partial(jax.jit, static_argnames=("batch_block",))
def _bigram_logits_padded(idx, emb, w_p, b_p, batch_block=8):
    """Returns padded logits of shape (Bpad, Tp, Vp) float32."""
    B, T = idx.shape
    K_total, C = emb.shape
    Vp = w_p.shape[1]
    P = K_total - Vp
    assert T <= P, "sequence length exceeds positional table"

    Tp = _round_up(T, 8)             # sublane-aligned sequence length
    assert Tp <= P
    Bblk = max(1, min(batch_block, B))
    Bpad = _round_up(B, Bblk)

    # Pad (B, T) with token 0 and flatten to a (Bpad*Tp, 1) column of ids.
    idx_p = jnp.zeros((Bpad, Tp), jnp.int32).at[:B, :T].set(idx.astype(jnp.int32))
    idx_flat = idx_p.reshape(Bpad * Tp, 1)

    Nblk = Bblk * Tp
    Ksel = Vp + Tp
    grid = (Bpad // Bblk,)

    out = pl.pallas_call(
        _bigram_kernel,
        out_shape=jax.ShapeDtypeStruct((Bpad * Tp, Vp), jnp.float32),
        grid_spec=pltpu.PrefetchScalarGridSpec(
            num_scalar_prefetch=0,
            grid=grid,
            in_specs=[
                pl.BlockSpec((Nblk, 1), lambda n: (n, 0)),    # token ids (per block)
                pl.BlockSpec((Ksel, C), lambda n: (0, 0)),    # [tok ; pos] table (resident)
                pl.BlockSpec((C, Vp), lambda n: (0, 0)),      # lm_head weight (resident)
                pl.BlockSpec((1, Vp), lambda n: (0, 0)),      # lm_head bias (resident)
            ],
            out_specs=pl.BlockSpec((Nblk, Vp), lambda n: (n, 0)),
        ),
        compiler_params=pltpu.CompilerParams(
            dimension_semantics=("parallel",),
        ),
    )(idx_flat, emb, w_p, b_p)

    return out.reshape(Bpad, Tp, Vp)


def bigram_forward(idx, params, targets=None):
    """Mirrors BigramLanguageModel.forward: returns (logits, loss)."""
    B, T = idx.shape
    V = params["V"]
    padded = _bigram_logits_padded(idx, params["emb"], params["w"], params["b"])

    if targets is None:
        return padded[:B, :T, :V], None

    # Loss path: keep the lane-padded Vp columns (padded bias = -1e30 contributes
    # nothing to logsumexp); only slice off padded batch/sequence rows.
    lp = padded[:B, :T, :].reshape(B * T, -1)                       # (B*T, Vp)
    t = targets.reshape(B * T).astype(jnp.int32)
    logz = jax.nn.logsumexp(lp, axis=-1)
    true_logit = jnp.take_along_axis(lp, t[:, None], axis=-1)[:, 0]
    loss = jnp.mean(logz - true_logit)
    # torch returns the (B*T, V) view of logits when targets are given.
    return lp[:, :V], loss


def _reference(idx, tok_table, pos_table, w_lm, b_lm, targets=None):
    B, T = idx.shape
    x = tok_table[idx] + pos_table[:T]
    logits = x @ w_lm + b_lm
    if targets is None:
        return logits, None
    V = logits.shape[-1]
    l2 = logits.reshape(B * T, V)
    t = targets.reshape(B * T)
    logz = jax.nn.logsumexp(l2, axis=-1)
    true_logit = jnp.take_along_axis(l2, t[:, None], axis=-1)[:, 0]
    return l2, jnp.mean(logz - true_logit)


if __name__ == "__main__":
    key = jax.random.PRNGKey(0)
    k_tok, k_pos, k_w, k_b, k_idx, k_tgt = jax.random.split(key, 6)

    vocab_size = 65           # makemore char vocab
    B, T = 16, 64             # small example shapes

    tok_table = jax.random.normal(k_tok, (vocab_size, n_embd), dtype=jnp.float32)
    pos_table = jax.random.normal(k_pos, (block_size, n_embd), dtype=jnp.float32)
    w_lm = jax.random.normal(k_w, (n_embd, vocab_size), dtype=jnp.float32) / jnp.sqrt(
        jnp.float32(n_embd))
    b_lm = jax.random.normal(k_b, (vocab_size,), dtype=jnp.float32) * 0.01

    idx = jax.random.randint(k_idx, (B, T), 0, vocab_size, dtype=jnp.int32)
    targets = jax.random.randint(k_tgt, (B, T), 0, vocab_size, dtype=jnp.int32)

    # One-time parameter preparation (padding + bf16 casts), reused across calls.
    params = prepare_params(tok_table, pos_table, w_lm, b_lm)
    jax.block_until_ready(params["emb"])

    # Logits-only path (targets=None).
    logits, loss_none = bigram_forward(idx, params)
    logits = jax.block_until_ready(logits)
    assert loss_none is None
    assert logits.shape == (B, T, vocab_size)

    ref_logits, _ = _reference(idx, tok_table, pos_table, w_lm, b_lm)
    # bf16 MXU operands with f32 accumulation -> loosened tolerance.
    assert jnp.allclose(logits, ref_logits, atol=1e-1, rtol=5e-2), "logits mismatch"

    # Loss path.
    logits_flat, loss = bigram_forward(idx, params, targets)
    loss = jax.block_until_ready(loss)
    ref_flat, ref_loss = _reference(idx, tok_table, pos_table, w_lm, b_lm, targets)
    assert logits_flat.shape == (B * T, vocab_size)
    assert jnp.allclose(loss, ref_loss, atol=5e-2, rtol=5e-2), "loss mismatch"

    print("KERNEL_OK")
</pallas_src>

<mosaic_0001>
module attributes {stable_mosaic.version = 11 : i64} {
  func.func @_bigram_kernel(%arg0: i32, %arg1: memref<512x1xi32, #tpu.memory_space<vmem>>, %arg2: memref<192x384xbf16, #tpu.memory_space<vmem>>, %arg3: memref<384x128xbf16, #tpu.memory_space<vmem>>, %arg4: memref<1x128xf32, #tpu.memory_space<vmem>>, %arg5: memref<512x128xf32, #tpu.memory_space<vmem>>) attributes {dimension_semantics = [#tpu.dimension_semantics<parallel>], iteration_bounds = array<i64: 2>, scalar_prefetch = 0 : i64, scratch_operands = 0 : i64, tpu.core_type = #tpu.core_type<tc>, window_params = [{transform_indices = @transform_0, window_bounds = array<i64: 512, 1>}, {transform_indices = @transform_1, window_bounds = array<i64: 192, 384>}, {pipeline_mode = #tpu.pipeline_mode<synchronous>, transform_indices = @transform_2, window_bounds = array<i64: 384, 128>}, {pipeline_mode = #tpu.pipeline_mode<synchronous>, transform_indices = @transform_3, window_bounds = array<i64: 1, 128>}, {transform_indices = @transform_4, window_bounds = array<i64: 512, 128>}]} {
    %c0 = arith.constant 0 : index
    %c0_0 = arith.constant 0 : index
    %0 = vector.load %arg1[%c0, %c0_0] : memref<512x1xi32, #tpu.memory_space<vmem>>, vector<512x1xi32>
    %1 = tpu.iota {dimensions = array<i32: 0>} : vector<512x1xi32>
    %c64_i32 = arith.constant 64 : i32
    %2 = vector.broadcast %c64_i32 : i32 to vector<512x1xi32>
    %3 = arith.remsi %1, %2 : vector<512x1xi32>
    %c128_i32 = arith.constant 128 : i32
    %4 = vector.broadcast %c128_i32 : i32 to vector<512x1xi32>
    %5 = arith.addi %4, %3 : vector<512x1xi32>
    %6 = tpu.iota {dimensions = array<i32: 1>} : vector<512x192xi32>
    %7 = vector.broadcast %0 : vector<512x1xi32> to vector<512x192xi32>
    %8 = arith.cmpi eq, %6, %7 : vector<512x192xi32>
    %9 = vector.broadcast %5 : vector<512x1xi32> to vector<512x192xi32>
    %10 = arith.cmpi eq, %6, %9 : vector<512x192xi32>
    %11 = arith.ori %8, %10 : vector<512x192xi1>
    %cst = arith.constant 1.000000e+00 : f32
    %cst_1 = arith.constant 0.000000e+00 : f32
    %12 = vector.broadcast %cst : f32 to vector<512x192xf32>
    %13 = vector.broadcast %cst_1 : f32 to vector<512x192xf32>
    %14 = arith.select %11, %12, %13 : vector<512x192xi1>, vector<512x192xf32>
    %15 = arith.truncf %14 : vector<512x192xf32> to vector<512x192xbf16>
    %c0_2 = arith.constant 0 : index
    %c0_3 = arith.constant 0 : index
    %16 = vector.load %arg2[%c0_2, %c0_3] : memref<192x384xbf16, #tpu.memory_space<vmem>>, vector<192x384xbf16>
    %cst_4 = arith.constant dense<0.000000e+00> : vector<512x384xf32>
    %17 = tpu.matmul %15, %16, %cst_4 {dimension_numbers = #tpu.dot_dimension_numbers<[1], [0], [0], [1], [0, 0, 1, 1], [], []>} : vector<512x192xbf16>, vector<192x384xbf16>, vector<512x384xf32> -> vector<512x384xf32>
    %18 = arith.truncf %17 : vector<512x384xf32> to vector<512x384xbf16>
    %c0_5 = arith.constant 0 : index
    %c0_6 = arith.constant 0 : index
    %19 = vector.load %arg3[%c0_5, %c0_6] : memref<384x128xbf16, #tpu.memory_space<vmem>>, vector<384x128xbf16>
    %cst_7 = arith.constant dense<0.000000e+00> : vector<512x128xf32>
    %20 = tpu.matmul %18, %19, %cst_7 {dimension_numbers = #tpu.dot_dimension_numbers<[1], [0], [0], [1], [0, 0, 1, 1], [], []>} : vector<512x384xbf16>, vector<384x128xbf16>, vector<512x128xf32> -> vector<512x128xf32>
    %c0_8 = arith.constant 0 : index
    %c0_9 = arith.constant 0 : index
    %21 = vector.load %arg4[%c0_8, %c0_9] : memref<1x128xf32, #tpu.memory_space<vmem>>, vector<1x128xf32>
    %22 = vector.broadcast %21 : vector<1x128xf32> to vector<512x128xf32>
    %23 = arith.addf %20, %22 : vector<512x128xf32>
    %c0_10 = arith.constant 0 : index
    %c0_11 = arith.constant 0 : index
    %24 = vector.load %arg5[%c0_10, %c0_11] : memref<512x128xf32, #tpu.memory_space<vmem>>, vector<512x128xf32>
    tpu.vector_store %arg5[%c0_10, %c0_11], %23 {strides = array<i32>} : memref<512x128xf32, #tpu.memory_space<vmem>>, vector<512x128xf32>,
    return
  }
  func.func @transform_0(%arg0: i32) -> (i32, i32) {
    %c0_i32 = arith.constant 0 : i32
    %c0_i32_0 = arith.constant 0 : i32
    return %arg0, %c0_i32 : i32, i32
  }
  func.func @transform_1(%arg0: i32) -> (i32, i32) {
    %c0_i32 = arith.constant 0 : i32
    %c0_i32_0 = arith.constant 0 : i32
    %c0_i32_1 = arith.constant 0 : i32
    return %c0_i32, %c0_i32_0 : i32, i32
  }
  func.func @transform_2(%arg0: i32) -> (i32, i32) {
    %c0_i32 = arith.constant 0 : i32
    %c0_i32_0 = arith.constant 0 : i32
    %c0_i32_1 = arith.constant 0 : i32
    return %c0_i32, %c0_i32_0 : i32, i32
  }
  func.func @transform_3(%arg0: i32) -> (i32, i32) {
    %c0_i32 = arith.constant 0 : i32
    %c0_i32_0 = arith.constant 0 : i32
    %c0_i32_1 = arith.constant 0 : i32
    return %c0_i32, %c0_i32_0 : i32, i32
  }
  func.func @transform_4(%arg0: i32) -> (i32, i32) {
    %c0_i32 = arith.constant 0 : i32
    %c0_i32_0 = arith.constant 0 : i32
    return %arg0, %c0_i32 : i32, i32
  }
}

</mosaic_0001>

<bundles_post_ra>
// kernel: _bigram_logits_padded.1
= control target key start
LH: loop header
LB: loop body
LE: loop exit
PB: predicated region body
PF: predicated region fallthrough
CT: control target
= control target key end

     0   :  { %9 = vsyncpa [#allocation3], 0  ;;  %s6384_s0 = inlined_call_operand.vmem [shape: s32[1024,1], index: 0, kind: input, shape index: {}]   ;;  %s6385_s1 = inlined_call_operand.vmem [shape: bf16[384,384], index: 1, kind: input, shape index: {}]   ;;  %s6386_s2 = inlined_call_operand.vmem [shape: bf16[384,128], index: 2, kind: input, shape index: {}]   ;;  %s6387_s3 = inlined_call_operand.vmem [shape: f32[1,128], index: 3, kind: input, shape index: {}]   ;;  %s6388_s4 = inlined_call_operand.hbm [shape: f32[1024,128], index: 4, kind: output, shape index: {}]  }
   0x1   :  { %11 = vsyncpa [#allocation3 + $0x1], 0  ;;  %s4225_s15 = smov 0   ;;  %s4227_s16 = smov 0  }
   0x2   :  { %s4229_s17 = smov 0   ;;  %s4231_s18 = smov 0  }
   0x3 LB: > { %s4246_s19 = sadd.s32 4294967295, %s4192_s18   ;;  %s3604_s20 = sadd.s32 4294967294, %s4192_s18   ;;  %s4192_s18 = sphi %s4231_s18, %s6581_s18   ;;  %s4188_s17 = sphi %s4229_s17, %s6580_s17   ;;  %s4184_s16 = sphi %s4227_s16, %s6579_s16   ;;  %s4180_s15 = sphi %s4225_s15, %s6578_s15  }
   0x4   : > { %s4250_s21 = sadd.s32 1, %s4192_s18   ;;  %s113_s22 = sadd.s32 1, %s4188_s17 }
   0x5   : > { %s110_s23 = ssub.s32 %s4192_s18, %s4250_s21  ;;  %p123_p0 = scmp.ne.s32.totalorder %s4188_s17, %s4184_s16 }
   0x6   : > { %p111_p1 = scmp.eq.s32.totalorder %s110_s23, 0  ;;  %p124_p2 = scmp.eq.s32.totalorder %s4246_s19, 1 }
   0x7   : > { %p129_p3 = scmp.ne.s32.totalorder %s4184_s16, %s4180_s15  ;;  %p130_p4 = scmp.eq.s32.totalorder %s3604_s20, 1 }
   0x8   : > { %s4261_s24 = scalar_select %p111_p1, %s4188_s17, %s113_s22  }
   0x9   : > { %p4263_p5 = por %p124_p2, %p123_p0  ;;  %p4267_p6 = por %p130_p4, %p129_p3 }
   0xa   : > { %p3607_p7 = scmp.ge.s32.totalorder %s4192_s18, 1  ;;  %p166_p8 = scmp.lt.s32.totalorder %s4192_s18, 3 }
   0xc   : > { %p167_p9 = pnand %p3607_p7, %p166_p8 }
   0xd   : > { %s3609_s27 = sshll.u32 (!%p167_p9), %s4246_s19, 6  ;;  %s189_s8 = sand.u32 (!%p167_p9), 1, %s4184_s16  }
   0xe   : > { %170 = sbr.rel (%p167_p9) target bundleno = 886 (0x376), region = 36  ;;  %p193_p10 = scmp.lt.s32.totalorder (!%p167_p9), %s3609_s27, 127 }
   0xf   : > { %s3608_s9 = sshll.u32 (!%p167_p9), %s189_s8, 9  ;;  %s3869_s13 = sshll.u32 (!%p167_p9), %s4246_s19, 13 }
  0x10   : > { %s6140_s12 = scalar_lea.vmem (!%p167_p9), [#allocation2], %s3608_s9  ;;  %s6344_s19 = scalar_lea.sflag (!%p167_p9), [#allocation3], %s189_s8 }
  0x11   : > { %s3542_s14 = sshll.u32 (!%p167_p9), %s6140_s12, 4  ;;  %s4197_s29 = smov (!%p167_p9), [#allocation2]   ;;  %s6338_s14 = int_to_ptr.vmem [resolvable:$true] %s3542_s14 }
  0x12   : > { %s4132_s28 = scalar_lea.vmem (!%p167_p9), %s6338_s14, 8192  ;;  %s4136_s30 = sshll.u32 (!%p167_p9), %s4197_s29, 4  ;;  %s4137_s30 = int_to_ptr.vmem [resolvable:$false] %s4136_s30 }
  0x13   : > { %v4060_v0 = vld [vmem:[%s6385_s1 + $0xac] ss:$12 sps:$4 sm:$0xff]   ;;  %v4194_v1 = vmov 0   ;;  %v4062_v2 = vld [vmem:[%s6385_s1 + $0xa8] ss:$12 sps:$4 sm:$0xff]   ;;  %s6583_s27 = smov (!%p193_p10, %s3609_s27), 127  ;;  %p4133_p11 = scmp.ne.s32.totalorder %s6338_s14, %s4132_s28 }
  0x14   : > { %4059 = vset.pattern.permute.xlu1 %v4194_v1  ;;  %4058 = vset.pattern.permute.xlu0 %v4194_v1  ;;  %v4063_v3 = vld [vmem:[%s6385_s1 + $0x94] ss:$12 sps:$4 sm:$0xff]   ;;  %v4065_v4 = vld [vmem:[%s6385_s1 + $0x90] ss:$12 sps:$4 sm:$0xff]   ;;  %s3610_s10 = sshll.u32 %s6583_s27, 3  ;;  %vm6389_vm13 = vcmask 523264   ;;  %s6336_s27 = scalar_lea.hbm %s6388_s4, %s3869_s13 }
  0x15   : > { %3990 = vmatprep.subr.bf16.mxu1 %v4060_v0  ;;  %1949 = vmatprep.subr.bf16.mxu0 %v4060_v0  ;;  %v4066_v5 = vld [vmem:[%s6385_s1 + $0x7c] ss:$12 sps:$4 sm:$0xff]   ;;  %s4294_s20 = scalar_lea.vmem %s6384_s0, %s3610_s10  ;;  %v4068_v8 = vld [vmem:[%s6385_s1 + $0x78] ss:$12 sps:$4 sm:$0xff]   ;;  %v4071_v12 = vld [vmem:[%s6385_s1 + $0x60] ss:$12 sps:$4 sm:$0xff]   ;;  %p4134_p12 = pnand %p4133_p11, %p4263_p5 }
  0x16   : > { %4002 = vmatpush1.bf16.msra.mxu1 %v4062_v2  ;;  %1950 = vmatpush1.bf16.msra.mxu0 %v4062_v2  ;;  %v250_v6 = vld [vmem:[%s4294_s20 + $0x190] sm:$0xff]  ;;  %v248_v7 = vld [vmem:[%s4294_s20 + $0x180] sm:$0xff]  ;;  %v251_v9 = vld [vmem:[%s4294_s20 + $0x198] sm:$0xff]  ;;  %p4139_p0 = scmp.lt.s32.totalorder %s6338_s14, %s4137_s30 }
  0x17   : > { %3991 = vmatprep.subr.bf16.mxu1 %v4063_v3  ;;  %1951 = vmatprep.subr.bf16.mxu0 %v4063_v3  ;;  %v249_v10 = vld [vmem:[%s4294_s20 + $0x188] sm:$0xff]  ;;  %v4069_v11 = vld [vmem:[%s6385_s1 + $0x64] ss:$12 sps:$4 sm:$0xff]   ;;  %v255_v17 = vld [vmem:[%s4294_s20 + $0x1b8] sm:$0xff]  ;;  %p4135_p13 = pneg %p4134_p12 }
  0x18   : > { %995 = vperm.xlu1 %4059, %v250_v6   ;;  %989 = vperm.xlu0 %4058, %v248_v7   ;;  %v253_v13 = vld [vmem:[%s4294_s20 + $0x1a8] sm:$0xff]  ;;  %v252_v14 = vld [vmem:[%s4294_s20 + $0x1a0] sm:$0xff]  ;;  %v254_v18 = vld [vmem:[%s4294_s20 + $0x1b0] sm:$0xff] }
  0x19   : > { %v4072_v15 = vld [vmem:[%s6385_s1 + $0x4c] ss:$12 sps:$4 sm:$0xff]   ;;  %v4074_v16 = vld [vmem:[%s6385_s1 + $0x48] ss:$12 sps:$4 sm:$0xff]   ;;  %v256_v20 = vld [vmem:[%s4294_s20 + $0x1c0] sm:$0xff] }
  0x1a   : > { %4003 = vmatpush1.bf16.msra.mxu1 %v4065_v4  ;;  %1952 = vmatpush1.bf16.msra.mxu0 %v4065_v4  ;;  %v257_v19 = vld [vmem:[%s4294_s20 + $0x1c8] sm:$0xff]  ;;  %v259_v21 = vld [vmem:[%s4294_s20 + $0x1d8] sm:$0xff]  ;;  %v258_v22 = vld [vmem:[%s4294_s20 + $0x1d0] sm:$0xff] }
  0x1b   : > { %3992 = vmatprep.subr.bf16.mxu1 %v4066_v5  ;;  %1953 = vmatprep.subr.bf16.mxu0 %v4066_v5  ;;  %v4075_v23 = vld [vmem:[%s6385_s1 + $0x34] ss:$12 sps:$4 sm:$0xff]   ;;  %v4077_v24 = vld [vmem:[%s6385_s1 + $0x30] ss:$12 sps:$4 sm:$0xff]   ;;  %v261_v26 = vld [vmem:[%s4294_s20 + $0x1e8] sm:$0xff] }
  0x1c   : > { %998 = vperm.xlu1 %4059, %v251_v9   ;;  %992 = vperm.xlu0 %4058, %v249_v10   ;;  %v4078_v25 = vld [vmem:[%s6385_s1 + $0x1c] ss:$12 sps:$4 sm:$0xff]   ;;  %v260_v27 = vld [vmem:[%s4294_s20 + $0x1e0] sm:$0xff]  ;;  %v262_v31 = vld [vmem:[%s4294_s20 + $0x1f0] sm:$0xff] }
  0x1d   : > { %v4080_v28 = vld [vmem:[%s6385_s1 + $0x18] ss:$12 sps:$4 sm:$0xff]   ;;  %v4083_v32 = vld [vmem:[%s6385_s1] ss:$12 sps:$4 sm:$0xff]   ;;  %v4086_v36 = vld [vmem:[%s6385_s1 + $0x108] ss:$12 sps:$4 sm:$0xff]  }
  0x1e   : > { %4004 = vmatpush1.bf16.msra.mxu1 %v4068_v8  ;;  %1954 = vmatpush1.bf16.msra.mxu0 %v4068_v8  ;;  %v4081_v29 = vld [vmem:[%s6385_s1 + $0x4] ss:$12 sps:$4 sm:$0xff]   ;;  %v263_v30 = vld [vmem:[%s4294_s20 + $0x1f8] sm:$0xff]  ;;  %v201_v34 = vld [vmem:[%s4294_s20 + $0x8] sm:$0xff] }
  0x1f   : > { %3993 = vmatprep.subr.bf16.mxu1 %v4069_v11  ;;  %1955 = vmatprep.subr.bf16.mxu0 %v4069_v11  ;;  %v4084_v33 = vld [vmem:[%s6385_s1 + $0x10c] ss:$12 sps:$4 sm:$0xff]   ;;  %v200_v35 = vld [vmem:[%s4294_s20] sm:$0xff]  ;;  %v202_v39 = vld [vmem:[%s4294_s20 + $0x10] sm:$0xff] }
  0x20   : > { %1004 = vperm.xlu1 %4059, %v253_v13   ;;  %1001 = vperm.xlu0 %4058, %v252_v14   ;;  %v4087_v37 = vld [vmem:[%s6385_s1 + $0xf4] ss:$12 sps:$4 sm:$0xff]   ;;  %v203_v38 = vld [vmem:[%s4294_s20 + $0x18] sm:$0xff]  ;;  %v205_v42 = vld [vmem:[%s4294_s20 + $0x28] sm:$0xff] }
  0x21   : > { %v4089_v40 = vld [vmem:[%s6385_s1 + $0xf0] ss:$12 sps:$4 sm:$0xff]   ;;  %v204_v43 = vld [vmem:[%s4294_s20 + $0x20] sm:$0xff]  ;;  %v209_v49 = vld [vmem:[%s4294_s20 + $0x48] sm:$0xff] }
  0x22   : > { %4005 = vmatpush1.bf16.msra.mxu1 %v4071_v12  ;;  %1956 = vmatpush1.bf16.msra.mxu0 %v4071_v12  ;;  %v4090_v41 = vld [vmem:[%s6385_s1 + $0xdc] ss:$12 sps:$4 sm:$0xff]   ;;  %v4092_v44 = vld [vmem:[%s6385_s1 + $0xd8] ss:$12 sps:$4 sm:$0xff]   ;;  %v206_v47 = vld [vmem:[%s4294_s20 + $0x30] sm:$0xff] }
  0x23   : > { %3994 = vmatprep.subr.bf16.mxu1 %v4072_v15  ;;  %1957 = vmatprep.subr.bf16.mxu0 %v4072_v15  ;;  %v4093_v45 = vld [vmem:[%s6385_s1 + $0xc4] ss:$12 sps:$4 sm:$0xff]   ;;  %v207_v46 = vld [vmem:[%s4294_s20 + $0x38] sm:$0xff]  ;;  %v4095_v48 = vld [vmem:[%s6385_s1 + $0xc0] ss:$12 sps:$4 sm:$0xff]  }
  0x24   : > { %1010 = vperm.xlu1 %4059, %v255_v17   ;;  %1007 = vperm.xlu0 %4058, %v254_v18   ;;  %v208_v50 = vld [vmem:[%s4294_s20 + $0x40] sm:$0xff]  ;;  %v211_v51 = vld [vmem:[%s4294_s20 + $0x58] sm:$0xff]  ;;  %v210_v52 = vld [vmem:[%s4294_s20 + $0x50] sm:$0xff]  ;;  %v264_v18 = vlaneseq }
  0x25   : > { %v213_v53 = vld [vmem:[%s4294_s20 + $0x68] sm:$0xff]  ;;  %v212_v54 = vld [vmem:[%s4294_s20 + $0x60] sm:$0xff]  ;;  %v215_v55 = vld [vmem:[%s4294_s20 + $0x78] sm:$0xff] }
  0x26   : > { %4006 = vmatpush1.bf16.msra.mxu1 %v4074_v16  ;;  %1958 = vmatpush1.bf16.msra.mxu0 %v4074_v16  ;;  %v214_v56 = vld [vmem:[%s4294_s20 + $0x70] sm:$0xff]  ;;  %v217_v57 = vld [vmem:[%s4294_s20 + $0x88] sm:$0xff]  ;;  %v216_v58 = vld [vmem:[%s4294_s20 + $0x80] sm:$0xff] }
  0x27   : > { %3995 = vmatprep.subr.bf16.mxu1 %v4075_v23  ;;  %1959 = vmatprep.subr.bf16.mxu0 %v4075_v23  ;;  %v219_v59 = vld [vmem:[%s4294_s20 + $0x98] sm:$0xff]  ;;  %v218_v60 = vld [vmem:[%s4294_s20 + $0x90] sm:$0xff]  ;;  %v221_v61 = vld [vmem:[%s4294_s20 + $0xa8] sm:$0xff] }
  0x28   : > { %1016 = vperm.xlu1 %4059, %v257_v19   ;;  %1013 = vperm.xlu0 %4058, %v256_v20   ;;  %v220_v62 = vld [vmem:[%s4294_s20 + $0xa0] sm:$0xff]  ;;  %v223_v63 = vld [vmem:[%s4294_s20 + $0xb8] sm:$0xff]  ;;  %v222_v0 = vld [vmem:[%s4294_s20 + $0xb0] sm:$0xff] }
  0x29   : > { %v225_v2 = vld [vmem:[%s4294_s20 + $0xc8] sm:$0xff]  ;;  %v224_v3 = vld [vmem:[%s4294_s20 + $0xc0] sm:$0xff]  ;;  %v227_v4 = vld [vmem:[%s4294_s20 + $0xd8] sm:$0xff] }
  0x2a   : > { %4007 = vmatpush1.bf16.msra.mxu1 %v4077_v24  ;;  %1960 = vmatpush1.bf16.msra.mxu0 %v4077_v24  ;;  %v226_v5 = vld [vmem:[%s4294_s20 + $0xd0] sm:$0xff]  ;;  %v229_v6 = vld [vmem:[%s4294_s20 + $0xe8] sm:$0xff]  ;;  %v228_v7 = vld [vmem:[%s4294_s20 + $0xe0] sm:$0xff] }
  0x2b   : > { %3996 = vmatprep.subr.bf16.mxu1 %v4078_v25  ;;  %1961 = vmatprep.subr.bf16.mxu0 %v4078_v25  ;;  %v231_v8 = vld [vmem:[%s4294_s20 + $0xf8] sm:$0xff]  ;;  %v230_v9 = vld [vmem:[%s4294_s20 + $0xf0] sm:$0xff]  ;;  %v233_v10 = vld [vmem:[%s4294_s20 + $0x108] sm:$0xff] }
  0x2c   : > { %1022 = vperm.xlu1 %4059, %v259_v21   ;;  %1019 = vperm.xlu0 %4058, %v258_v22   ;;  %v232_v11 = vld [vmem:[%s4294_s20 + $0x100] sm:$0xff]  ;;  %v235_v12 = vld [vmem:[%s4294_s20 + $0x118] sm:$0xff]  ;;  %v234_v13 = vld [vmem:[%s4294_s20 + $0x110] sm:$0xff]  ;;  %v4413_v21 = vshrl.u32 %v264_v18, 7 }
  0x2d   : > { %v237_v14 = vld [vmem:[%s4294_s20 + $0x128] sm:$0xff]  ;;  %v236_v15 = vld [vmem:[%s4294_s20 + $0x120] sm:$0xff]  ;;  %v239_v16 = vld [vmem:[%s4294_s20 + $0x138] sm:$0xff] }
  0x2e   : > { %4008 = vmatpush1.bf16.msra.mxu1 %v4080_v28  ;;  %1962 = vmatpush1.bf16.msra.mxu0 %v4080_v28  ;;  %v238_v17 = vld [vmem:[%s4294_s20 + $0x130] sm:$0xff]  ;;  %v241_v19 = vld [vmem:[%s4294_s20 + $0x148] sm:$0xff]  ;;  %v240_v20 = vld [vmem:[%s4294_s20 + $0x140] sm:$0xff]  ;;  %v315_v24 = vadd.s32 400, %v4413_v21  ;;  %v313_v25 = vadd.s32 384, %v4413_v21 }
  0x2f   : > { %3997 = vmatprep.subr.bf16.mxu1 %v4081_v29  ;;  %1963 = vmatprep.subr.bf16.mxu0 %v4081_v29  ;;  %v243_v22 = vld [vmem:[%s4294_s20 + $0x158] sm:$0xff]  ;;  %v242_v23 = vld [vmem:[%s4294_s20 + $0x150] sm:$0xff]  ;;  %v245_v28 = vld [vmem:[%s4294_s20 + $0x168] sm:$0xff] }
  0x30   : > { %1028 = vperm.xlu1 %4059, %v261_v26   ;;  %1025 = vperm.xlu0 %4058, %v260_v27   ;;  %v316_v26 = vadd.s32 408, %v4413_v21  ;;  %v314_v27 = vadd.s32 392, %v4413_v21  ;;  %v244_v29 = vld [vmem:[%s4294_s20 + $0x160] sm:$0xff] }
  0x32   : > { %4009 = vmatpush1.bf16.msra.mxu1 %v4083_v32  ;;  %1964 = vmatpush1.bf16.msra.mxu0 %v4083_v32  ;;  %v669_v32 = vand.u32 63, %v313_v25  ;;  %v266_v25 = vadd.s32 8, %v4413_v21 }
  0x33   : > { %3998 = vmatprep.subr.bf16.mxu1 %v4084_v33  ;;  %1973 = vmatprep.subr.bf16.mxu0 %v4084_v33  ;;  %v690_v33 = vand.u32 63, %v316_v26 }
  0x34   : > { %1034 = vperm.xlu1 %4059, %v263_v30   ;;  %1031 = vperm.xlu0 %4058, %v262_v31   ;;  %v683_v30 = vand.u32 63, %v315_v24  ;;  %v4423_v31 = vand.u32 127, %v264_v18  ;;  %v324_v18 = vadd.s32 472, %v4413_v21  ;;  %v4098_v24 = vld [vmem:[%s6385_s1 + $0x80] ss:$12 sps:$4 sm:$0xff]  }
  0x36   : > { %4010 = vmatpush2.bf16.msra.mxu1 %v4086_v36  ;;  %1974 = vmatpush2.bf16.msra.mxu0 %v4086_v36  ;;  %v827_v36 = vadd.s32 128, %v683_v30 }
  0x37   : > { %3999 = vmatprep.subr.bf16.mxu1 %v4087_v37  ;;  %1975 = vmatprep.subr.bf16.mxu0 %v4087_v37  ;;  %v247_v37 = vld [vmem:[%s4294_s20 + $0x178] sm:$0xff] }
  0x38   : > { %848 = vperm.xlu1 %4059, %v201_v34   ;;  %845 = vperm.xlu0 %4058, %v200_v35   ;;  %v318_v34 = vadd.s32 424, %v4413_v21  ;;  %v676_v35 = vand.u32 63, %v314_v27 }
  0x3a   : > { %4011 = vmatpush2.bf16.msra.mxu1 %v4089_v40  ;;  %1976 = vmatpush2.bf16.msra.mxu0 %v4089_v40  ;;  %v246_v40 = vld [vmem:[%s4294_s20 + $0x170] sm:$0xff]  ;;  %s4138_s20 = scalar_lea.vmem %s4137_s30, 16384 }
  0x3b   : > { %4000 = vmatprep.subr.bf16.mxu1 %v4090_v41  ;;  %1977 = vmatprep.subr.bf16.mxu0 %v4090_v41  ;;  %v828_v41 = vadd.s32 128, %v690_v33  ;;  %p4140_p1 = scmp.lt.s32.totalorder %s4138_s20, %s4132_s28 }
  0x3c   : > { %854 = vperm.xlu1 %4059, %v203_v38   ;;  %851 = vperm.xlu0 %4058, %v202_v39   ;;  %v4428_v38 = vadd.s32 128, %v4423_v31  ;;  %v825_v39 = vadd.s32 128, %v669_v32  ;;  %v746_v32 = vand.u32 63, %v324_v18 }
  0x3d   : > { %p4141_p2 = por %p4140_p1, %p4139_p0 }
  0x3e   : > { %4012 = vmatpush2.bf16.msra.mxu1 %v4092_v44  ;;  %1978 = vmatpush2.bf16.msra.mxu0 %v4092_v44  ;;  %v704_v44 = vand.u32 63, %v318_v34  ;;  %vm1265_vm0 = vcmp.eq.s32.totalorder %v4428_v38, %v827_v36  ;;  %vm1261_vm2 = vcmp.eq.s32.totalorder %v4428_v38, %v825_v39  ;;  %vm1267_vm3 = vcmp.eq.s32.totalorder %v4428_v38, %v828_v41 }
  0x3f   : > { %4001 = vmatprep.subr.bf16.mxu1 %v4093_v45  ;;  %1979 = vmatprep.subr.bf16.mxu0 %v4093_v45  ;;  %v317_v45 = vadd.s32 416, %v4413_v21  ;;  %v340_v39 = vand.u32 63, %v266_v25  ;;  %p4142_p3 = pnand %p4141_p2, %p4135_p13 }
  0x40   : > { %860 = vperm.xlu1 %4059, %v205_v42   ;;  %857 = vperm.xlu0 %4058, %v204_v43  }
  0x42   : > { %4013 = vmatpush2.bf16.msra.mxu1 %v4095_v48  ;;  %1980 = vmatpush2.bf16.msra.mxu0 %v4095_v48 }
  0x43   : > { %2302 = vmatprep.subr.bf16.mxu1 %v4194_v1  ;;  %2886 = vmatprep.subr.bf16.mxu0 %v4194_v1 }
  0x44   : > { %866 = vperm.xlu1 %4059, %v207_v46   ;;  %863 = vperm.xlu0 %4058, %v206_v47   ;;  %v826_v46 = vadd.s32 128, %v676_v35  ;;  %v326_v35 = vadd.s32 488, %v4413_v21 }
  0x46   : > { %vm1263_vm7 = vcmp.eq.s32.totalorder %v4428_v38, %v826_v46  ;;  %v836_v46 = vadd.s32 128, %v746_v32  ;;  %v4102_v32 = vld [vmem:[%s6385_s1 + $0x20] ss:$12 sps:$4 sm:$0xff]  }
  0x48   : > { %872 = vperm.xlu1 %4059, %v209_v49   ;;  %869 = vperm.xlu0 %4058, %v208_v50   ;;  %v830_v49 = vadd.s32 128, %v704_v44  ;;  %v697_v50 = vand.u32 63, %v317_v45  ;;  %v333_v44 = vand.u32 63, %v4413_v21  ;;  %v267_v45 = vadd.s32 16, %v4413_v21 }
  0x4a   : > { %vm1271_vm12 = vcmp.eq.s32.totalorder %v4428_v38, %v830_v49 }
  0x4c   : > { %878 = vperm.xlu1 %4059, %v211_v51   ;;  %875 = vperm.xlu0 %4058, %v210_v52   ;;  %v320_v51 = vadd.s32 440, %v4413_v21  ;;  %v319_v52 = vadd.s32 432, %v4413_v21 }
  0x50   : > { %884 = vperm.xlu1 %4059, %v213_v53   ;;  %881 = vperm.xlu0 %4058, %v212_v54   ;;  %v4195_v53 = vmov 0.0  }
  0x54   : > { %890 = vperm.xlu1 %4059, %v215_v55   ;;  %887 = vperm.xlu0 %4058, %v214_v56  }
  0x58   : > { %896 = vperm.xlu1 %4059, %v217_v57   ;;  %893 = vperm.xlu0 %4058, %v216_v58   ;;  %v829_v57 = vadd.s32 128, %v697_v50  ;;  %v760_v50 = vand.u32 63, %v326_v35  ;;  %v4122_v35 = vld [vmem:[%s6386_s2 + $0x60] sm:$0xff]  }
  0x5c   : > { %902 = vperm.xlu1 %4059, %v219_v59   ;;  %899 = vperm.xlu0 %4058, %v218_v60   ;;  %v718_v59 = vand.u32 63, %v320_v51  ;;  %v711_v60 = vand.u32 63, %v319_v52  ;;  %v778_v51 = vadd.s32 128, %v340_v39  ;;  %v4100_v52 = vld [vmem:[%s6385_s1 + $0x50] ss:$12 sps:$4 sm:$0xff]  }
  0x60   : > { %908 = vperm.xlu1 %4059, %v221_v61   ;;  %905 = vperm.xlu0 %4058, %v220_v62  }
  0x64   : > { %914 = vperm.xlu1 %4059, %v223_v63   ;;  %911 = vperm.xlu0 %4058, %v222_v0  }
  0x68   : > { %920 = vperm.xlu1 %4059, %v225_v2   ;;  %917 = vperm.xlu0 %4058, %v224_v3   ;;  %v4096_v2 = vld [vmem:[%s6385_s1 + $0xb0] ss:$12 sps:$4 sm:$0xff]   ;;  %v322_v3 = vadd.s32 456, %v4413_v21 }
  0x6c   : > { %926 = vperm.xlu1 %4059, %v227_v4   ;;  %923 = vperm.xlu0 %4058, %v226_v5  }
  0x70   : > { %932 = vperm.xlu1 %4059, %v229_v6   ;;  %929 = vperm.xlu0 %4058, %v228_v7   ;;  %v321_v6 = vadd.s32 448, %v4413_v21 }
  0x74   : > { %938 = vperm.xlu1 %4059, %v231_v8   ;;  %935 = vperm.xlu0 %4058, %v230_v9   ;;  %v4196_v9 = vmov 1.0|1.0   ;;  %v4639_v8 = vadd.s32 504, %v4413_v21 }
  0x78   : > { %944 = vperm.xlu1 %4059, %v233_v10   ;;  %941 = vperm.xlu0 %4058, %v232_v11   ;;  %v832_v11 = vadd.s32 128, %v718_v59  ;;  %v4641_v10 = vadd.s32 128, %v760_v50  ;;  %v4103_v50 = vld [vmem:[%s6385_s1 + $0x8] ss:$12 sps:$4 sm:$0xff]  }
  0x7c   : > { %950 = vperm.xlu1 %4059, %v235_v12   ;;  %947 = vperm.xlu0 %4058, %v234_v13   ;;  %v732_v12 = vand.u32 63, %v322_v3  ;;  %v4097_v13 = vld [vmem:[%s6385_s1 + $0x98] ss:$12 sps:$4 sm:$0xff]  }
  0x80   : > { %956 = vperm.xlu1 %4059, %v237_v14   ;;  %953 = vperm.xlu0 %4058, %v236_v15   ;;  %v831_v14 = vadd.s32 128, %v711_v60  ;;  %v777_v60 = vadd.s32 128, %v333_v44  ;;  %v774_v44 = vand.u32 63, %v4639_v8  ;;  %v4109_v8 = vld [vmem:[%s6386_s2 + $0x30] sm:$0xff]  }
  0x84   : > { %962 = vperm.xlu1 %4059, %v239_v16   ;;  %959 = vperm.xlu0 %4058, %v238_v17   ;;  %v725_v16 = vand.u32 63, %v321_v6  ;;  %v274_v6 = vadd.s32 72, %v4413_v21 }
  0x86   : > { %v833_v26 = vadd.s32 128, %v725_v16 }
  0x88   : > { %968 = vperm.xlu1 %4059, %v241_v19   ;;  %965 = vperm.xlu0 %4058, %v240_v20   ;;  %v323_v19 = vadd.s32 464, %v4413_v21 }
  0x8a   : > { %v739_v33 = vand.u32 63, %v323_v19 }
  0x8c   : > { %974 = vperm.xlu1 %4059, %v243_v22   ;;  %971 = vperm.xlu0 %4058, %v242_v23   ;;  %v834_v23 = vadd.s32 128, %v732_v12  ;;  %v4101_v12 = vld [vmem:[%s6385_s1 + $0x38] ss:$12 sps:$4 sm:$0xff]  }
  0x90   : > { %980 = vperm.xlu1 %4059, %v245_v28   ;;  %977 = vperm.xlu0 %4058, %v244_v29   ;;  %v6405_v29 = vmov 0 }
  0x93   : > { %v4431_v42 = vpop.permute.xlu1 %995  ;;  %v990_v43 = vpop.permute.xlu0 %989 }
  0x94   : > { %986 = vperm.xlu1 %4059, %v247_v37   ;;  %vm1137_vm1 = vcmp.eq.s32.totalorder %v4428_v38, %v4431_v42  ;;  %983 = vperm.xlu0 %4058, %v246_v40   ;;  %vm1133_vm4 = vcmp.eq.s32.totalorder %v4428_v38, %v990_v43  ;;  %v4099_v37 = vld [vmem:[%s6385_s1 + $0x68] ss:$12 sps:$4 sm:$0xff]   ;;  %v268_v40 = vadd.s32 24, %v4413_v21 }
  0x95   : > { %vm1393_vm5 = vmor %vm1137_vm1, %vm1265_vm0  ;;  %vm1132_vm0 = vcmp.eq.s32.totalorder %v4423_v31, %v990_v43  ;;  %vm1269_vm1 = vcmp.eq.s32.totalorder %v4428_v38, %v829_v57 }
  0x96   : > { %vm1389_vm10 = vmor %vm1133_vm4, %vm1261_vm2  ;;  %v1521_v54 = vsel %vm1393_vm5, 1.0, %v4195_v53 }
  0x97   : > { %v4440_v47 = vpop.permute.xlu1 %998  ;;  %v993_v48 = vpop.permute.xlu0 %992  ;;  %v1517_v61 = vsel %vm1389_vm10, 1.0, %v4195_v53  ;;  %vm1273_vm10 = vcmp.eq.s32.totalorder %v4428_v38, %v831_v14 }
  0x98   : > { %vm1139_vm6 = vcmp.eq.s32.totalorder %v4428_v38, %v4440_v47  ;;  %vm1135_vm8 = vcmp.eq.s32.totalorder %v4428_v38, %v993_v48  ;;  %vm1134_vm14 = vcmp.eq.s32.totalorder %v4423_v31, %v993_v48 }
  0x99   : > { %vm1395_vm9 = vmor %vm1139_vm6, %vm1267_vm3  ;;  %vm1136_vm6 = vcmp.eq.s32.totalorder %v4423_v31, %v4431_v42  ;;  %v325_v42 = vadd.s32 480, %v4413_v21 }
  0x9a   : > { %v1523_v55 = vsel %vm1395_vm9, 1.0, %v4195_v53  ;;  %vm1391_vm11 = vmor %vm1135_vm8, %vm1263_vm7  ;;  %vm1138_vm7 = vcmp.eq.s32.totalorder %v4423_v31, %v4440_v47  ;;  %vm1275_vm8 = vcmp.eq.s32.totalorder %v4428_v38, %v832_v11  ;;  %v4582_v47 = vadd.s32 128, %v739_v33 }
  0x9b   : > { %v4450_v56 = vpop.permute.xlu1 %1004  ;;  %v4452_v58 = vpop.permute.xlu0 %1001  ;;  %v1519_v62 = vsel %vm1391_vm11, 1.0, %v4195_v53  ;;  %v4458_v63 = vpack.c.bf16 %v1523_v55, %v1521_v54  ;;  %vm4477_vm3 = vmpackc.low %vm1134_vm14, %vm1132_vm0  ;;  %vm1279_vm0 = vcmp.eq.s32.totalorder %v4428_v38, %v834_v23  ;;  %v354_v54 = vand.u32 63, %v268_v40 }
  0x9c   : > { %vm1143_vm15 = vcmp.eq.s32.totalorder %v4428_v38, %v4450_v56  ;;  %v4462_v0 = vpack.c.bf16 %v1519_v62, %v1517_v61  ;;  %vm1141_vm2 = vcmp.eq.s32.totalorder %v4428_v38, %v4452_v58  ;;  %v270_v55 = vadd.s32 40, %v4413_v21 }
  0x9d   : > { %vm4485_vm4 = vmor %vm1143_vm15, %vm1271_vm12  ;;  %v753_v57 = vand.u32 63, %v325_v42  ;;  %v347_v61 = vand.u32 63, %v267_v45  ;;  %v269_v62 = vadd.s32 32, %v4413_v21  ;;  %v780_v11 = vadd.s32 128, %v354_v54 }
  0x9e   : > { %3719 = vmatprep.mubr.msk.bf16.mxu1 %vm6389_vm13, %v4462_v0  ;;  %vm4492_vm5 = vmor %vm1141_vm2, %vm1269_vm1  ;;  %v1527_v20 = vsel %vm4485_vm4, 1.0, %v4195_v53  ;;  %vm1277_vm1 = vcmp.eq.s32.totalorder %v4428_v38, %v833_v26  ;;  %vm1142_vm2 = vcmp.eq.s32.totalorder %v4423_v31, %v4450_v56  ;;  %vm1140_vm4 = vcmp.eq.s32.totalorder %v4423_v31, %v4452_v58 }
  0x9f   : > { %v4472_v4 = vpop.permute.xlu1 %1010  ;;  %v4474_v5 = vpop.permute.xlu0 %1007  ;;  %3721 = vmatmul.mubr.msk.bf16.vlgmr.msra.gmra.mxu1 %vm4477_vm3, %v4196_v9  ;;  %v1525_v22 = vsel %vm4492_vm5, 1.0, %v4195_v53  ;;  %vm4539_vm12 = vmpackc.low %vm1138_vm7, %vm1136_vm6  ;;  %v6411_v56 = vmov 0  ;;  %v4649_v14 = vadd.s32 128, %v753_v57  ;;  %v779_v19 = vadd.s32 128, %v347_v61 }
  0xa0   : > { %2303 = vmatpush1.bf16.msra.mxu1 %v4096_v2  ;;  %3722 = vmatprep.mubr.msk.bf16.mxu1 %vm6389_vm13, %v4458_v63  ;;  %vm1147_vm9 = vcmp.eq.s32.totalorder %v4428_v38, %v4472_v4  ;;  %vm1145_vm11 = vcmp.eq.s32.totalorder %v4428_v38, %v4474_v5  ;;  %v6406_v29 = vsel %vm4539_vm12, 4294967295, %v6405_v29  ;;  %v4543_v30 = vpack.c.bf16 %v1527_v20, %v1525_v22  ;;  %vm4598_vm7 = vmpackc.low %vm1142_vm2, %vm1140_vm4 }
  0xa1   : > { %2304 = vmatprep.subr.bf16.mxu1 %v4194_v1  ;;  %vm4550_vm14 = vmor %vm1147_vm9, %vm1275_vm8  ;;  %v6412_v56 = vsel %vm4598_vm7, 4294967295, %v6411_v56  ;;  %vm1283_vm9 = vcmp.eq.s32.totalorder %v4428_v38, %v836_v46  ;;  %v361_v20 = vand.u32 63, %v269_v62  ;;  %v6417_v22 = vmov 0 }
  0xa2   : > { %vm4558_vm15 = vmor %vm1145_vm11, %vm1273_vm10  ;;  %v1531_v48 = vsel %vm4550_vm14, 1.0, %v4195_v53  ;;  %vm1146_vm10 = vcmp.eq.s32.totalorder %v4423_v31, %v4472_v4  ;;  %vm1144_vm11 = vcmp.eq.s32.totalorder %v4423_v31, %v4474_v5  ;;  %v4675_v4 = vadd.s32 496, %v4413_v21 }
  0xa3   : > { %v4501_v15 = vpop.permute.xlu1 %1016  ;;  %v4504_v17 = vpop.permute.xlu0 %1013  ;;  %v1529_v49 = vsel %vm4558_vm15, 1.0, %v4195_v53  ;;  %vm1281_vm15 = vcmp.eq.s32.totalorder %v4428_v38, %v4582_v47  ;;  %vm4659_vm2 = vmpackc.low %vm1146_vm10, %vm1144_vm11  ;;  %v272_v5 = vadd.s32 56, %v4413_v21  ;;  %v271_v33 = vadd.s32 48, %v4413_v21  ;;  %v4108_v47 = vld [vmem:[%s6386_s2 + $0x38] sm:$0xff]  }
  0xa4   : > { %2305 = vmatpush1.bf16.msra.mxu1 %v4097_v13  ;;  %vm1151_vm5 = vcmp.eq.s32.totalorder %v4428_v38, %v4501_v15  ;;  %vm1149_vm6 = vcmp.eq.s32.totalorder %v4428_v38, %v4504_v17  ;;  %v4608_v2 = vpack.c.bf16 %v1531_v48, %v1529_v49  ;;  %v368_v13 = vand.u32 63, %v270_v55 }
  0xa5   : > { %2306 = vmatprep.subr.bf16.mxu1 %v4194_v1  ;;  %vm4615_vm8 = vmor %vm1151_vm5, %vm1279_vm0  ;;  %vm1167_vm0 = vcmp.eq.s32.totalorder %v4428_v38, %v778_v51  ;;  %v6418_v22 = vsel %vm4659_vm2, 4294967295, %v6417_v22  ;;  %v781_v40 = vadd.s32 128, %v361_v20  ;;  %v382_v46 = vand.u32 63, %v272_v5 }
  0xa6   : > { %vm4629_vm14 = vmor %vm1149_vm6, %vm1277_vm1  ;;  %vm1165_vm1 = vcmp.eq.s32.totalorder %v4428_v38, %v777_v60  ;;  %v1535_v23 = vsel %vm4615_vm8, 1.0, %v4195_v53  ;;  %v782_v26 = vadd.s32 128, %v368_v13  ;;  %v375_v49 = vand.u32 63, %v271_v33  ;;  %v4105_v33 = vld [vmem:[%s6385_s1 + $0xf8] ss:$12 sps:$4 sm:$0xff]  }
  0xa7   : > { %v4528_v27 = vpop.permute.xlu1 %1022  ;;  %v4530_v28 = vpop.permute.xlu0 %1019  ;;  %3724 = vmatmul.mubr.msk.bf16.gmra.mxu1 %vm4539_vm12, %v4196_v9  ;;  %v784_v3 = vadd.s32 128, %v382_v46  ;;  %v840_v5 = vadd.s32 128, %v774_v44  ;;  %v276_v46 = vadd.s32 88, %v4413_v21 }
  0xa8   : > { %3725 = vmatprep.mubr.msk.bf16.mxu1 %vm6389_vm13, %v4543_v30  ;;  %2307 = vmatpush1.bf16.msra.mxu1 %v4098_v24  ;;  %v1533_v24 = vsel %vm4629_vm14, 1.0, %v4195_v53  ;;  %vm1155_vm4 = vcmp.eq.s32.totalorder %v4428_v38, %v4528_v27  ;;  %vm1153_vm6 = vcmp.eq.s32.totalorder %v4428_v38, %v4530_v28  ;;  %vm1171_vm14 = vcmp.eq.s32.totalorder %v4428_v38, %v780_v11 }
  0xa9   : > { %2308 = vmatprep.subr.bf16.mxu1 %v4194_v1  ;;  %v4689_v34 = vpack.c.bf16 %v1535_v23, %v1533_v24  ;;  %v767_v11 = vand.u32 63, %v4675_v4  ;;  %v783_v13 = vadd.s32 128, %v375_v49 }
  0xab   : > { %v4570_v41 = vpop.permute.xlu1 %1028  ;;  %v4573_v43 = vpop.permute.xlu0 %1025 }
  0xac   : > { %2309 = vmatpush1.bf16.msra.mxu1 %v4099_v37 }
  0xad   : > { %2310 = vmatprep.subr.bf16.mxu1 %v4194_v1 }
  0xaf   : > { %v4602_v58 = vpop.permute.xlu1 %1034  ;;  %v4604_v59 = vpop.permute.xlu0 %1031  ;;  %3727 = vmatmul.mubr.msk.bf16.gmra.mxu1 %vm4598_vm7, %v4196_v9  ;;  %vm6482_vm7 = vcmask 523264  }
  0xb0   : > { %3728 = vmatprep.mubr.msk.bf16.mxu1 %vm6389_vm13, %v4608_v2  ;;  %2311 = vmatpush1.bf16.msra.mxu1 %v4100_v52 }
  0xb1   : > { %2312 = vmatprep.subr.bf16.mxu1 %v4194_v1 }
  0xb3   : > { %v849_v16 = vpop.permute.xlu1 %848  ;;  %v846_v18 = vpop.permute.xlu0 %845 }
  0xb4   : > { %vm1039_vm5 = vcmp.eq.s32.totalorder %v4428_v38, %v849_v16  ;;  %vm1037_vm8 = vcmp.eq.s32.totalorder %v4428_v38, %v846_v18  ;;  %2313 = vmatpush1.bf16.msra.mxu1 %v4101_v12 }
  0xb5   : > { %vm1295_vm10 = vmor %vm1039_vm5, %vm1167_vm0  ;;  %2314 = vmatprep.subr.bf16.mxu1 %v4194_v1  ;;  %vm1036_vm5 = vcmp.eq.s32.totalorder %v4423_v31, %v846_v18  ;;  %v4104_v18 = vld [vmem:[%s6385_s1 + $0x110] ss:$12 sps:$4 sm:$0xff]  }
  0xb6   : > { %vm1293_vm11 = vmor %vm1037_vm8, %vm1165_vm1  ;;  %v1423_v25 = vsel %vm1295_vm10, 1.0, %v4195_v53  ;;  %vm1169_vm1 = vcmp.eq.s32.totalorder %v4428_v38, %v779_v19  ;;  %v6429_v19 = vmov 0 }
  0xb7   : > { %vm4696_vm0 = vmor %vm1155_vm4, %vm1283_vm9  ;;  %v4700_v36 = vpop.permute.xlu1 %854  ;;  %v4703_v37 = vpop.permute.xlu0 %851  ;;  %v1421_v39 = vsel %vm1293_vm11, 1.0, %v4195_v53  ;;  %vm1038_vm4 = vcmp.eq.s32.totalorder %v4423_v31, %v849_v16  ;;  %3730 = vmatmul.mubr.msk.bf16.gmra.mxu1 %vm4659_vm2, %v4196_v9  ;;  %v273_v16 = vadd.s32 64, %v4413_v21  ;;  %vm1160_vm2 = vcmp.eq.s32.totalorder %v4423_v31, %v4604_v59 }
  0xb8   : > { %vm4713_vm9 = vmor %vm1153_vm6, %vm1281_vm15  ;;  %vm1043_vm10 = vcmp.eq.s32.totalorder %v4428_v38, %v4700_v36  ;;  %vm1041_vm8 = vcmp.eq.s32.totalorder %v4428_v38, %v4703_v37  ;;  %v4731_v45 = vpack.c.bf16 %v1423_v25, %v1421_v39  ;;  %3731 = vmatprep.mubr.msk.bf16.mxu1 %vm6389_vm13, %v4689_v34  ;;  %2315 = vmatpush1.bf16.msra.mxu1 %v4102_v32  ;;  %v1539_v57 = vsel %vm4696_vm0, 1.0, %v4195_v53 }
  0xb9   : > { %vm1299_vm15 = vmor %vm1043_vm10, %vm1171_vm14  ;;  %vm1175_vm14 = vcmp.eq.s32.totalorder %v4428_v38, %v782_v26  ;;  %vm1150_vm10 = vcmp.eq.s32.totalorder %v4423_v31, %v4501_v15  ;;  %vm1148_vm6 = vcmp.eq.s32.totalorder %v4423_v31, %v4504_v17  ;;  %2316 = vmatprep.subr.bf16.mxu1 %v4194_v1  ;;  %v1537_v60 = vsel %vm4713_vm9, 1.0, %v4195_v53  ;;  %v5016_v15 = vld [vmem:[%s6386_s2 + $0xb8] sm:$0xff]  }
  0xba   : > { %v1427_v48 = vsel %vm1299_vm15, 1.0, %v4195_v53  ;;  %vm1297_vm11 = vmor %vm1041_vm8, %vm1169_vm1  ;;  %3647 = vmatprep.mubr.msk.bf16.mxu0 %vm6389_vm13, %v4731_v45  ;;  %vm1173_vm1 = vcmp.eq.s32.totalorder %v4428_v38, %v781_v40  ;;  %vm1157_vm9 = vcmp.eq.s32.totalorder %v4428_v38, %v4573_v43  ;;  %v4820_v20 = vpack.c.bf16 %v1539_v57, %v1537_v60 }
  0xbb   : > { %vm4755_vm15 = vmpackc.low %vm1038_vm4, %vm1036_vm5  ;;  %v1425_v52 = vsel %vm1297_vm11, 1.0, %v4195_v53  ;;  %v4762_v54 = vpop.permute.xlu1 %860  ;;  %v4765_v55 = vpop.permute.xlu0 %857  ;;  %vm1159_vm5 = vcmp.eq.s32.totalorder %v4428_v38, %v4570_v41  ;;  %v396_v25 = vand.u32 63, %v274_v6  ;;  %v839_v26 = vadd.s32 128, %v767_v11  ;;  %v4112_v11 = vld [vmem:[%s6386_s2 + $0x18] sm:$0xff]  }
  0xbc   : > { %v4774_v61 = vpack.c.bf16 %v1427_v48, %v1425_v52  ;;  %3649 = vmatmul.mubr.msk.bf16.vlgmr.msra.gmra.mxu0 %vm4755_vm15, %v4196_v9  ;;  %vm1047_vm4 = vcmp.eq.s32.totalorder %v4428_v38, %v4762_v54  ;;  %vm1045_vm0 = vcmp.eq.s32.totalorder %v4428_v38, %v4765_v55  ;;  %2317 = vmatpush1.bf16.msra.mxu1 %v4103_v50  ;;  %v389_v32 = vand.u32 63, %v273_v16  ;;  %v4106_v52 = vld [vmem:[%s6385_s1 + $0xe0] ss:$12 sps:$4 sm:$0xff]  }
  0xbd   : > { %vm4785_vm8 = vmor %vm1047_vm4, %vm1175_vm14  ;;  %2887 = vmatpush1.bf16.msra.mxu0 %v4108_v47  ;;  %2326 = vmatprep.subr.bf16.mxu1 %v4194_v1  ;;  %vm1040_vm4 = vcmp.eq.s32.totalorder %v4423_v31, %v4703_v37  ;;  %v786_v44 = vadd.s32 128, %v396_v25  ;;  %v4111_v47 = vld [vmem:[%s6386_s2 + $0x20] sm:$0xff]   ;;  %v275_v50 = vadd.s32 80, %v4413_v21  ;;  %v6446_v57 = vmov 0  ;;  %v4113_v25 = vld [vmem:[%s6386_s2 + $0x10] sm:$0xff]  }
  0xbe   : > { %vm4800_vm11 = vmor %vm1045_vm0, %vm1173_vm1  ;;  %3650 = vmatprep.mubr.msk.bf16.mxu0 %vm6389_vm13, %v4774_v61  ;;  %2888 = vmatprep.subr.bf16.mxu0 %v4194_v1  ;;  %vm6431_vm1 = vcmp.eq.s32.totalorder %v4428_v38, %v4641_v10  ;;  %v1431_v17 = vsel %vm4785_vm8, 1.0, %v4195_v53  ;;  %vm1179_vm8 = vcmp.eq.s32.totalorder %v4428_v38, %v784_v3  ;;  %v785_v49 = vadd.s32 128, %v389_v32 }
  0xbf   : > { %vm4816_vm14 = vmpackc.low %vm1150_vm10, %vm1148_vm6  ;;  %v4822_v23 = vpop.permute.xlu1 %866  ;;  %v4824_v24 = vpop.permute.xlu0 %863  ;;  %vm1042_vm10 = vcmp.eq.s32.totalorder %v4423_v31, %v4700_v36  ;;  %v1429_v10 = vsel %vm4800_vm11, 1.0, %v4195_v53  ;;  %v403_v12 = vand.u32 63, %v275_v50  ;;  %v277_v32 = vadd.s32 96, %v4413_v21  ;;  %v4116_v50 = vld [vmem:[%s6386_s2] sm:$0xff]  }
  0xc0   : > { %v6430_v19 = vsel %vm4816_vm14, 4294967295, %v6429_v19  ;;  %vm4834_vm6 = vmor %vm1159_vm5, %vm6431_vm1  ;;  %vm6434_vm5 = vcmp.eq.s32.totalorder %v4428_v38, %v4649_v14  ;;  %3733 = vmatmul.mubr.msk.bf16.gmra.mxu1 %vm4816_vm14, %v4196_v9  ;;  %vm1051_vm11 = vcmp.eq.s32.totalorder %v4428_v38, %v4822_v23  ;;  %v4110_v14 = vld [vmem:[%s6386_s2 + $0x28] sm:$0xff]   ;;  %v4885_v39 = vpack.c.bf16 %v1431_v17, %v1429_v10 }
  0xc1   : > { %vm4854_vm0 = vmor %vm1157_vm9, %vm6434_vm5  ;;  %2889 = vmatpush1.bf16.msra.mxu0 %v4109_v8  ;;  %3734 = vmatprep.mubr.msk.bf16.mxu1 %vm6389_vm13, %v4820_v20  ;;  %vm1177_vm9 = vcmp.eq.s32.totalorder %v4428_v38, %v783_v13  ;;  %vm1152_vm1 = vcmp.eq.s32.totalorder %v4423_v31, %v4530_v28  ;;  %v1543_v36 = vsel %vm4834_vm6, 1.0, %v4195_v53  ;;  %v410_v8 = vand.u32 63, %v276_v46  ;;  %v4107_v13 = vld [vmem:[%s6385_s1 + $0xc8] ss:$12 sps:$4 sm:$0xff]  }
  0xc2   : > { %2327 = vmatpush2.bf16.msra.mxu1 %v4104_v18  ;;  %vm4881_vm5 = vmpackc.low %vm1042_vm10, %vm1040_vm4  ;;  %2890 = vmatprep.subr.bf16.mxu0 %v4194_v1  ;;  %v1541_v37 = vsel %vm4854_vm0, 1.0, %v4195_v53  ;;  %vm1291_vm4 = vcmp.eq.s32.totalorder %v4428_v38, %v840_v5  ;;  %vm6441_vm0 = vcmp.eq.s32.totalorder %v4428_v38, %v4824_v24  ;;  %v278_v5 = vadd.s32 104, %v4413_v21 }
  0xc3   : > { %2328 = vmatprep.subr.bf16.mxu1 %v4194_v1  ;;  %vm4904_vm10 = vmor %vm1051_vm11, %vm1179_vm8  ;;  %vm6444_vm8 = vcmask 523264   ;;  %vm1289_vm11 = vcmp.eq.s32.totalorder %v4428_v38, %v839_v26  ;;  %v4932_v48 = vpop.permute.xlu1 %872  ;;  %v4949_v60 = vpack.c.bf16 %v1543_v36, %v1541_v37  ;;  %v4951_v62 = vpop.permute.xlu0 %869  ;;  %v788_v4 = vadd.s32 128, %v410_v8 }
  0xc4   : > { %3652 = vmatmul.mubr.msk.bf16.gmra.mxu0 %vm4881_vm5, %v4196_v9  ;;  %vm4919_vm13 = vmor %vm6441_vm0, %vm1177_vm9  ;;  %vm6445_vm9 = vcmp.eq.s32.totalorder %v4423_v31, %v4528_v27  ;;  %v1435_v27 = vsel %vm4904_vm10, 1.0, %v4195_v53  ;;  %vm1156_vm10 = vcmp.eq.s32.totalorder %v4423_v31, %v4573_v43  ;;  %v787_v26 = vadd.s32 128, %v403_v12 }
  0xc5   : > { %3653 = vmatprep.mubr.msk.bf16.mxu0 %vm6444_vm8, %v4885_v39  ;;  %2891 = vmatpush1.bf16.msra.mxu0 %v4110_v14  ;;  %vm4945_vm0 = vmpackc.low %vm6445_vm9, %vm1152_vm1  ;;  %vm6448_vm8 = vcmp.eq.s32.totalorder %v4428_v38, %v4602_v58  ;;  %v1433_v3 = vsel %vm4919_vm13, 1.0, %v4195_v53  ;;  %vm1181_vm13 = vcmp.eq.s32.totalorder %v4428_v38, %v785_v49  ;;  %vm6456_vm9 = vcmp.eq.s32.totalorder %v4423_v31, %v4762_v54 }
  0xc6   : > { %2329 = vmatpush2.bf16.msra.mxu1 %v4105_v33  ;;  %2892 = vmatprep.subr.bf16.mxu0 %v4194_v1  ;;  %v6447_v57 = vsel %vm4945_vm0, 4294967295, %v6446_v57  ;;  %vm4959_vm6 = vmor %vm6448_vm8, %vm1291_vm4  ;;  %vm6451_vm4 = vcmp.eq.s32.totalorder %v4428_v38, %v4604_v59  ;;  %v5009_v18 = vpack.c.bf16 %v1435_v27, %v1433_v3  ;;  %v6467_v37 = vmov 0 }
  0xc7   : > { %2330 = vmatprep.subr.bf16.mxu1 %v4194_v1  ;;  %vm4978_vm8 = vmor %vm6451_vm4, %vm1289_vm11  ;;  %vm6454_vm11 = vcmask 523264   ;;  %vm6455_vm4 = vcmp.eq.s32.totalorder %v4423_v31, %v4765_v55  ;;  %v1547_v55 = vsel %vm4959_vm6, 1.0, %v4195_v53  ;;  %vm1158_vm6 = vcmp.eq.s32.totalorder %v4423_v31, %v4570_v41  ;;  %v5055_v14 = vpop.permute.xlu1 %878  ;;  %v5061_v36 = vpop.permute.xlu0 %875 }
  0xc8   : > { %3736 = vmatmul.mubr.msk.bf16.gmra.mxu1 %vm4945_vm0, %v4196_v9  ;;  %vm5005_vm1 = vmpackc.low %vm6456_vm9, %vm6455_vm4  ;;  %v1545_v54 = vsel %vm4978_vm8, 1.0, %v4195_v53  ;;  %vm6459_vm9 = vcmp.eq.s32.totalorder %v4428_v38, %v786_v44  ;;  %vm6463_vm8 = vcmp.eq.s32.totalorder %v4428_v38, %v4951_v62  ;;  %v424_v41 = vand.u32 63, %v278_v5 }
  0xc9   : > { %2893 = vmatpush1.bf16.msra.mxu0 %v4111_v47  ;;  %3737 = vmatprep.mubr.msk.bf16.mxu1 %vm6454_vm11, %v4949_v60  ;;  %vm6460_vm11 = vcmp.eq.s32.totalorder %v4428_v38, %v4932_v48  ;;  %vm5045_vm0 = vmor %vm6463_vm8, %vm1181_vm13  ;;  %v5059_v33 = vpack.c.bf16 %v1547_v55, %v1545_v54  ;;  %vm1048_vm8 = vcmp.eq.s32.totalorder %v4423_v31, %v4824_v24  ;;  %v4115_v24 = vld [vmem:[%s6386_s2 + $0x8] sm:$0xff]   ;;  %v417_v42 = vand.u32 63, %v277_v32 }
  0xca   : > { %2331 = vmatpush2.bf16.msra.mxu1 %v4106_v52  ;;  %2894 = vmatprep.subr.bf16.mxu0 %v4194_v1  ;;  %vm5029_vm4 = vmor %vm6460_vm11, %vm6459_vm9  ;;  %vm6466_vm9 = vcmask 523264   ;;  %vm1050_vm11 = vcmp.eq.s32.totalorder %v4423_v31, %v4822_v23  ;;  %v1437_v43 = vsel %vm5045_vm0, 1.0, %v4195_v53  ;;  %vm1057_vm0 = vcmp.eq.s32.totalorder %v4428_v38, %v5061_v36 }
  0xcb   : > { %2332 = vmatprep.subr.bf16.mxu1 %v4194_v1  ;;  %vm5070_vm13 = vmpackc.low %vm1158_vm6, %vm1156_vm10  ;;  %v1439_v40 = vsel %vm5029_vm4, 1.0, %v4195_v53  ;;  %vm1059_vm10 = vcmp.eq.s32.totalorder %v4428_v38, %v5055_v14  ;;  %vm1185_vm4 = vcmp.eq.s32.totalorder %v4428_v38, %v787_v26  ;;  %vm6469_vm6 = vcmask 523264   ;;  %v5125_v52 = vpop.permute.xlu1 %884  ;;  %v5129_v59 = vpop.permute.xlu0 %881 }
  0xcc   : > { %3655 = vmatmul.mubr.msk.bf16.gmra.mxu0 %vm5005_vm1, %v4196_v9  ;;  %v6468_v37 = vsel %vm5070_vm13, 4294967295, %v6467_v37  ;;  %v5106_v46 = vpack.c.bf16 %v1439_v40, %v1437_v43  ;;  %v790_v23 = vadd.s32 128, %v424_v41  ;;  %v280_v49 = vadd.s32 120, %v4413_v21 }
  0xcd   : > { %3656 = vmatprep.mubr.msk.bf16.mxu0 %vm6466_vm9, %v5009_v18  ;;  %2895 = vmatpush1.bf16.msra.mxu0 %v4112_v11  ;;  %vm1187_vm9 = vcmp.eq.s32.totalorder %v4428_v38, %v788_v4  ;;  %v789_v28 = vadd.s32 128, %v417_v42  ;;  %v6475_v27 = vmov 0  ;;  %v282_v54 = vadd.s32 136, %v4413_v21 }
  0xce   : > { %2333 = vmatpush2.bf16.msra.mxu1 %v4107_v13  ;;  %2896 = vmatprep.subr.bf16.mxu0 %v4194_v1  ;;  %vm5108_vm14 = vmor %vm1059_vm10, %vm1187_vm9  ;;  %vm1054_vm10 = vcmp.eq.s32.totalorder %v4423_v31, %v4932_v48  ;;  %v438_v8 = vand.u32 63, %v280_v49  ;;  %v4119_v48 = vld [vmem:[%s6386_s2 + $0x70] sm:$0xff]   ;;  %v281_v4 = vadd.s32 128, %v4413_v21  ;;  %v283_v42 = vadd.s32 144, %v4413_v21 }
  0xcf   : > { %3910 = vmatprep.subr.bf16.mxu1 %v5016_v15  ;;  %v1443_v3 = vsel %vm5108_vm14, 1.0, %v4195_v53  ;;  %vm1061_vm14 = vcmp.eq.s32.totalorder %v4428_v38, %v5129_v59  ;;  %v5180_v17 = vpop.permute.xlu1 %890  ;;  %v5184_v5 = vpop.permute.xlu0 %887  ;;  %v452_v40 = vand.u32 63, %v282_v54 }
  0xd0   : > { %3739 = vmatmul.mubr.msk.bf16.gmra.mxu1 %vm5070_vm13, %v4196_v9  ;;  %vm5102_vm13 = vmpackc.low %vm1050_vm11, %vm1048_vm8  ;;  %vm6474_vm8 = vcmask 523264   ;;  %v445_v43 = vand.u32 63, %v281_v4  ;;  %v288_v4 = vadd.s32 184, %v4413_v21 }
  0xd1   : > { %2897 = vmatpush1.bf16.msra.mxu0 %v4113_v25  ;;  %3740 = vmatprep.mubr.msk.bf16.mxu1 %vm6469_vm6, %v5059_v33  ;;  %vm1162_vm6 = vcmp.eq.s32.totalorder %v4423_v31, %v4602_v58  ;;  %vm1313_vm11 = vmor %vm1057_vm0, %vm1185_vm4  ;;  %v279_v58 = vadd.s32 112, %v4413_v21  ;;  %vm1052_vm4 = vcmp.eq.s32.totalorder %v4423_v31, %v4951_v62  ;;  %vm1191_vm0 = vcmp.eq.s32.totalorder %v4428_v38, %v790_v23  ;;  %v4118_v62 = vld [vmem:[%s6386_s2 + $0x78] sm:$0xff]   ;;  %v4117_v25 = vld [vmem:[%s6386_s2 + $0xb0] sm:$0xff]  }
  0xd2   : > { %2898 = vmatprep.subr.bf16.mxu0 %v4194_v1  ;;  %vm5131_vm9 = vmpackc.low %vm1162_vm6, %vm1160_vm2  ;;  %v1441_v6 = vsel %vm1313_vm11, 1.0, %v4195_v53  ;;  %vm1063_vm2 = vcmp.eq.s32.totalorder %v4428_v38, %v5125_v52  ;;  %vm1189_vm6 = vcmp.eq.s32.totalorder %v4428_v38, %v789_v28 }
  0xd3   : > { %v6476_v27 = vsel %vm5131_vm9, 4294967295, %v6475_v27  ;;  %v431_v11 = vand.u32 63, %v279_v58  ;;  %vm6477_vm11 = vmmov %vm6474_vm8  ;;  %v5165_v13 = vpack.c.bf16 %v1443_v3, %v1441_v6  ;;  %v5234_v47 = vpop.permute.xlu0 %893 }
  0xd4   : > { %3658 = vmatmul.mubr.msk.bf16.gmra.mxu0 %vm5102_vm13, %v4196_v9 }
  0xd5   : > { %3659 = vmatprep.mubr.msk.bf16.mxu0 %vm6474_vm8, %v5106_v46  ;;  %2899 = vmatpush1.bf16.msra.mxu0 %v4115_v24  ;;  %vm5161_vm8 = vmpackc.low %vm1054_vm10, %vm1052_vm4  ;;  %v791_v10 = vadd.s32 128, %v431_v11  ;;  %vm1056_vm10 = vcmp.eq.s32.totalorder %v4423_v31, %v5061_v36  ;;  %v4120_v36 = vld [vmem:[%s6386_s2 + $0x68] sm:$0xff]   ;;  %v793_v24 = vadd.s32 128, %v445_v43  ;;  %v494_v43 = vand.u32 63, %v288_v4 }
  0xd6   : > { %2900 = vmatprep.subr.bf16.mxu0 %v4194_v1 }
  0xd7   : > { %v5275_v11 = vpop.permute.xlu0 %899 }
  0xd8   : > { %3742 = vmatmul.mubr.msk.bf16.gmra.mxu1 %vm5131_vm9, %v4196_v9  ;;  %vm5167_vm9 = vmor %vm1063_vm2, %vm1191_vm0  ;;  %vm1067_vm0 = vcmp.eq.s32.totalorder %v4428_v38, %v5180_v17  ;;  %vm1193_vm2 = vcmp.eq.s32.totalorder %v4428_v38, %v791_v10 }
  0xd9   : > { %2901 = vmatpush1.bf16.msra.mxu0 %v4116_v50  ;;  %3743 = vmatprep.mubr.msk.bf16.mxu1 %vm6477_vm11, %v4731_v45  ;;  %vm1317_vm11 = vmor %vm1061_vm14, %vm1189_vm6  ;;  %v792_v45 = vadd.s32 128, %v438_v8  ;;  %v1447_v26 = vsel %vm5167_vm9, 1.0, %v4195_v53  ;;  %vm1065_vm9 = vcmp.eq.s32.totalorder %v4428_v38, %v5184_v5  ;;  %vm6483_vm6 = vcmask 523264   ;;  %v4121_v50 = vld [vmem:[%s6386_s2 + $0xa8] sm:$0xff]  }
  0xda   : > { %2902 = vmatprep.subr.bf16.mxu0 %v4194_v1  ;;  %v1445_v32 = vsel %vm1317_vm11, 1.0, %v4195_v53  ;;  %vm1321_vm11 = vmor %vm1065_vm9, %vm1193_vm2  ;;  %vm1197_vm9 = vcmp.eq.s32.totalorder %v4428_v38, %v793_v24 }
  0xdb   : > { %vm1195_vm4 = vcmp.eq.s32.totalorder %v4428_v38, %v792_v45  ;;  %v5219_v41 = vpack.c.bf16 %v1447_v26, %v1445_v32  ;;  %v1449_v49 = vsel %vm1321_vm11, 1.0, %v4195_v53  ;;  %v4123_v26 = vld [vmem:[%s6386_s2 + $0x58] sm:$0xff]   ;;  %v5312_v32 = vpop.permute.xlu0 %905 }
  0xdc   : > { %3661 = vmatmul.mubr.msk.bf16.gmra.mxu0 %vm5161_vm8, %v4196_v9  ;;  %vm1323_vm14 = vmor %vm1067_vm0, %vm1195_vm4  ;;  %vm1060_vm4 = vcmp.eq.s32.totalorder %v4423_v31, %v5129_v59 }
  0xdd   : > { %3662 = vmatprep.mubr.msk.bf16.mxu0 %vm6482_vm7, %v5165_v13  ;;  %2903 = vmatpush2.bf16.msra.mxu0 %v4118_v62  ;;  %vm1058_vm7 = vcmp.eq.s32.totalorder %v4423_v31, %v5055_v14  ;;  %v5230_v14 = vpop.permute.xlu1 %896  ;;  %v1451_v23 = vsel %vm1323_vm14, 1.0, %v4195_v53  ;;  %v285_v62 = vadd.s32 160, %v4413_v21 }
  0xde   : > { %2904 = vmatprep.subr.bf16.mxu0 %v4194_v1  ;;  %vm1071_vm2 = vcmp.eq.s32.totalorder %v4428_v38, %v5230_v14  ;;  %v5260_v59 = vpack.c.bf16 %v1451_v23, %v1449_v49  ;;  %v289_v23 = vadd.s32 192, %v4413_v21  ;;  %v4125_v49 = vld [vmem:[%s6386_s2 + $0x48] sm:$0xff]  }
  0xe0   : > { %3745 = vmatmul.mubr.msk.bf16.vlgmr.msra.gmra.mxu1 %vm4755_vm15, %v4196_v9  ;;  %vm5215_vm15 = vmpackc.low %vm1058_vm7, %vm1056_vm10  ;;  %vm1062_vm10 = vcmp.eq.s32.totalorder %v4423_v31, %v5125_v52  ;;  %v459_v52 = vand.u32 63, %v283_v42  ;;  %v290_v42 = vadd.s32 200, %v4413_v21 }
  0xe1   : > { %2905 = vmatpush2.bf16.msra.mxu0 %v4119_v48  ;;  %3746 = vmatprep.mubr.msk.bf16.mxu1 %vm6483_vm6, %v4774_v61  ;;  %v794_v61 = vadd.s32 128, %v452_v40  ;;  %vm6486_vm7 = vmmov %vm6483_vm6  ;;  %vm1069_vm6 = vcmp.eq.s32.totalorder %v4428_v38, %v5234_v47  ;;  %v5271_v6 = vpop.permute.xlu1 %902  ;;  %v473_v48 = vand.u32 63, %v285_v62 }
  0xe2   : > { %3911 = vmatpush3.bf16.msra.mxu1 %v5016_v15  ;;  %2906 = vmatprep.subr.bf16.mxu0 %v4194_v1  ;;  %v284_v15 = vadd.s32 152, %v4413_v21  ;;  %vm6487_vm14 = vmmov %vm6486_vm7  ;;  %v795_v8 = vadd.s32 128, %v459_v52 }
  0xe3   : > { %3912 = vmatprep.subr.bf16.mxu1 %v4117_v25  ;;  %vm1199_vm0 = vcmp.eq.s32.totalorder %v4428_v38, %v794_v61  ;;  %vm5256_vm11 = vmpackc.low %vm1062_vm10, %vm1060_vm4  ;;  %vm1066_vm4 = vcmp.eq.s32.totalorder %v4423_v31, %v5180_v17 }
  0xe4   : > { %3664 = vmatmul.mubr.msk.bf16.gmra.mxu0 %vm5215_vm15, %v4196_v9  ;;  %v466_v28 = vand.u32 63, %v284_v15  ;;  %vm6490_vm10 = vmmov %vm6487_vm14  ;;  %v4124_v15 = vld [vmem:[%s6386_s2 + $0x50] sm:$0xff]  }
  0xe5   : > { %3665 = vmatprep.mubr.msk.bf16.mxu0 %vm6486_vm7, %v5219_v41  ;;  %2907 = vmatpush2.bf16.msra.mxu0 %v4120_v36  ;;  %vm1325_vm7 = vmor %vm1069_vm6, %vm1197_vm9  ;;  %vm1075_vm9 = vcmp.eq.s32.totalorder %v4428_v38, %v5271_v6  ;;  %vm1201_vm6 = vcmp.eq.s32.totalorder %v4428_v38, %v795_v8 }
  0xe6   : > { %3913 = vmatpush3.bf16.msra.mxu1 %v4117_v25  ;;  %2908 = vmatprep.subr.bf16.mxu0 %v4194_v1  ;;  %v796_v3 = vadd.s32 128, %v466_v28  ;;  %v1453_v45 = vsel %vm1325_vm7, 1.0, %v4195_v53  ;;  %v287_v25 = vadd.s32 176, %v4413_v21 }
  0xe7   : > { %3914 = vmatprep.subr.bf16.mxu1 %v4121_v50 }
  0xe8   : > { %3748 = vmatmul.mubr.msk.bf16.gmra.mxu1 %vm4881_vm5, %v4196_v9  ;;  %vm1327_vm5 = vmor %vm1071_vm2, %vm1199_vm0  ;;  %vm1064_vm0 = vcmp.eq.s32.totalorder %v4423_v31, %v5184_v5  ;;  %vm1203_vm2 = vcmp.eq.s32.totalorder %v4428_v38, %v796_v3  ;;  %v5306_v5 = vpop.permute.xlu1 %908  ;;  %v487_v61 = vand.u32 63, %v287_v25  ;;  %v501_v3 = vand.u32 63, %v289_v23 }
  0xe9   : > { %3749 = vmatprep.mubr.msk.bf16.mxu1 %vm6487_vm14, %v4885_v39  ;;  %v286_v39 = vadd.s32 168, %v4413_v21  ;;  %2909 = vmatpush2.bf16.msra.mxu0 %v4122_v35  ;;  %v1455_v55 = vsel %vm1327_vm5, 1.0, %v4195_v53  ;;  %vm1073_vm14 = vcmp.eq.s32.totalorder %v4428_v38, %v5275_v11  ;;  %vm6491_vm5 = vmmov %vm6490_vm10  ;;  %v508_v35 = vand.u32 63, %v290_v42 }
  0xea   : > { %3915 = vmatpush3.bf16.msra.mxu1 %v4121_v50  ;;  %2910 = vmatprep.subr.bf16.mxu0 %v4194_v1  ;;  %vm5294_vm7 = vmpackc.low %vm1066_vm4, %vm1064_vm0  ;;  %v5298_v10 = vpack.c.bf16 %v1455_v55, %v1453_v45  ;;  %vm1070_vm4 = vcmp.eq.s32.totalorder %v4423_v31, %v5230_v14  ;;  %vm1068_vm0 = vcmp.eq.s32.totalorder %v4423_v31, %v5234_v47  ;;  %v799_v47 = vadd.s32 128, %v487_v61  ;;  %v5357_v50 = vpop.permute.xlu0 %911 }
  0xeb   : > { %v480_v54 = vand.u32 63, %v286_v39  ;;  %vm6494_vm12 = vmmov %vm6491_vm5  ;;  %v4126_v39 = vld [vmem:[%s6386_s2 + $0x40] sm:$0xff]   ;;  %v801_v62 = vadd.s32 128, %v501_v3  ;;  %v294_v25 = vadd.s32 232, %v4413_v21  ;;  %v295_v23 = vadd.s32 240, %v4413_v21 }
  0xec   : > { %3667 = vmatmul.mubr.msk.bf16.gmra.mxu0 %vm5256_vm11, %v4196_v9  ;;  %v5350_v14 = vpop.permute.xlu1 %914 }
  0xed   : > { %3668 = vmatprep.mubr.msk.bf16.mxu0 %vm6490_vm10, %v5260_v59  ;;  %vm1331_vm10 = vmor %vm1075_vm9, %vm1203_vm2  ;;  %v798_v16 = vadd.s32 128, %v480_v54  ;;  %2911 = vmatpush2.bf16.msra.mxu0 %v4123_v26  ;;  %vm1079_vm2 = vcmp.eq.s32.totalorder %v4428_v38, %v5306_v5  ;;  %v536_v61 = vand.u32 63, %v294_v25  ;;  %v299_v25 = vadd.s32 272, %v4413_v21 }
  0xee   : > { %v1459_v40 = vsel %vm1331_vm10, 1.0, %v4195_v53  ;;  %2912 = vmatprep.subr.bf16.mxu0 %v4194_v1  ;;  %v5398_v55 = vpop.permute.xlu0 %917 }
  0xef   : > { %v806_v58 = vadd.s32 128, %v536_v61 }
  0xf0   : > { %3751 = vmatmul.mubr.msk.bf16.gmra.mxu1 %vm5005_vm1, %v4196_v9  ;;  %vm1329_vm1 = vmor %vm1073_vm14, %vm1201_vm6  ;;  %vm1077_vm6 = vcmp.eq.s32.totalorder %v4428_v38, %v5312_v32 }
  0xf1   : > { %3752 = vmatprep.mubr.msk.bf16.mxu1 %vm6491_vm5, %v5009_v18  ;;  %v797_v18 = vadd.s32 128, %v473_v48  ;;  %v1457_v36 = vsel %vm1329_vm1, 1.0, %v4195_v53  ;;  %vm6495_vm14 = vmmov %vm6491_vm5  ;;  %2913 = vmatpush2.bf16.msra.mxu0 %v4124_v15  ;;  %v4127_v48 = vld [vmem:[%s6386_s2 + $0xa0] sm:$0xff]  }
  0xf2   : > { %vm5338_vm5 = vmpackc.low %vm1070_vm4, %vm1068_vm0  ;;  %v5342_v24 = vpack.c.bf16 %v1459_v40, %v1457_v36  ;;  %2914 = vmatprep.subr.bf16.mxu0 %v4194_v1  ;;  %vm1074_vm4 = vcmp.eq.s32.totalorder %v4423_v31, %v5271_v6  ;;  %vm1072_vm0 = vcmp.eq.s32.totalorder %v4423_v31, %v5275_v11  ;;  %v5395_v6 = vpop.permute.xlu1 %920  ;;  %v291_v11 = vadd.s32 208, %v4413_v21  ;;  %3916 = vmatprep.subr.bf16.mxu1 %v4127_v48  ;;  %v924_v40 = vpop.permute.xlu0 %923 }
  0xf3   : > { %vm1205_vm9 = vcmp.eq.s32.totalorder %v4428_v38, %v797_v18  ;;  %vm6498_vm1 = vmmov %vm6495_vm14  ;;  %3917 = vmatpush3.bf16.msra.mxu1 %v4127_v48 }
  0xf4   : > { %3670 = vmatmul.mubr.msk.bf16.gmra.mxu0 %vm5294_vm7, %v4196_v9  ;;  %vm1333_vm10 = vmor %vm1077_vm6, %vm1205_vm9  ;;  %vm1209_vm9 = vcmp.eq.s32.totalorder %v4428_v38, %v799_v47  ;;  %vm1081_vm6 = vcmp.eq.s32.totalorder %v4428_v38, %v5357_v50  ;;  %v515_v4 = vand.u32 63, %v291_v11 }
  0xf5   : > { %3671 = vmatprep.mubr.msk.bf16.mxu0 %vm6494_vm12, %v5298_v10  ;;  %vm1207_vm12 = vcmp.eq.s32.totalorder %v4428_v38, %v798_v16  ;;  %v1461_v52 = vsel %vm1333_vm10, 1.0, %v4195_v53  ;;  %2915 = vmatpush2.bf16.msra.mxu0 %v4125_v49  ;;  %vm1337_vm10 = vmor %vm1081_vm6, %vm1209_vm9  ;;  %vm1213_vm9 = vcmp.eq.s32.totalorder %v4428_v38, %v801_v62  ;;  %vm1085_vm6 = vcmp.eq.s32.totalorder %v4428_v38, %v5398_v55 }
  0xf6   : > { %2916 = vmatprep.subr.bf16.mxu0 %v4194_v1  ;;  %v802_v1 = vadd.s32 128, %v508_v35  ;;  %v1465_v54 = vsel %vm1337_vm10, 1.0, %v4195_v53  ;;  %v803_v26 = vadd.s32 128, %v515_v4  ;;  %v5466_v49 = vpop.permute.xlu0 %929  ;;  %v543_v35 = vand.u32 63, %v295_v23 }
  0xf7   : > { %v300_v4 = vadd.s32 280, %v4413_v21 }
  0xf8   : > { %3754 = vmatmul.mubr.msk.bf16.gmra.mxu1 %vm5102_vm13, %v4196_v9  ;;  %vm1335_vm13 = vmor %vm1079_vm2, %vm1207_vm12  ;;  %vm1083_vm2 = vcmp.eq.s32.totalorder %v4428_v38, %v5350_v14 }
  0xf9   : > { %3755 = vmatprep.mubr.msk.bf16.mxu1 %vm6495_vm14, %v5106_v46  ;;  %v800_v46 = vadd.s32 128, %v494_v43  ;;  %v1463_v28 = vsel %vm1335_vm13, 1.0, %v4195_v53  ;;  %vm6499_vm14 = vmmov %vm6498_vm1  ;;  %2917 = vmatpush2.bf16.msra.mxu0 %v4126_v39 }
  0xfa   : > { %v5387_v8 = vpack.c.bf16 %v1463_v28, %v1461_v52  ;;  %v5500_v62 = vpop.permute.xlu0 %935 }
  0xfb   : > { %vm1211_vm12 = vcmp.eq.s32.totalorder %v4428_v38, %v800_v46 }
  0xfc   : > { %3673 = vmatmul.mubr.msk.bf16.gmra.mxu0 %vm5338_vm5, %v4196_v9  ;;  %vm1339_vm13 = vmor %vm1083_vm2, %vm1211_vm12  ;;  %vm1215_vm12 = vcmp.eq.s32.totalorder %v4428_v38, %v802_v1  ;;  %vm1087_vm2 = vcmp.eq.s32.totalorder %v4428_v38, %v5395_v6  ;;  %v298_v1 = vadd.s32 264, %v4413_v21 }
  0xfd   : > { %3674 = vmatprep.mubr.msk.bf16.mxu0 %vm6498_vm1, %v5342_v24  ;;  %v1467_v45 = vsel %vm1339_vm13, 1.0, %v4195_v53  ;;  %vm1343_vm10 = vmor %vm1087_vm2, %vm1215_vm12 }
  0xfe   : > { %v5424_v18 = vpack.c.bf16 %v1467_v45, %v1465_v54  ;;  %v1471_v36 = vsel %vm1343_vm10, 1.0, %v4195_v53  ;;  %v564_v45 = vand.u32 63, %v298_v1 }
 0x100   : > { %3757 = vmatmul.mubr.msk.bf16.gmra.mxu1 %vm5161_vm8, %v4196_v9  ;;  %vm5383_vm8 = vmpackc.low %vm1074_vm4, %vm1072_vm0  ;;  %vm1078_vm4 = vcmp.eq.s32.totalorder %v4423_v31, %v5306_v5  ;;  %vm1076_vm0 = vcmp.eq.s32.totalorder %v4423_v31, %v5312_v32  ;;  %v293_v32 = vadd.s32 224, %v4413_v21  ;;  %v810_v44 = vadd.s32 128, %v564_v45 }
 0x101   : > { %3758 = vmatprep.mubr.msk.bf16.mxu1 %vm6499_vm14, %v5165_v13  ;;  %v292_v13 = vadd.s32 216, %v4413_v21  ;;  %vm6502_vm14 = vmmov %vm6498_vm1 }
 0x102   : > { %vm5420_vm13 = vmpackc.low %vm1078_vm4, %vm1076_vm0  ;;  %vm1082_vm4 = vcmp.eq.s32.totalorder %v4423_v31, %v5350_v14  ;;  %vm1080_vm0 = vcmp.eq.s32.totalorder %v4423_v31, %v5357_v50  ;;  %v529_v15 = vand.u32 63, %v293_v32  ;;  %v296_v14 = vadd.s32 248, %v4413_v21 }
 0x103   : > { %v522_v16 = vand.u32 63, %v292_v13  ;;  %vm5451_vm10 = vmpackc.low %vm1082_vm4, %vm1080_vm0  ;;  %vm1086_vm4 = vcmp.eq.s32.totalorder %v4423_v31, %v5395_v6  ;;  %vm1084_vm0 = vcmp.eq.s32.totalorder %v4423_v31, %v5398_v55  ;;  %v297_v6 = vadd.s32 256, %v4413_v21 }
 0x104   : > { %3676 = vmatmul.mubr.msk.bf16.gmra.mxu0 %vm5383_vm8, %v4196_v9  ;;  %v550_v52 = vand.u32 63, %v296_v14 }
 0x105   : > { %3677 = vmatprep.mubr.msk.bf16.mxu0 %vm6498_vm1, %v5387_v8  ;;  %v804_v51 = vadd.s32 128, %v522_v16  ;;  %v557_v54 = vand.u32 63, %v297_v6 }
 0x106   : > { %v808_v17 = vadd.s32 128, %v550_v52  ;;  %v4131_v52 = vld [vmem:[%s6386_s2 + $0x80] sm:$0xff]  }
 0x107   : > { %vm1219_vm12 = vcmp.eq.s32.totalorder %v4428_v38, %v804_v51 }
 0x108   : > { %3760 = vmatmul.mubr.msk.bf16.gmra.mxu1 %vm5215_vm15, %v4196_v9  ;;  %vm1341_vm15 = vmor %vm1085_vm6, %vm1213_vm9  ;;  %vm1217_vm9 = vcmp.eq.s32.totalorder %v4428_v38, %v803_v26  ;;  %vm1089_vm6 = vcmp.eq.s32.totalorder %v4428_v38, %v924_v40  ;;  %v4128_v26 = vld [vmem:[%s6386_s2 + $0x98] sm:$0xff]  }
 0x109   : > { %3761 = vmatprep.mubr.msk.bf16.mxu1 %vm6502_vm14, %v5219_v41  ;;  %v5432_v41 = vpop.permute.xlu1 %926  ;;  %v1469_v43 = vsel %vm1341_vm15, 1.0, %v4195_v53  ;;  %vm6505_vm14 = vmmov %vm6498_vm1  ;;  %3918 = vmatprep.subr.bf16.mxu1 %v4128_v26 }
 0x10a   : > { %vm1091_vm2 = vcmp.eq.s32.totalorder %v4428_v38, %v5432_v41  ;;  %v5455_v42 = vpack.c.bf16 %v1471_v36, %v1469_v43  ;;  %v578_v36 = vand.u32 63, %v300_v4  ;;  %v571_v43 = vand.u32 63, %v299_v25  ;;  %3919 = vmatpush3.bf16.msra.mxu1 %v4128_v26 }
 0x10b   : > { %vm1347_vm15 = vmor %vm1091_vm2, %vm1219_vm12  ;;  %vm1223_vm12 = vcmp.eq.s32.totalorder %v4428_v38, %v806_v58  ;;  %v302_v58 = vadd.s32 296, %v4413_v21 }
 0x10c   : > { %3679 = vmatmul.mubr.msk.bf16.gmra.mxu0 %vm5420_vm13, %v4196_v9  ;;  %v1475_v50 = vsel %vm1347_vm15, 1.0, %v4195_v53  ;;  %vm5485_vm15 = vmpackc.low %vm1086_vm4, %vm1084_vm0  ;;  %vm1090_vm4 = vcmp.eq.s32.totalorder %v4423_v31, %v5432_v41  ;;  %vm1088_vm0 = vcmp.eq.s32.totalorder %v4423_v31, %v924_v40  ;;  %v5533_v41 = vpop.permute.xlu0 %941  ;;  %v812_v12 = vadd.s32 128, %v578_v36 }
 0x10d   : > { %3680 = vmatprep.mubr.msk.bf16.mxu0 %vm6498_vm1, %v5424_v18  ;;  %v5463_v47 = vpop.permute.xlu1 %932  ;;  %v811_v14 = vadd.s32 128, %v571_v43  ;;  %v308_v43 = vadd.s32 344, %v4413_v21 }
 0x10e   : > { %vm1095_vm2 = vcmp.eq.s32.totalorder %v4428_v38, %v5463_v47 }
 0x110   : > { %3763 = vmatmul.mubr.msk.bf16.gmra.mxu1 %vm5256_vm11, %v4196_v9  ;;  %vm1345_vm11 = vmor %vm1089_vm6, %vm1217_vm9  ;;  %vm1093_vm6 = vcmp.eq.s32.totalorder %v4428_v38, %v5466_v49 }
 0x111   : > { %3764 = vmatprep.mubr.msk.bf16.mxu1 %vm6505_vm14, %v5260_v59  ;;  %v805_v59 = vadd.s32 128, %v529_v15  ;;  %v1473_v28 = vsel %vm1345_vm11, 1.0, %v4195_v53  ;;  %vm6508_vm14 = vmmov %vm6498_vm1  ;;  %v5497_v13 = vpop.permute.xlu1 %938 }
 0x112   : > { %v5489_v39 = vpack.c.bf16 %v1475_v50, %v1473_v28  ;;  %vm1351_vm11 = vmor %vm1095_vm2, %vm1223_vm12  ;;  %vm1227_vm12 = vcmp.eq.s32.totalorder %v4428_v38, %v808_v17  ;;  %vm1099_vm2 = vcmp.eq.s32.totalorder %v4428_v38, %v5497_v13  ;;  %v592_v50 = vand.u32 63, %v302_v58 }
 0x113   : > { %vm1221_vm9 = vcmp.eq.s32.totalorder %v4428_v38, %v805_v59  ;;  %v1479_v11 = vsel %vm1351_vm11, 1.0, %v4195_v53  ;;  %vm5518_vm11 = vmpackc.low %vm1090_vm4, %vm1088_vm0  ;;  %vm1094_vm4 = vcmp.eq.s32.totalorder %v4423_v31, %v5463_v47  ;;  %vm1092_vm0 = vcmp.eq.s32.totalorder %v4423_v31, %v5466_v49  ;;  %v948_v59 = vpop.permute.xlu0 %947 }
 0x114   : > { %3682 = vmatmul.mubr.msk.bf16.gmra.mxu0 %vm5451_vm10, %v4196_v9  ;;  %v301_v47 = vadd.s32 288, %v4413_v21  ;;  %v814_v5 = vadd.s32 128, %v592_v50  ;;  %v304_v17 = vadd.s32 312, %v4413_v21  ;;  %v307_v58 = vadd.s32 336, %v4413_v21 }
 0x115   : > { %3683 = vmatprep.mubr.msk.bf16.mxu0 %vm6498_vm1, %v5455_v42  ;;  %v5530_v51 = vpop.permute.xlu1 %944 }
 0x116   : > { %v585_v28 = vand.u32 63, %v301_v47 }
 0x118   : > { %3766 = vmatmul.mubr.msk.bf16.gmra.mxu1 %vm5294_vm7, %v4196_v9  ;;  %vm1349_vm7 = vmor %vm1093_vm6, %vm1221_vm9  ;;  %vm1097_vm6 = vcmp.eq.s32.totalorder %v4428_v38, %v5500_v62 }
 0x119   : > { %3767 = vmatprep.mubr.msk.bf16.mxu1 %vm6508_vm14, %v5298_v10  ;;  %v807_v10 = vadd.s32 128, %v543_v35  ;;  %v1477_v55 = vsel %vm1349_vm7, 1.0, %v4195_v53  ;;  %vm6511_vm14 = vmmov %vm6498_vm1 }
 0x11a   : > { %v5522_v16 = vpack.c.bf16 %v1479_v11, %v1477_v55  ;;  %vm1355_vm7 = vmor %vm1099_vm2, %vm1227_vm12  ;;  %vm1231_vm12 = vcmp.eq.s32.totalorder %v4428_v38, %v810_v44  ;;  %vm1103_vm2 = vcmp.eq.s32.totalorder %v4428_v38, %v5530_v51  ;;  %v606_v11 = vand.u32 63, %v304_v17 }
 0x11b   : > { %vm1225_vm9 = vcmp.eq.s32.totalorder %v4428_v38, %v807_v10  ;;  %v1483_v32 = vsel %vm1355_vm7, 1.0, %v4195_v53  ;;  %vm5555_vm7 = vmpackc.low %vm1094_vm4, %vm1092_vm0  ;;  %vm1098_vm4 = vcmp.eq.s32.totalorder %v4423_v31, %v5497_v13  ;;  %vm1096_vm0 = vcmp.eq.s32.totalorder %v4423_v31, %v5500_v62  ;;  %v5601_v10 = vpop.permute.xlu0 %953 }
 0x11c   : > { %3685 = vmatmul.mubr.msk.bf16.gmra.mxu0 %vm5485_vm15, %v4196_v9  ;;  %v303_v13 = vadd.s32 304, %v4413_v21  ;;  %v816_v46 = vadd.s32 128, %v606_v11  ;;  %v306_v44 = vadd.s32 328, %v4413_v21 }
 0x11d   : > { %3686 = vmatprep.mubr.msk.bf16.mxu0 %vm6498_vm1, %v5489_v39 }
 0x11e   : > { %v599_v55 = vand.u32 63, %v303_v13  ;;  %v620_v26 = vand.u32 63, %v306_v44 }
 0x120   : > { %3769 = vmatmul.mubr.msk.bf16.gmra.mxu1 %vm5338_vm5, %v4196_v9  ;;  %vm1353_vm5 = vmor %vm1097_vm6, %vm1225_vm9  ;;  %vm1101_vm6 = vcmp.eq.s32.totalorder %v4428_v38, %v5533_v41  ;;  %v818_v3 = vadd.s32 128, %v620_v26 }
 0x121   : > { %3770 = vmatprep.mubr.msk.bf16.mxu1 %vm6511_vm14, %v5342_v24  ;;  %v809_v24 = vadd.s32 128, %v557_v54  ;;  %v1481_v40 = vsel %vm1353_vm5, 1.0, %v4195_v53  ;;  %vm6514_vm14 = vmmov %vm6498_vm1 }
 0x122   : > { %v5559_v15 = vpack.c.bf16 %v1483_v32, %v1481_v40  ;;  %vm1359_vm5 = vmor %vm1103_vm2, %vm1231_vm12  ;;  %vm1235_vm12 = vcmp.eq.s32.totalorder %v4428_v38, %v812_v12 }
 0x123   : > { %vm1229_vm9 = vcmp.eq.s32.totalorder %v4428_v38, %v809_v24  ;;  %v1487_v23 = vsel %vm1359_vm5, 1.0, %v4195_v53  ;;  %vm5586_vm5 = vmpackc.low %vm1098_vm4, %vm1096_vm0  ;;  %vm1102_vm4 = vcmp.eq.s32.totalorder %v4423_v31, %v5530_v51  ;;  %vm1100_vm0 = vcmp.eq.s32.totalorder %v4423_v31, %v5533_v41  ;;  %v5635_v24 = vpop.permute.xlu0 %959 }
 0x124   : > { %3688 = vmatmul.mubr.msk.bf16.gmra.mxu0 %vm5518_vm11, %v4196_v9  ;;  %v305_v51 = vadd.s32 320, %v4413_v21 }
 0x125   : > { %3689 = vmatprep.mubr.msk.bf16.mxu0 %vm6498_vm1, %v5522_v16 }
 0x126   : > { %v613_v32 = vand.u32 63, %v305_v51  ;;  %v4130_v51 = vld [vmem:[%s6386_s2 + $0x88] sm:$0xff]  }
 0x128   : > { %3772 = vmatmul.mubr.msk.bf16.gmra.mxu1 %vm5383_vm8, %v4196_v9  ;;  %vm1357_vm8 = vmor %vm1101_vm6, %vm1229_vm9  ;;  %vm1233_vm9 = vcmp.eq.s32.totalorder %v4428_v38, %v811_v14  ;;  %vm1105_vm6 = vcmp.eq.s32.totalorder %v4428_v38, %v948_v59  ;;  %v4129_v14 = vld [vmem:[%s6386_s2 + $0x90] sm:$0xff]  }
 0x129   : > { %3773 = vmatprep.mubr.msk.bf16.mxu1 %vm6514_vm14, %v5387_v8  ;;  %v5567_v8 = vpop.permute.xlu1 %950  ;;  %v1485_v49 = vsel %vm1357_vm8, 1.0, %v4195_v53  ;;  %vm6517_vm14 = vmmov %vm6498_vm1  ;;  %3920 = vmatprep.subr.bf16.mxu1 %v4129_v14 }
 0x12a   : > { %vm1107_vm2 = vcmp.eq.s32.totalorder %v4428_v38, %v5567_v8  ;;  %v5590_v35 = vpack.c.bf16 %v1487_v23, %v1485_v49  ;;  %v634_v23 = vand.u32 63, %v308_v43  ;;  %v627_v49 = vand.u32 63, %v307_v58  ;;  %3921 = vmatpush3.bf16.msra.mxu1 %v4129_v14 }
 0x12b   : > { %vm1363_vm8 = vmor %vm1107_vm2, %vm1235_vm12  ;;  %vm1239_vm12 = vcmp.eq.s32.totalorder %v4428_v38, %v814_v5  ;;  %v310_v5 = vadd.s32 360, %v4413_v21  ;;  %3922 = vmatprep.subr.bf16.mxu1 %v4130_v51 }
 0x12c   : > { %3691 = vmatmul.mubr.msk.bf16.gmra.mxu0 %vm5555_vm7, %v4196_v9  ;;  %v1491_v6 = vsel %vm1363_vm8, 1.0, %v4195_v53  ;;  %vm5620_vm8 = vmpackc.low %vm1102_vm4, %vm1100_vm0  ;;  %vm1106_vm4 = vcmp.eq.s32.totalorder %v4423_v31, %v5567_v8  ;;  %vm1104_vm0 = vcmp.eq.s32.totalorder %v4423_v31, %v948_v59  ;;  %v5668_v8 = vpop.permute.xlu0 %965  ;;  %v820_v48 = vadd.s32 128, %v634_v23 }
 0x12d   : > { %3692 = vmatprep.mubr.msk.bf16.mxu0 %vm6498_vm1, %v5559_v15  ;;  %v5598_v1 = vpop.permute.xlu1 %956  ;;  %v819_v17 = vadd.s32 128, %v627_v49 }
 0x12e   : > { %vm1111_vm2 = vcmp.eq.s32.totalorder %v4428_v38, %v5598_v1  ;;  %3923 = vmatpush3.bf16.msra.mxu1 %v4130_v51 }
 0x12f   : > { %3924 = vmatprep.subr.bf16.mxu1 %v4131_v52 }
 0x130   : > { %3775 = vmatmul.mubr.msk.bf16.gmra.mxu1 %vm5420_vm13, %v4196_v9  ;;  %vm1361_vm13 = vmor %vm1105_vm6, %vm1233_vm9  ;;  %vm1109_vm6 = vcmp.eq.s32.totalorder %v4428_v38, %v5601_v10 }
 0x131   : > { %3776 = vmatprep.mubr.msk.bf16.mxu1 %vm6517_vm14, %v5424_v18  ;;  %v813_v18 = vadd.s32 128, %v585_v28  ;;  %v1489_v62 = vsel %vm1361_vm13, 1.0, %v4195_v53  ;;  %vm6520_vm14 = vmmov %vm6498_vm1  ;;  %v5632_v4 = vpop.permute.xlu1 %962 }
 0x132   : > { %v5624_v54 = vpack.c.bf16 %v1491_v6, %v1489_v62  ;;  %vm1367_vm13 = vmor %vm1111_vm2, %vm1239_vm12  ;;  %vm1243_vm12 = vcmp.eq.s32.totalorder %v4428_v38, %v816_v46  ;;  %vm1115_vm2 = vcmp.eq.s32.totalorder %v4428_v38, %v5632_v4  ;;  %v648_v6 = vand.u32 63, %v310_v5  ;;  %3925 = vmatpush3.bf16.msra.mxu1 %v4131_v52 }
 0x133   : > { %vm1237_vm9 = vcmp.eq.s32.totalorder %v4428_v38, %v813_v18  ;;  %v1495_v25 = vsel %vm1367_vm13, 1.0, %v4195_v53  ;;  %vm5653_vm13 = vmpackc.low %vm1106_vm4, %vm1104_vm0  ;;  %vm1110_vm4 = vcmp.eq.s32.totalorder %v4423_v31, %v5598_v1  ;;  %vm1108_vm0 = vcmp.eq.s32.totalorder %v4423_v31, %v5601_v10  ;;  %v5705_v18 = vpop.permute.xlu0 %971 }
 0x134   : > { %3694 = vmatmul.mubr.msk.bf16.gmra.mxu0 %vm5586_vm5, %v4196_v9  ;;  %v309_v1 = vadd.s32 352, %v4413_v21  ;;  %v822_v61 = vadd.s32 128, %v648_v6  ;;  %v312_v46 = vadd.s32 376, %v4413_v21 }
 0x135   : > { %3695 = vmatprep.mubr.msk.bf16.mxu0 %vm6498_vm1, %v5590_v35  ;;  %v5665_v12 = vpop.permute.xlu1 %968 }
 0x136   : > { %v641_v62 = vand.u32 63, %v309_v1 }
 0x138   : > { %3778 = vmatmul.mubr.msk.bf16.gmra.mxu1 %vm5451_vm10, %v4196_v9  ;;  %vm1365_vm10 = vmor %vm1109_vm6, %vm1237_vm9  ;;  %vm1113_vm6 = vcmp.eq.s32.totalorder %v4428_v38, %v5635_v24 }
 0x139   : > { %3779 = vmatprep.mubr.msk.bf16.mxu1 %vm6520_vm14, %v5455_v42  ;;  %v815_v42 = vadd.s32 128, %v599_v55  ;;  %v1493_v41 = vsel %vm1365_vm10, 1.0, %v4195_v53  ;;  %vm6523_vm14 = vmmov %vm6498_vm1 }
 0x13a   : > { %v5657_v36 = vpack.c.bf16 %v1495_v25, %v1493_v41  ;;  %vm1371_vm10 = vmor %vm1115_vm2, %vm1243_vm12  ;;  %vm1247_vm12 = vcmp.eq.s32.totalorder %v4428_v38, %v818_v3  ;;  %vm1119_vm2 = vcmp.eq.s32.totalorder %v4428_v38, %v5665_v12 }
 0x13b   : > { %vm1241_vm9 = vcmp.eq.s32.totalorder %v4428_v38, %v815_v42  ;;  %v1499_v47 = vsel %vm1371_vm10, 1.0, %v4195_v53  ;;  %vm5690_vm10 = vmpackc.low %vm1110_vm4, %vm1108_vm0  ;;  %vm1114_vm4 = vcmp.eq.s32.totalorder %v4423_v31, %v5632_v4  ;;  %vm1112_vm0 = vcmp.eq.s32.totalorder %v4423_v31, %v5635_v24  ;;  %v978_v42 = vpop.permute.xlu0 %977 }
 0x13c   : > { %3697 = vmatmul.mubr.msk.bf16.gmra.mxu0 %vm5620_vm8, %v4196_v9  ;;  %v311_v4 = vadd.s32 368, %v4413_v21  ;;  %v662_v21 = vand.u32 63, %v312_v46 }
 0x13d   : > { %3698 = vmatprep.mubr.msk.bf16.mxu0 %vm6498_vm1, %v5624_v54 }
 0x13e   : > { %v655_v41 = vand.u32 63, %v311_v4  ;;  %v824_v3 = vadd.s32 128, %v662_v21 }
 0x140   : > { %3781 = vmatmul.mubr.msk.bf16.gmra.mxu1 %vm5485_vm15, %v4196_v9  ;;  %vm1369_vm15 = vmor %vm1113_vm6, %vm1241_vm9  ;;  %vm1117_vm6 = vcmp.eq.s32.totalorder %v4428_v38, %v5668_v8  ;;  %v823_v43 = vadd.s32 128, %v655_v41 }
 0x141   : > { %3782 = vmatprep.mubr.msk.bf16.mxu1 %vm6523_vm14, %v5489_v39  ;;  %v817_v39 = vadd.s32 128, %v613_v32  ;;  %v1497_v59 = vsel %vm1369_vm15, 1.0, %v4195_v53  ;;  %vm6526_vm14 = vmmov %vm6498_vm1 }
 0x142   : > { %v5694_v28 = vpack.c.bf16 %v1499_v47, %v1497_v59  ;;  %vm1375_vm15 = vmor %vm1119_vm2, %vm1247_vm12  ;;  %vm1251_vm12 = vcmp.eq.s32.totalorder %v4428_v38, %v820_v48 }
 0x143   : > { %vm1245_vm9 = vcmp.eq.s32.totalorder %v4428_v38, %v817_v39  ;;  %v1503_v13 = vsel %vm1375_vm15, 1.0, %v4195_v53  ;;  %vm5724_vm15 = vmpackc.low %vm1114_vm4, %vm1112_vm0  ;;  %vm1118_vm4 = vcmp.eq.s32.totalorder %v4423_v31, %v5665_v12  ;;  %vm1116_vm0 = vcmp.eq.s32.totalorder %v4423_v31, %v5668_v8  ;;  %v984_v12 = vpop.permute.xlu0 %983 }
 0x144   : > { %3700 = vmatmul.mubr.msk.bf16.gmra.mxu0 %vm5653_vm13, %v4196_v9 }
 0x145   : > { %3701 = vmatprep.mubr.msk.bf16.mxu0 %vm6498_vm1, %v5657_v36 }
 0x148   : > { %3784 = vmatmul.mubr.msk.bf16.gmra.mxu1 %vm5518_vm11, %v4196_v9  ;;  %vm1373_vm11 = vmor %vm1117_vm6, %vm1245_vm9  ;;  %vm1249_vm9 = vcmp.eq.s32.totalorder %v4428_v38, %v819_v17  ;;  %vm1121_vm6 = vcmp.eq.s32.totalorder %v4428_v38, %v5705_v18 }
 0x149   : > { %3785 = vmatprep.mubr.msk.bf16.mxu1 %vm6526_vm14, %v5522_v16  ;;  %v5702_v16 = vpop.permute.xlu1 %974  ;;  %v1501_v10 = vsel %vm1373_vm11, 1.0, %v4195_v53  ;;  %vm6529_vm14 = vmmov %vm6498_vm1 }
 0x14a   : > { %vm1123_vm2 = vcmp.eq.s32.totalorder %v4428_v38, %v5702_v16  ;;  %v5728_v55 = vpack.c.bf16 %v1503_v13, %v1501_v10 }
 0x14b   : > { %vm1379_vm11 = vmor %vm1123_vm2, %vm1251_vm12  ;;  %vm1255_vm12 = vcmp.eq.s32.totalorder %v4428_v38, %v822_v61 }
 0x14c   : > { %3703 = vmatmul.mubr.msk.bf16.gmra.mxu0 %vm5690_vm10, %v4196_v9  ;;  %v1507_v24 = vsel %vm1379_vm11, 1.0, %v4195_v53  ;;  %vm5755_vm11 = vmpackc.low %vm1118_vm4, %vm1116_vm0  ;;  %vm1122_vm4 = vcmp.eq.s32.totalorder %v4423_v31, %v5702_v16  ;;  %vm1120_vm0 = vcmp.eq.s32.totalorder %v4423_v31, %v5705_v18 }
 0x14d   : > { %3704 = vmatprep.mubr.msk.bf16.mxu0 %vm6498_vm1, %v5694_v28  ;;  %v981_v44 = vpop.permute.xlu1 %980 }
 0x14e   : > { %vm1127_vm2 = vcmp.eq.s32.totalorder %v4428_v38, %v981_v44 }
 0x150   : > { %3787 = vmatmul.mubr.msk.bf16.gmra.mxu1 %vm5555_vm7, %v4196_v9  ;;  %vm1377_vm7 = vmor %vm1121_vm6, %vm1249_vm9  ;;  %vm1125_vm6 = vcmp.eq.s32.totalorder %v4428_v38, %v978_v42 }
 0x151   : > { %3788 = vmatprep.mubr.msk.bf16.mxu1 %vm6529_vm14, %v5559_v15  ;;  %v821_v15 = vadd.s32 128, %v641_v62  ;;  %v1505_v25 = vsel %vm1377_vm7, 1.0, %v4195_v53  ;;  %vm6532_vm14 = vmmov %vm6498_vm1 }
 0x152   : > { %v5759_v32 = vpack.c.bf16 %v1507_v24, %v1505_v25 }
 0x153   : > { %vm1253_vm9 = vcmp.eq.s32.totalorder %v4428_v38, %v821_v15 }
 0x154   : > { %3706 = vmatmul.mubr.msk.bf16.gmra.mxu0 %vm5724_vm15, %v4196_v9  ;;  %vm1381_vm7 = vmor %vm1125_vm6, %vm1253_vm9  ;;  %vm1257_vm9 = vcmp.eq.s32.totalorder %v4428_v38, %v823_v43  ;;  %vm1129_vm6 = vcmp.eq.s32.totalorder %v4428_v38, %v984_v12 }
 0x155   : > { %3707 = vmatprep.mubr.msk.bf16.mxu0 %vm6498_vm1, %v5728_v55  ;;  %v1509_v58 = vsel %vm1381_vm7, 1.0, %v4195_v53 }
 0x158   : > { %3790 = vmatmul.mubr.msk.bf16.gmra.mxu1 %vm5586_vm5, %v4196_v9  ;;  %vm1383_vm5 = vmor %vm1127_vm2, %vm1255_vm12  ;;  %vm1259_vm12 = vcmp.eq.s32.totalorder %v4428_v38, %v824_v3 }
 0x159   : > { %3791 = vmatprep.mubr.msk.bf16.mxu1 %vm6532_vm14, %v5590_v35  ;;  %v987_v35 = vpop.permute.xlu1 %986  ;;  %v1511_v39 = vsel %vm1383_vm5, 1.0, %v4195_v53  ;;  %vm6535_vm14 = vmmov %vm6498_vm1 }
 0x15a   : > { %vm1131_vm2 = vcmp.eq.s32.totalorder %v4428_v38, %v987_v35  ;;  %vm5786_vm5 = vmpackc.low %vm1122_vm4, %vm1120_vm0  ;;  %v5790_v47 = vpack.c.bf16 %v1511_v39, %v1509_v58  ;;  %vm1126_vm4 = vcmp.eq.s32.totalorder %v4423_v31, %v981_v44  ;;  %vm1124_vm0 = vcmp.eq.s32.totalorder %v4423_v31, %v978_v42 }
 0x15b   : > { %vm1387_vm7 = vmor %vm1131_vm2, %vm1259_vm12 }
 0x15c   : > { %3709 = vmatmul.mubr.msk.bf16.gmra.mxu0 %vm5755_vm11, %v4196_v9  ;;  %v1515_v23 = vsel %vm1387_vm7, 1.0, %v4195_v53  ;;  %vm6538_vm12 = vmmov %vm6498_vm1 }
 0x15d   : > { %3710 = vmatprep.mubr.msk.bf16.mxu0 %vm6498_vm1, %v5759_v32  ;;  %vm5818_vm2 = vmpackc.low %vm1126_vm4, %vm1124_vm0  ;;  %vm6552_vm0 = vnez %v6412_v56 }
 0x15e   : > { %vm6551_vm4 = vmmov %vm6498_vm1 }
 0x15f   : > { %v5777_v8 = vpop.f32.mrf.mxu1 }
 0x160   : > { %3793 = vmatmul.mubr.msk.bf16.gmra.mxu1 %vm5620_vm8, %v4196_v9  ;;  %vm1385_vm8 = vmor %vm1129_vm6, %vm1257_vm9  ;;  %vm1128_vm6 = vcmp.eq.s32.totalorder %v4423_v31, %v984_v12 }
 0x161   : > { %3794 = vmatprep.mubr.msk.bf16.mxu1 %vm6535_vm14, %v5624_v54  ;;  %v5792_v59 = vpop.f32.mrf.mxu1  ;;  %v1513_v49 = vsel %vm1385_vm8, 1.0, %v4195_v53  ;;  %vm6541_vm9 = vmmov %vm6498_vm1 }
 0x162   : > { %v5822_v17 = vpack.c.bf16 %v1515_v23, %v1513_v49  ;;  %vm6542_vm14 = vmmov %vm6498_vm1 }
 0x163   : > { %v5797_v45 = vpop.f32.mrf.mxu1  ;;  %vm6549_vm8 = vmmov %vm6498_vm1 }
 0x164   : > { %3712 = vmatmul.mubr.msk.bf16.gmra.mxu0 %vm5786_vm5, %v4196_v9 }
 0x165   : > { %3713 = vmatprep.mubr.msk.bf16.mxu0 %vm6498_vm1, %v5790_v47  ;;  %v5804_v54 = vpop.f32.mrf.mxu1 }
 0x166   : > { %v2664_v48 = vpack.c.bf16 %v5804_v54, %v5792_v59 }
 0x167   : > { %v5811_v5 = vpop.f32.mrf.mxu1 }
 0x168   : > { %3796 = vmatmul.mubr.msk.bf16.gmra.mxu1 %vm5653_vm13, %v4196_v9  ;;  %vm1130_vm13 = vcmp.eq.s32.totalorder %v4423_v31, %v987_v35 }
 0x169   : > { %3797 = vmatprep.mubr.msk.bf16.mxu1 %vm6538_vm12, %v5657_v36  ;;  %v5824_v1 = vpop.f32.mrf.mxu1  ;;  %vm5848_vm7 = vmpackc.low %vm1130_vm13, %vm1128_vm6  ;;  %vm6556_vm13 = vnez %v6430_v19 }
 0x16a   : > { %vm6553_vm12 = vmmov %vm6498_vm1 }
 0x16b   : > { %v5829_v53 = vpop.f32.mrf.mxu1  ;;  %vm6557_vm6 = vmmov %vm6498_vm1 }
 0x16c   : > { %3715 = vmatmul.mubr.msk.bf16.gmra.mxu0 %vm5818_vm2, %v4196_v9 }
 0x16d   : > { %3716 = vmatprep.mubr.msk.bf16.mxu0 %vm6541_vm9, %v5822_v17  ;;  %v5835_v36 = vpop.f32.mrf.mxu1  ;;  %vm6555_vm9 = vmmov %vm6498_vm1 }
 0x16f   : > { %v5841_v13 = vpop.f32.mrf.mxu1 }
 0x170   : > { %3799 = vmatmul.mubr.msk.bf16.gmra.mxu1 %vm5690_vm10, %v4196_v9  ;;  %vm6545_vm10 = vmmov %vm6498_vm1 }
 0x171   : > { %3800 = vmatprep.mubr.msk.bf16.mxu1 %vm6542_vm14, %v5694_v28  ;;  %v5852_v6 = vpop.f32.mrf.mxu1  ;;  %vm6558_vm14 = vnez %v6447_v57 }
 0x173   : > { %v5857_v31 = vpop.f32.mrf.mxu1 }
 0x174   : > { %3718 = vmatmul.mubr.msk.bf16.gmra.mxu0 %vm5848_vm7, %v4196_v9 }
 0x175   : > { %v5861_v50 = vpop.f32.mrf.mxu1 }
 0x177   : > { %v5865_v61 = vpop.f32.mrf.mxu1 }
 0x178   : > { %3802 = vmatmul.mubr.msk.bf16.gmra.mxu1 %vm5724_vm15, %v4196_v9  ;;  %vm6546_vm15 = vmmov %vm6498_vm1 }
 0x179   : > { %3803 = vmatprep.mubr.msk.bf16.mxu1 %vm6545_vm10, %v5728_v55  ;;  %v5872_v46 = vpop.f32.mrf.mxu1  ;;  %vm6560_vm10 = vnez %v6468_v37 }
 0x17b   : > { %v5874_v15 = vpop.f32.mrf.mxu1 }
 0x17c   : > { %v1983_v44 = vpop.f32.mrf.mxu0 }
 0x17d   : > { %v5878_v51 = vpop.f32.mrf.mxu1 }
 0x17e   : > { %v1985_v42 = vpop.f32.mrf.mxu0 }
 0x180   : > { %v1987_v25 = vpop.f32.mrf.mxu0  ;;  %v5882_v11 = vpop.f32.mrf.mxu1  ;;  %3805 = vmatmul.mubr.msk.bf16.gmra.mxu1 %vm5755_vm11, %v4196_v9  ;;  %vm6547_vm11 = vmmov %vm6498_vm1 }
 0x181   : > { %3806 = vmatprep.mubr.msk.bf16.mxu1 %vm6546_vm15, %v5759_v32  ;;  %v2591_v52 = vpack.c.bf16 %v1987_v25, %v1983_v44  ;;  %vm6561_vm15 = vmmov %vm6498_vm1 }
 0x182   : > { %v1989_v55 = vpop.f32.mrf.mxu0  ;;  %v5889_v41 = vpop.f32.mrf.mxu1 }
 0x183   : > { %v2592_v21 = vpack.c.bf16 %v1989_v55, %v1985_v42 }
 0x184   : > { %v1993_v3 = vpop.f32.mrf.mxu0  ;;  %v5891_v35 = vpop.f32.mrf.mxu1 }
 0x185   : > { %2918 = vmatprep.mubr.bf16.mxu0 %v2592_v21 }
 0x186   : > { %v1995_v12 = vpop.f32.mrf.mxu0  ;;  %2919 = vmatmul.mubr.bf16.vlgmr.msra.gmra.mxu0 %v2591_v52  ;;  %v5895_v39 = vpop.f32.mrf.mxu1 }
 0x188   : > { %v1997_v32 = vpop.f32.mrf.mxu0  ;;  %v5899_v58 = vpop.f32.mrf.mxu1  ;;  %3808 = vmatmul.mubr.msk.bf16.gmra.mxu1 %vm5786_vm5, %v4196_v9  ;;  %vm6548_vm5 = vmmov %vm6498_vm1 }
 0x189   : > { %3809 = vmatprep.mubr.msk.bf16.mxu1 %vm6547_vm11, %v5790_v47  ;;  %v2594_v42 = vpack.c.bf16 %v1997_v32, %v1993_v3  ;;  %vm6562_vm11 = vnez %v6476_v27 }
 0x18a   : > { %v1999_v23 = vpop.f32.mrf.mxu0  ;;  %v5906_v44 = vpop.f32.mrf.mxu1 }
 0x18b   : > { %v2595_v49 = vpack.c.bf16 %v1999_v23, %v1995_v12 }
 0x18c   : > { %v2003_v25 = vpop.f32.mrf.mxu0  ;;  %v5908_v55 = vpop.f32.mrf.mxu1 }
 0x18d   : > { %2926 = vmatprep.mubr.bf16.mxu0 %v2595_v49 }
 0x18e   : > { %v2005_v52 = vpop.f32.mrf.mxu0  ;;  %2927 = vmatmul.mubr.bf16.gmra.mxu0 %v2594_v42  ;;  %v5912_v43 = vpop.f32.mrf.mxu1 }
 0x190   : > { %v2007_v47 = vpop.f32.mrf.mxu0  ;;  %v5916_v26 = vpop.f32.mrf.mxu1  ;;  %3811 = vmatmul.mubr.msk.bf16.gmra.mxu1 %vm5818_vm2, %v4196_v9  ;;  %vm6554_vm2 = vnez %v6418_v22 }
 0x191   : > { %3812 = vmatprep.mubr.msk.bf16.mxu1 %vm6548_vm5, %v5822_v17  ;;  %v2597_v23 = vpack.c.bf16 %v2007_v47, %v2003_v25 }
 0x192   : > { %v2009_v3 = vpop.f32.mrf.mxu0  ;;  %v5923_v32 = vpop.f32.mrf.mxu1 }
 0x193   : > { %v2598_v12 = vpack.c.bf16 %v2009_v3, %v2005_v52 }
 0x194   : > { %v2013_v49 = vpop.f32.mrf.mxu0  ;;  %v5925_v42 = vpop.f32.mrf.mxu1 }
 0x195   : > { %2934 = vmatprep.mubr.bf16.mxu0 %v2598_v12 }
 0x196   : > { %v2015_v14 = vpop.f32.mrf.mxu0  ;;  %2935 = vmatmul.mubr.bf16.gmra.mxu0 %v2597_v23  ;;  %v5929_v4 = vpop.f32.mrf.mxu1 }
 0x198   : > { %v2017_v17 = vpop.f32.mrf.mxu0  ;;  %v5933_v24 = vpop.f32.mrf.mxu1  ;;  %3814 = vmatmul.mubr.msk.bf16.gmra.mxu1 %vm5848_vm7, %v4196_v9  ;;  %vm6559_vm7 = vmmov %vm6498_vm1 }
 0x199   : > { %3815 = vmatprep.mubr.msk.bf16.mxu1 %vm6549_vm8, %v4462_v0  ;;  %v2600_v3 = vpack.c.bf16 %v2017_v17, %v2013_v49 }
 0x19a   : > { %v2019_v25 = vpop.f32.mrf.mxu0  ;;  %v5940_v47 = vpop.f32.mrf.mxu1 }
 0x19b   : > { %v2601_v52 = vpack.c.bf16 %v2019_v25, %v2015_v14 }
 0x19c   : > { %v2023_v12 = vpop.f32.mrf.mxu0  ;;  %v5942_v23 = vpop.f32.mrf.mxu1 }
 0x19d   : > { %2942 = vmatprep.mubr.bf16.mxu0 %v2601_v52 }
 0x19e   : > { %v2025_v16 = vpop.f32.mrf.mxu0  ;;  %2943 = vmatmul.mubr.bf16.gmra.mxu0 %v2600_v3  ;;  %v5946_v62 = vpop.f32.mrf.mxu1 }
 0x1a0   : > { %v2027_v0 = vpop.f32.mrf.mxu0  ;;  %v5950_v28 = vpop.f32.mrf.mxu1  ;;  %3817 = vmatmul.mubr.msk.bf16.gmra.mxu1 %vm4477_vm3, %v4196_v9  ;;  %vm6550_vm3 = vnez %v6406_v29 }
 0x1a1   : > { %3818 = vmatprep.mubr.msk.bf16.mxu1 %vm6498_vm1, %v4458_v63  ;;  %v2603_v25 = vpack.c.bf16 %v2027_v0, %v2023_v12 }
 0x1a2   : > { %v2029_v14 = vpop.f32.mrf.mxu0  ;;  %v2338_v17 = vpop.f32.mrf.mxu1 }
 0x1a3   : > { %v2604_v49 = vpack.c.bf16 %v2029_v14, %v2025_v16 }
 0x1a4   : > { %v2033_v52 = vpop.f32.mrf.mxu0  ;;  %v5957_v3 = vpop.f32.mrf.mxu1 }
 0x1a5   : > { %2950 = vmatprep.mubr.bf16.mxu0 %v2604_v49 }
 0x1a6   : > { %v2035_v21 = vpop.f32.mrf.mxu0  ;;  %2951 = vmatmul.mubr.bf16.gmra.mxu0 %v2603_v25  ;;  %v2341_v10 = vpop.f32.mrf.mxu1 }
 0x1a8   : > { %v2037_v40 = vpop.f32.mrf.mxu0  ;;  %v5959_v18 = vpop.f32.mrf.mxu1  ;;  %3820 = vmatmul.mubr.msk.bf16.gmra.mxu1 %vm6550_vm3, %v4196_v9 }
 0x1a9   : > { %3821 = vmatprep.mubr.msk.bf16.mxu1 %vm6551_vm4, %v4543_v30  ;;  %v2606_v12 = vpack.c.bf16 %v2037_v40, %v2033_v52 }
 0x1aa   : > { %v2039_v63 = vpop.f32.mrf.mxu0  ;;  %v2346_v16 = vpop.f32.mrf.mxu1 }
 0x1ab   : > { %v2607_v7 = vpack.c.bf16 %v2039_v63, %v2035_v21 }
 0x1ac   : > { %v2043_v0 = vpop.f32.mrf.mxu0  ;;  %v5966_v14 = vpop.f32.mrf.mxu1 }
 0x1ad   : > { %2958 = vmatprep.mubr.bf16.mxu0 %v2607_v7 }
 0x1ae   : > { %v2045_v49 = vpop.f32.mrf.mxu0  ;;  %2959 = vmatmul.mubr.bf16.gmra.mxu0 %v2606_v12  ;;  %v2349_v10 = vpop.f32.mrf.mxu1 }
 0x1b0   : > { %v2047_v17 = vpop.f32.mrf.mxu0  ;;  %v5968_v25 = vpop.f32.mrf.mxu1  ;;  %3823 = vmatmul.mubr.msk.bf16.gmra.mxu1 %vm6552_vm0, %v4196_v9 }
 0x1b1   : > { %3824 = vmatprep.mubr.msk.bf16.mxu1 %vm6553_vm12, %v4608_v2  ;;  %v2609_v21 = vpack.c.bf16 %v2047_v17, %v2043_v0 }
 0x1b2   : > { %v2049_v29 = vpop.f32.mrf.mxu0  ;;  %v2354_v40 = vpop.f32.mrf.mxu1 }
 0x1b3   : > { %v2610_v30 = vpack.c.bf16 %v2049_v29, %v2045_v49 }
 0x1b4   : > { %v2053_v52 = vpop.f32.mrf.mxu0  ;;  %v5975_v63 = vpop.f32.mrf.mxu1 }
 0x1b5   : > { %2966 = vmatprep.mubr.bf16.mxu0 %v2610_v30 }
 0x1b6   : > { %v2055_v7 = vpop.f32.mrf.mxu0  ;;  %2967 = vmatmul.mubr.bf16.gmra.mxu0 %v2609_v21  ;;  %v2357_v16 = vpop.f32.mrf.mxu1 }
 0x1b8   : > { %v2057_v12 = vpop.f32.mrf.mxu0  ;;  %v5977_v10 = vpop.f32.mrf.mxu1  ;;  %3826 = vmatmul.mubr.msk.bf16.gmra.mxu1 %vm6554_vm2, %v4196_v9 }
 0x1b9   : > { %3827 = vmatprep.mubr.msk.bf16.mxu1 %vm6555_vm9, %v4689_v34  ;;  %v2612_v49 = vpack.c.bf16 %v2057_v12, %v2053_v52 }
 0x1ba   : > { %v2059_v56 = vpop.f32.mrf.mxu0  ;;  %v2362_v0 = vpop.f32.mrf.mxu1 }
 0x1bb   : > { %v2613_v2 = vpack.c.bf16 %v2059_v56, %v2055_v7 }
 0x1bc   : > { %v2063_v17 = vpop.f32.mrf.mxu0  ;;  %v5984_v29 = vpop.f32.mrf.mxu1 }
 0x1bd   : > { %2974 = vmatprep.mubr.bf16.mxu0 %v2613_v2 }
 0x1be   : > { %v2065_v30 = vpop.f32.mrf.mxu0  ;;  %2975 = vmatmul.mubr.bf16.gmra.mxu0 %v2612_v49  ;;  %v2365_v40 = vpop.f32.mrf.mxu1 }
 0x1c0   : > { %v2067_v21 = vpop.f32.mrf.mxu0  ;;  %v5986_v16 = vpop.f32.mrf.mxu1  ;;  %3829 = vmatmul.mubr.msk.bf16.gmra.mxu1 %vm6556_vm13, %v4196_v9 }
 0x1c1   : > { %3830 = vmatprep.mubr.msk.bf16.mxu1 %vm6557_vm6, %v4820_v20  ;;  %v2615_v7 = vpack.c.bf16 %v2067_v21, %v2063_v17 }
 0x1c2   : > { %v2069_v22 = vpop.f32.mrf.mxu0  ;;  %v2370_v52 = vpop.f32.mrf.mxu1 }
 0x1c3   : > { %v2616_v34 = vpack.c.bf16 %v2069_v22, %v2065_v30 }
 0x1c4   : > { %v2073_v12 = vpop.f32.mrf.mxu0  ;;  %v5993_v56 = vpop.f32.mrf.mxu1 }
 0x1c5   : > { %2982 = vmatprep.mubr.bf16.mxu0 %v2616_v34 }
 0x1c6   : > { %v2075_v2 = vpop.f32.mrf.mxu0  ;;  %2983 = vmatmul.mubr.bf16.gmra.mxu0 %v2615_v7  ;;  %v2373_v0 = vpop.f32.mrf.mxu1 }
 0x1c8   : > { %v2077_v49 = vpop.f32.mrf.mxu0  ;;  %v5995_v40 = vpop.f32.mrf.mxu1  ;;  %3832 = vmatmul.mubr.msk.bf16.gmra.mxu1 %vm6558_vm14, %v4196_v9 }
 0x1c9   : > { %3833 = vmatprep.mubr.msk.bf16.mxu1 %vm6559_vm7, %v4949_v60  ;;  %v2618_v30 = vpack.c.bf16 %v2077_v49, %v2073_v12 }
 0x1ca   : > { %v2079_v19 = vpop.f32.mrf.mxu0  ;;  %v2378_v17 = vpop.f32.mrf.mxu1 }
 0x1cb   : > { %v2619_v20 = vpack.c.bf16 %v2079_v19, %v2075_v2 }
 0x1cc   : > { %v2083_v21 = vpop.f32.mrf.mxu0  ;;  %v6002_v22 = vpop.f32.mrf.mxu1 }
 0x1cd   : > { %2990 = vmatprep.mubr.bf16.mxu0 %v2619_v20 }
 0x1ce   : > { %v2085_v34 = vpop.f32.mrf.mxu0  ;;  %2991 = vmatmul.mubr.bf16.gmra.mxu0 %v2618_v30  ;;  %v2381_v52 = vpop.f32.mrf.mxu1  ;;  %v2593_v30 = vpack.c.bf16 %v5957_v3, %v5950_v28  ;;  %v2596_v28 = vpack.c.bf16 %v5966_v14, %v5959_v18  ;;  %v2602_v18 = vpack.c.bf16 %v5984_v29, %v5977_v10  ;;  %v2608_v10 = vpack.c.bf16 %v6002_v22, %v5995_v40 }
 0x1d0   : > { %v2087_v7 = vpop.f32.mrf.mxu0  ;;  %v6004_v0 = vpop.f32.mrf.mxu1  ;;  %3835 = vmatmul.mubr.msk.bf16.gmra.mxu1 %vm6560_vm10, %v4196_v9 }
 0x1d1   : > { %3836 = vmatprep.mubr.msk.bf16.mxu1 %vm6561_vm15, %v5059_v33  ;;  %v2621_v2 = vpack.c.bf16 %v2087_v7, %v2083_v21 }
 0x1d2   : > { %v2089_v57 = vpop.f32.mrf.mxu0  ;;  %v2386_v12 = vpop.f32.mrf.mxu1 }
 0x1d3   : > { %v2622_v60 = vpack.c.bf16 %v2089_v57, %v2085_v34  ;;  %v2599_v12 = vpack.c.bf16 %v5975_v63, %v5968_v25  ;;  %v2605_v25 = vpack.c.bf16 %v5993_v56, %v5986_v16 }
 0x1d4   : > { %v2093_v49 = vpop.f32.mrf.mxu0  ;;  %v2387_v19 = vpop.f32.mrf.mxu1 }
 0x1d5   : > { %2998 = vmatprep.mubr.bf16.mxu0 %v2622_v60 }
 0x1d6   : > { %v2095_v20 = vpop.f32.mrf.mxu0  ;;  %2999 = vmatmul.mubr.bf16.gmra.mxu0 %v2621_v2  ;;  %v2389_v17 = vpop.f32.mrf.mxu1 }
 0x1d8   : > { %v2097_v52 = vpop.f32.mrf.mxu0  ;;  %v6013_v38 = vpop.f32.mrf.mxu1  ;;  %3838 = vmatmul.mubr.msk.bf16.gmra.mxu1 %vm6562_vm11, %v4196_v9 }
 0x1d9   : > { %3926 = vmatprep.mubr.bf16.mxu1 %v2593_v30  ;;  %v2624_v34 = vpack.c.bf16 %v2097_v52, %v2093_v49 }
 0x1da   : > { %v2099_v33 = vpop.f32.mrf.mxu0  ;;  %v2394_v21 = vpop.f32.mrf.mxu1 }
 0x1db   : > { %v2625_v37 = vpack.c.bf16 %v2099_v33, %v2095_v20 }
 0x1dc   : > { %v2103_v7 = vpop.f32.mrf.mxu0  ;;  %v2395_v57 = vpop.f32.mrf.mxu1 }
 0x1dd   : > { %3006 = vmatprep.mubr.bf16.mxu0 %v2625_v37 }
 0x1de   : > { %v2105_v60 = vpop.f32.mrf.mxu0  ;;  %3007 = vmatmul.mubr.bf16.gmra.mxu0 %v2624_v34  ;;  %v2397_v3 = vpop.f32.mrf.mxu1 }
 0x1e0   : > { %v2107_v2 = vpop.f32.mrf.mxu0  ;;  %v2400_v27 = vpop.f32.mrf.mxu1  ;;  %3927 = vmatmul.mubr.bf16.vlgmr.msra.gmra.mxu1 %v2596_v28 }
 0x1e1   : > { %3930 = vmatprep.mubr.bf16.mxu1 %v2599_v12  ;;  %v2627_v49 = vpack.c.bf16 %v2107_v2, %v2103_v7  ;;  %v2611_v2 = vpack.c.bf16 %v2387_v19, %v6004_v0 }
 0x1e2   : > { %v2109_v9 = vpop.f32.mrf.mxu0  ;;  %v2402_v17 = vpop.f32.mrf.mxu1 }
 0x1e3   : > { %v2628_v20 = vpack.c.bf16 %v2109_v9, %v2105_v60 }
 0x1e4   : > { %v2113_v30 = vpop.f32.mrf.mxu0  ;;  %v2403_v52 = vpop.f32.mrf.mxu1 }
 0x1e5   : > { %3014 = vmatprep.mubr.bf16.mxu0 %v2628_v20  ;;  %v2617_v40 = vpack.c.bf16 %v2403_v52, %v2400_v27 }
 0x1e6   : > { %v2115_v33 = vpop.f32.mrf.mxu0  ;;  %3015 = vmatmul.mubr.bf16.gmra.mxu0 %v2627_v49  ;;  %v2405_v14 = vpop.f32.mrf.mxu1 }
 0x1e7   : > { %v2614_v14 = vpack.c.bf16 %v2395_v57, %v6013_v38 }
 0x1e8   : > { %v2117_v63 = vpop.f32.mrf.mxu0  ;;  %v2408_v37 = vpop.f32.mrf.mxu1  ;;  %3931 = vmatmul.mubr.bf16.gmra.mxu1 %v2602_v18 }
 0x1e9   : > { %3934 = vmatprep.mubr.bf16.mxu1 %v2605_v25  ;;  %v2630_v7 = vpack.c.bf16 %v2117_v63, %v2113_v30 }
 0x1ea   : > { %v2119_v21 = vpop.f32.mrf.mxu0  ;;  %v2410_v60 = vpop.f32.mrf.mxu1 }
 0x1eb   : > { %v2631_v34 = vpack.c.bf16 %v2119_v21, %v2115_v33 }
 0x1ec   : > { %v2123_v28 = vpop.f32.mrf.mxu0  ;;  %v2411_v3 = vpop.f32.mrf.mxu1 }
 0x1ed   : > { %3022 = vmatprep.mubr.bf16.mxu0 %v2631_v34 }
 0x1ee   : > { %v2125_v12 = vpop.f32.mrf.mxu0  ;;  %3023 = vmatmul.mubr.bf16.gmra.mxu0 %v2630_v7  ;;  %v2413_v29 = vpop.f32.mrf.mxu1 }
 0x1f0   : > { %v2127_v16 = vpop.f32.mrf.mxu0  ;;  %v2416_v56 = vpop.f32.mrf.mxu1  ;;  %3935 = vmatmul.mubr.bf16.gmra.mxu1 %v2608_v10 }
 0x1f1   : > { %3938 = vmatprep.mubr.bf16.mxu1 %v2611_v2  ;;  %v2633_v49 = vpack.c.bf16 %v2127_v16, %v2123_v28 }
 0x1f2   : > { %v2129_v9 = vpop.f32.mrf.mxu0  ;;  %v2418_v17 = vpop.f32.mrf.mxu1 }
 0x1f3   : > { %v2634_v20 = vpack.c.bf16 %v2129_v9, %v2125_v12  ;;  %v2620_v12 = vpack.c.bf16 %v2411_v3, %v2408_v37 }
 0x1f4   : > { %v2133_v30 = vpop.f32.mrf.mxu0  ;;  %v2419_v33 = vpop.f32.mrf.mxu1 }
 0x1f5   : > { %3030 = vmatprep.mubr.bf16.mxu0 %v2634_v20  ;;  %v2623_v29 = vpack.c.bf16 %v2419_v33, %v2416_v56 }
 0x1f6   : > { %v2135_v18 = vpop.f32.mrf.mxu0  ;;  %3031 = vmatmul.mubr.bf16.gmra.mxu0 %v2633_v49  ;;  %v2421_v25 = vpop.f32.mrf.mxu1 }
 0x1f8   : > { %v2137_v22 = vpop.f32.mrf.mxu0  ;;  %v2424_v63 = vpop.f32.mrf.mxu1  ;;  %3939 = vmatmul.mubr.bf16.gmra.mxu1 %v2614_v14 }
 0x1f9   : > { %3942 = vmatprep.mubr.bf16.mxu1 %v2617_v40  ;;  %v2636_v34 = vpack.c.bf16 %v2137_v22, %v2133_v30 }
 0x1fa   : > { %v2139_v0 = vpop.f32.mrf.mxu0  ;;  %v2426_v21 = vpop.f32.mrf.mxu1 }
 0x1fb   : > { %v2637_v19 = vpack.c.bf16 %v2139_v0, %v2135_v18 }
 0x1fc   : > { %v2143_v60 = vpop.f32.mrf.mxu0  ;;  %v2427_v7 = vpop.f32.mrf.mxu1 }
 0x1fd   : > { %3038 = vmatprep.mubr.bf16.mxu0 %v2637_v19  ;;  %v2626_v49 = vpack.c.bf16 %v2427_v7, %v2424_v63 }
 0x1fe   : > { %v2145_v28 = vpop.f32.mrf.mxu0  ;;  %3039 = vmatmul.mubr.bf16.gmra.mxu0 %v2636_v34  ;;  %v2429_v10 = vpop.f32.mrf.mxu1 }
 0x200   : > { %v2147_v2 = vpop.f32.mrf.mxu0  ;;  %v2432_v38 = vpop.f32.mrf.mxu1  ;;  %3943 = vmatmul.mubr.bf16.gmra.mxu1 %v2620_v12 }
 0x201   : > { %3946 = vmatprep.mubr.bf16.mxu1 %v2623_v29  ;;  %v2639_v16 = vpack.c.bf16 %v2147_v2, %v2143_v60 }
 0x202   : > { %v2149_v57 = vpop.f32.mrf.mxu0  ;;  %v2434_v52 = vpop.f32.mrf.mxu1 }
 0x203   : > { %v2640_v27 = vpack.c.bf16 %v2149_v57, %v2145_v28 }
 0x204   : > { %v2153_v9 = vpop.f32.mrf.mxu0  ;;  %v2435_v20 = vpop.f32.mrf.mxu1 }
 0x205   : > { %3046 = vmatprep.mubr.bf16.mxu0 %v2640_v27  ;;  %v2629_v18 = vpack.c.bf16 %v2435_v20, %v2432_v38 }
 0x206   : > { %v2155_v17 = vpop.f32.mrf.mxu0  ;;  %3047 = vmatmul.mubr.bf16.gmra.mxu0 %v2639_v16  ;;  %v2437_v30 = vpop.f32.mrf.mxu1 }
 0x208   : > { %v2157_v14 = vpop.f32.mrf.mxu0  ;;  %v2440_v37 = vpop.f32.mrf.mxu1  ;;  %3947 = vmatmul.mubr.bf16.gmra.mxu1 %v2626_v49 }
 0x209   : > { %3950 = vmatprep.mubr.bf16.mxu1 %v2629_v18  ;;  %v2642_v25 = vpack.c.bf16 %v2157_v14, %v2153_v9 }
 0x20a   : > { %v2159_v3 = vpop.f32.mrf.mxu0  ;;  %v2442_v33 = vpop.f32.mrf.mxu1 }
 0x20b   : > { %v2643_v56 = vpack.c.bf16 %v2159_v3, %v2155_v17 }
 0x20c   : > { %v2163_v40 = vpop.f32.mrf.mxu0  ;;  %v2443_v22 = vpop.f32.mrf.mxu1 }
 0x20d   : > { %3054 = vmatprep.mubr.bf16.mxu0 %v2643_v56  ;;  %v2632_v0 = vpack.c.bf16 %v2443_v22, %v2440_v37 }
 0x20e   : > { %v2165_v19 = vpop.f32.mrf.mxu0  ;;  %3055 = vmatmul.mubr.bf16.gmra.mxu0 %v2642_v25  ;;  %v2445_v21 = vpop.f32.mrf.mxu1 }
 0x210   : > { %v2167_v34 = vpop.f32.mrf.mxu0  ;;  %v2448_v60 = vpop.f32.mrf.mxu1  ;;  %3951 = vmatmul.mubr.bf16.gmra.mxu1 %v2632_v0 }
 0x211   : > { %v2645_v12 = vpack.c.bf16 %v2167_v34, %v2163_v40 }
 0x212   : > { %v2169_v63 = vpop.f32.mrf.mxu0  ;;  %v2450_v28 = vpop.f32.mrf.mxu1 }
 0x213   : > { %v2646_v7 = vpack.c.bf16 %v2169_v63, %v2165_v19 }
 0x214   : > { %v2173_v10 = vpop.f32.mrf.mxu0  ;;  %v2451_v29 = vpop.f32.mrf.mxu1 }
 0x215   : > { %3062 = vmatprep.mubr.bf16.mxu0 %v2646_v7  ;;  %v2635_v2 = vpack.c.bf16 %v2451_v29, %v2448_v60 }
 0x216   : > { %v2175_v38 = vpop.f32.mrf.mxu0  ;;  %3063 = vmatmul.mubr.bf16.gmra.mxu0 %v2645_v12  ;;  %v2453_v57 = vpop.f32.mrf.mxu1 }
 0x217   : > { %3954 = vmatprep.mubr.bf16.mxu1 %v2635_v2 }
 0x218   : > { %v2177_v27 = vpop.f32.mrf.mxu0  ;;  %v2456_v52 = vpop.f32.mrf.mxu1 }
 0x219   : > { %v2648_v17 = vpack.c.bf16 %v2177_v27, %v2173_v10 }
 0x21a   : > { %v2179_v16 = vpop.f32.mrf.mxu0  ;;  %v2458_v20 = vpop.f32.mrf.mxu1 }
 0x21b   : > { %v2649_v9 = vpack.c.bf16 %v2179_v16, %v2175_v38 }
 0x21c   : > { %v2183_v49 = vpop.f32.mrf.mxu0  ;;  %v2459_v30 = vpop.f32.mrf.mxu1 }
 0x21d   : > { %3070 = vmatprep.mubr.bf16.mxu0 %v2649_v9  ;;  %v2638_v18 = vpack.c.bf16 %v2459_v30, %v2456_v52 }
 0x21e   : > { %v2185_v14 = vpop.f32.mrf.mxu0  ;;  %3071 = vmatmul.mubr.bf16.gmra.mxu0 %v2648_v17  ;;  %v2461_v37 = vpop.f32.mrf.mxu1 }
 0x21f   : > { %3955 = vmatmul.mubr.bf16.gmra.mxu1 %v2638_v18 }
 0x220   : > { %v2187_v3 = vpop.f32.mrf.mxu0  ;;  %v2464_v56 = vpop.f32.mrf.mxu1 }
 0x221   : > { %v2651_v22 = vpack.c.bf16 %v2187_v3, %v2183_v49 }
 0x222   : > { %v2189_v33 = vpop.f32.mrf.mxu0  ;;  %v2466_v40 = vpop.f32.mrf.mxu1 }
 0x223   : > { %v2652_v25 = vpack.c.bf16 %v2189_v33, %v2185_v14 }
 0x224   : > { %v2193_v0 = vpop.f32.mrf.mxu0  ;;  %v2467_v19 = vpop.f32.mrf.mxu1 }
 0x225   : > { %3078 = vmatprep.mubr.bf16.mxu0 %v2652_v25  ;;  %v2641_v21 = vpack.c.bf16 %v2467_v19, %v2464_v56 }
 0x226   : > { %v2195_v34 = vpop.f32.mrf.mxu0  ;;  %3079 = vmatmul.mubr.bf16.gmra.mxu0 %v2651_v22  ;;  %v2469_v60 = vpop.f32.mrf.mxu1 }
 0x227   : > { %3958 = vmatprep.mubr.bf16.mxu1 %v2641_v21 }
 0x228   : > { %v2197_v63 = vpop.f32.mrf.mxu0  ;;  %v2472_v7 = vpop.f32.mrf.mxu1 }
 0x229   : > { %v2654_v29 = vpack.c.bf16 %v2197_v63, %v2193_v0 }
 0x22a   : > { %v2199_v28 = vpop.f32.mrf.mxu0  ;;  %v2474_v10 = vpop.f32.mrf.mxu1 }
 0x22b   : > { %v2655_v12 = vpack.c.bf16 %v2199_v28, %v2195_v34 }
 0x22c   : > { %v2203_v2 = vpop.f32.mrf.mxu0  ;;  %v2475_v38 = vpop.f32.mrf.mxu1 }
 0x22d   : > { %3086 = vmatprep.mubr.bf16.mxu0 %v2655_v12  ;;  %v2644_v57 = vpack.c.bf16 %v2475_v38, %v2472_v7  ;;  %v6564_v38 = vpack.c.bf16 %v5835_v36, %v5824_v1  ;;  %v6566_v1 = vpack.c.bf16 %v5861_v50, %v5852_v6  ;;  %v6568_v6 = vpack.c.bf16 %v5878_v51, %v5872_v46 }
 0x22e   : > { %v2205_v27 = vpop.f32.mrf.mxu0  ;;  %3087 = vmatmul.mubr.bf16.gmra.mxu0 %v2654_v29  ;;  %v2477_v52 = vpop.f32.mrf.mxu1  ;;  %v6563_v29 = vpack.c.bf16 %v5797_v45, %v5777_v8  ;;  %v6565_v8 = vpack.c.bf16 %v5829_v53, %v5811_v5  ;;  %v6567_v5 = vpack.c.bf16 %v5857_v31, %v5841_v13  ;;  %v6569_v13 = vpack.c.bf16 %v5874_v15, %v5865_v61 }
 0x22f   : > { %3959 = vmatmul.mubr.bf16.gmra.mxu1 %v2644_v57  ;;  %v6570_v46 = vpack.c.bf16 %v5895_v39, %v5889_v41  ;;  %v6571_v61 = vpack.c.bf16 %v5891_v35, %v5882_v11  ;;  %v6572_v41 = vpack.c.bf16 %v5912_v43, %v5906_v44  ;;  %v6573_v11 = vpack.c.bf16 %v5908_v55, %v5899_v58 }
 0x230   : > { %v2207_v16 = vpop.f32.mrf.mxu0  ;;  %v2480_v9 = vpop.f32.mrf.mxu1  ;;  %v6574_v43 = vpack.c.bf16 %v5929_v4, %v5923_v32  ;;  %v6575_v58 = vpack.c.bf16 %v5925_v42, %v5916_v26  ;;  %v6576_v4 = vpack.c.bf16 %v5946_v62, %v5940_v47  ;;  %v6577_v26 = vpack.c.bf16 %v5942_v23, %v5933_v24 }
 0x231   : > { %v2657_v30 = vpack.c.bf16 %v2207_v16, %v2203_v2 }
 0x232   : > { %v2209_v20 = vpop.f32.mrf.mxu0  ;;  %v2482_v49 = vpop.f32.mrf.mxu1 }
 0x233   : > { %v2658_v17 = vpack.c.bf16 %v2209_v20, %v2205_v27 }
 0x234   : > { %v2213_v18 = vpop.f32.mrf.mxu0  ;;  %v2483_v14 = vpop.f32.mrf.mxu1 }
 0x235   : > { %3094 = vmatprep.mubr.bf16.mxu0 %v2658_v17  ;;  %v2647_v37 = vpack.c.bf16 %v2483_v14, %v2480_v9 }
 0x236   : > { %v2215_v3 = vpop.f32.mrf.mxu0  ;;  %3095 = vmatmul.mubr.bf16.gmra.mxu0 %v2657_v30  ;;  %v2485_v56 = vpop.f32.mrf.mxu1 }
 0x237   : > { %3962 = vmatprep.mubr.bf16.mxu1 %v2647_v37 }
 0x238   : > { %v2217_v33 = vpop.f32.mrf.mxu0  ;;  %v2488_v25 = vpop.f32.mrf.mxu1 }
 0x239   : > { %v2660_v19 = vpack.c.bf16 %v2217_v33, %v2213_v18 }
 0x23a   : > { %v2219_v40 = vpop.f32.mrf.mxu0  ;;  %v2490_v0 = vpop.f32.mrf.mxu1 }
 0x23b   : > { %v2661_v22 = vpack.c.bf16 %v2219_v40, %v2215_v3 }
 0x23c   : > { %v2491_v21 = vpop.f32.mrf.mxu1 }
 0x23d   : > { %3102 = vmatprep.mubr.bf16.mxu0 %v2661_v22  ;;  %v2650_v34 = vpack.c.bf16 %v2491_v21, %v2488_v25 }
 0x23e   : > { %3103 = vmatmul.mubr.bf16.gmra.mxu0 %v2660_v19  ;;  %v2493_v60 = vpop.f32.mrf.mxu1 }
 0x23f   : > { %3110 = vmatprep.mubr.bf16.mxu0 %v2664_v48  ;;  %3963 = vmatmul.mubr.bf16.gmra.mxu1 %v2650_v34 }
 0x240   : > { %v2496_v63 = vpop.f32.mrf.mxu1 }
 0x242   : > { %v2498_v7 = vpop.f32.mrf.mxu1 }
 0x244   : > { %v2499_v28 = vpop.f32.mrf.mxu1 }
 0x245   : > { %v2653_v12 = vpack.c.bf16 %v2499_v28, %v2496_v63 }
 0x246   : > { %v6033_v10 = vpop.f32.mrf.mxu0  ;;  %3111 = vmatmul.mubr.bf16.gmra.mxu0 %v6563_v29  ;;  %v2501_v2 = vpop.f32.mrf.mxu1 }
 0x247   : > { %3118 = vmatprep.mubr.bf16.mxu0 %v6564_v38  ;;  %3966 = vmatprep.mubr.bf16.mxu1 %v2653_v12 }
 0x248   : > { %v2922_v57 = vpop.f32.mrf.mxu0  ;;  %v2504_v59 = vpop.f32.mrf.mxu1 }
 0x24a   : > { %v6041_v54 = vpop.f32.mrf.mxu0  ;;  %v2506_v48 = vpop.f32.mrf.mxu1 }
 0x24c   : > { %v2925_v27 = vpop.f32.mrf.mxu0  ;;  %v2507_v52 = vpop.f32.mrf.mxu1 }
 0x24d   : > { %v2656_v16 = vpack.c.bf16 %v2507_v52, %v2504_v59 }
 0x24e   : > { %v6043_v9 = vpop.f32.mrf.mxu0  ;;  %3119 = vmatmul.mubr.bf16.gmra.mxu0 %v6565_v8  ;;  %v2509_v45 = vpop.f32.mrf.mxu1 }
 0x24f   : > { %3126 = vmatprep.mubr.bf16.mxu0 %v6566_v1  ;;  %3967 = vmatmul.mubr.bf16.gmra.mxu1 %v2656_v16 }
 0x250   : > { %v2930_v36 = vpop.f32.mrf.mxu0  ;;  %v2512_v20 = vpop.f32.mrf.mxu1 }
 0x252   : > { %v6051_v17 = vpop.f32.mrf.mxu0  ;;  %v2514_v49 = vpop.f32.mrf.mxu1 }
 0x254   : > { %v2933_v30 = vpop.f32.mrf.mxu0  ;;  %v2515_v18 = vpop.f32.mrf.mxu1 }
 0x255   : > { %v2659_v14 = vpack.c.bf16 %v2515_v18, %v2512_v20 }
 0x256   : > { %v6053_v37 = vpop.f32.mrf.mxu0  ;;  %3127 = vmatmul.mubr.bf16.gmra.mxu0 %v6567_v5  ;;  %v2517_v53 = vpop.f32.mrf.mxu1 }
 0x257   : > { %3134 = vmatprep.mubr.bf16.mxu0 %v6568_v6  ;;  %3970 = vmatprep.mubr.bf16.mxu1 %v2659_v14 }
 0x258   : > { %v2938_v50 = vpop.f32.mrf.mxu0  ;;  %v2520_v3 = vpop.f32.mrf.mxu1 }
 0x25a   : > { %v6061_v56 = vpop.f32.mrf.mxu0  ;;  %v2522_v33 = vpop.f32.mrf.mxu1 }
 0x25c   : > { %v2941_v25 = vpop.f32.mrf.mxu0  ;;  %v2523_v40 = vpop.f32.mrf.mxu1 }
 0x25d   : > { %v2662_v22 = vpack.c.bf16 %v2523_v40, %v2520_v3 }
 0x25e   : > { %v6063_v0 = vpop.f32.mrf.mxu0  ;;  %3135 = vmatmul.mubr.bf16.gmra.mxu0 %v6569_v13  ;;  %v2525_v31 = vpop.f32.mrf.mxu1 }
 0x25f   : > { %3142 = vmatprep.mubr.bf16.mxu0 %v6570_v46  ;;  %3971 = vmatmul.mubr.bf16.gmra.mxu1 %v2662_v22 }
 0x260   : > { %v2946_v51 = vpop.f32.mrf.mxu0  ;;  %v2528_v19 = vpop.f32.mrf.mxu1 }
 0x262   : > { %v6071_v21 = vpop.f32.mrf.mxu0  ;;  %v2530_v34 = vpop.f32.mrf.mxu1 }
 0x264   : > { %v2949_v60 = vpop.f32.mrf.mxu0  ;;  %v2531_v63 = vpop.f32.mrf.mxu1 }
 0x265   : > { %v2665_v7 = vpack.c.bf16 %v2531_v63, %v2528_v19 }
 0x266   : > { %v6073_v28 = vpop.f32.mrf.mxu0  ;;  %3143 = vmatmul.mubr.bf16.gmra.mxu0 %v6571_v61  ;;  %v2533_v15 = vpop.f32.mrf.mxu1 }
 0x267   : > { %3150 = vmatprep.mubr.bf16.mxu0 %v6572_v41  ;;  %3974 = vmatprep.mubr.bf16.mxu1 %v2665_v7 }
 0x268   : > { %v2954_v39 = vpop.f32.mrf.mxu0  ;;  %v2536_v12 = vpop.f32.mrf.mxu1 }
 0x26a   : > { %v6081_v29 = vpop.f32.mrf.mxu0  ;;  %v2538_v2 = vpop.f32.mrf.mxu1 }
 0x26c   : > { %v2957_v38 = vpop.f32.mrf.mxu0  ;;  %v2539_v57 = vpop.f32.mrf.mxu1 }
 0x26d   : > { %v2668_v59 = vpack.c.bf16 %v2539_v57, %v2536_v12 }
 0x26e   : > { %v6083_v48 = vpop.f32.mrf.mxu0  ;;  %3151 = vmatmul.mubr.bf16.gmra.mxu0 %v6573_v11  ;;  %v2541_v35 = vpop.f32.mrf.mxu1 }
 0x26f   : > { %3158 = vmatprep.mubr.bf16.mxu0 %v6574_v43  ;;  %3975 = vmatmul.mubr.bf16.gmra.mxu1 %v2668_v59 }
 0x270   : > { %v2962_v44 = vpop.f32.mrf.mxu0  ;;  %v2544_v27 = vpop.f32.mrf.mxu1 }
 0x272   : > { %v6091_v52 = vpop.f32.mrf.mxu0  ;;  %v2546_v16 = vpop.f32.mrf.mxu1 }
 0x274   : > { %v2965_v8 = vpop.f32.mrf.mxu0  ;;  %v2547_v45 = vpop.f32.mrf.mxu1 }
 0x275   : > { %v2671_v1 = vpack.c.bf16 %v2547_v45, %v2544_v27  ;;  %v6130_v8 = vld [vmem:[%s6387_s3] ss:$0 sm:$0xff] }
 0x276   : > { %v6093_v36 = vpop.f32.mrf.mxu0  ;;  %3159 = vmatmul.mubr.bf16.gmra.mxu0 %v6575_v58  ;;  %v2549_v55 = vpop.f32.mrf.mxu1 }
 0x277   : > { %3166 = vmatprep.mubr.bf16.mxu0 %v6576_v4  ;;  %3978 = vmatprep.mubr.bf16.mxu1 %v2671_v1  ;;  %v2929_v1 = vadd.f32 %v6130_v8, %v6043_v9  ;;  %v2921_v4 = vadd.f32 %v6130_v8, %v6033_v10  ;;  %v2924_v10 = vadd.f32 %v6130_v8, %v6041_v54 }
 0x278   : > { %v2970_v32 = vpop.f32.mrf.mxu0  ;;  %v2552_v20 = vpop.f32.mrf.mxu1 }
 0x27a   : > { %v6101_v49 = vpop.f32.mrf.mxu0  ;;  %v2554_v30 = vpop.f32.mrf.mxu1 }
 0x27c   : > { %v2973_v18 = vpop.f32.mrf.mxu0  ;;  %v2555_v14 = vpop.f32.mrf.mxu1 }
 0x27d   : > { %v2674_v5 = vpack.c.bf16 %v2555_v14, %v2552_v20  ;;  %v2932_v18 = vadd.f32 %v6130_v8, %v6051_v17  ;;  %v2945_v17 = vadd.f32 %v6130_v8, %v6063_v0 }
 0x27e   : > { %v6103_v53 = vpop.f32.mrf.mxu0  ;;  %3167 = vmatmul.mubr.bf16.gmra.mxu0 %v6577_v26  ;;  %v2557_v42 = vpop.f32.mrf.mxu1 }
 0x27f   : > { %3979 = vmatmul.mubr.bf16.gmra.mxu1 %v2674_v5 }
 0x280   : > { %v2978_v6 = vpop.f32.mrf.mxu0  ;;  %v2560_v62 = vpop.f32.mrf.mxu1 }
 0x282   : > { %v6108_v47 = vpop.f32.mrf.mxu0  ;;  %v2562_v50 = vpop.f32.mrf.mxu1 }
 0x284   : > { %v2981_v3 = vpop.f32.mrf.mxu0  ;;  %v2563_v33 = vpop.f32.mrf.mxu1 }
 0x285   : > { %v2677_v25 = vpack.c.bf16 %v2563_v33, %v2560_v62  ;;  %v2937_v33 = vadd.f32 %v6130_v8, %v6053_v37 }
 0x286   : > { %v6110_v40 = vpop.f32.mrf.mxu0  ;;  %v2565_v22 = vpop.f32.mrf.mxu1 }
 0x287   : > { %3982 = vmatprep.mubr.bf16.mxu1 %v2677_v25 }
 0x288   : > { %v2986_v13 = vpop.f32.mrf.mxu0  ;;  %v2568_v31 = vpop.f32.mrf.mxu1 }
 0x289   : > { %v2948_v13 = vadd.f32 %v6130_v8, %v6071_v21 }
 0x28a   : > { %v6112_v46 = vpop.f32.mrf.mxu0  ;;  %v2570_v24 = vpop.f32.mrf.mxu1 }
 0x28c   : > { %v2989_v23 = vpop.f32.mrf.mxu0  ;;  %v2571_v51 = vpop.f32.mrf.mxu1 }
 0x28d   : > { %v2680_v19 = vpack.c.bf16 %v2571_v51, %v2568_v31  ;;  %v2940_v23 = vadd.f32 %v6130_v8, %v6061_v56 }
 0x28e   : > { %v6114_v34 = vpop.f32.mrf.mxu0  ;;  %v2573_v60 = vpop.f32.mrf.mxu1 }
 0x28f   : > { %3983 = vmatmul.mubr.bf16.gmra.mxu1 %v2680_v19  ;;  %v2961_v60 = vadd.f32 %v6130_v8, %v6083_v48 }
 0x290   : > { %v2994_v63 = vpop.f32.mrf.mxu0  ;;  %v2576_v7 = vpop.f32.mrf.mxu1 }
 0x292   : > { %v6116_v61 = vpop.f32.mrf.mxu0  ;;  %v2578_v15 = vpop.f32.mrf.mxu1 }
 0x293   : > { %v2953_v15 = vadd.f32 %v6130_v8, %v6073_v28 }
 0x294   : > { %v2997_v41 = vpop.f32.mrf.mxu0  ;;  %v2579_v39 = vpop.f32.mrf.mxu1 }
 0x295   : > { %v2683_v12 = vpack.c.bf16 %v2579_v39, %v2576_v7 }
 0x296   : > { %v6118_v2 = vpop.f32.mrf.mxu0  ;;  %v2581_v38 = vpop.f32.mrf.mxu1 }
 0x297   : > { %3986 = vmatprep.mubr.bf16.mxu1 %v2683_v12  ;;  %v2964_v12 = vadd.f32 %v6130_v8, %v6091_v52 }
 0x298   : > { %v3002_v57 = vpop.f32.mrf.mxu0  ;;  %v2584_v59 = vpop.f32.mrf.mxu1 }
 0x29a   : > { %v6120_v11 = vpop.f32.mrf.mxu0  ;;  %v2586_v35 = vpop.f32.mrf.mxu1 }
 0x29c   : > { %v3005_v43 = vpop.f32.mrf.mxu0  ;;  %v2587_v44 = vpop.f32.mrf.mxu1 }
 0x29d   : > { %v2686_v27 = vpack.c.bf16 %v2587_v44, %v2584_v59  ;;  %v2956_v59 = vadd.f32 %v6130_v8, %v6081_v29  ;;  %v2977_v44 = vadd.f32 %v6130_v8, %v6103_v53 }
 0x29e   : > { %v6123_v16 = vpop.f32.mrf.mxu0  ;;  %v2589_v45 = vpop.f32.mrf.mxu1 }
 0x29f   : > { %3987 = vmatmul.mubr.bf16.gmra.mxu1 %v2686_v27 }
 0x2a0   : > { %v3010_v58 = vpop.f32.mrf.mxu0  ;;  %v3928_v55 = vpop.f32.mrf.mxu1 }
 0x2a1   : > { %v3218_v32 = vadd.f32 %v3928_v55, %v2929_v1  ;;  %v2969_v1 = vadd.f32 %v6130_v8, %v6093_v36 }
 0x2a2   : > { %v6136_v20 = vpop.f32.mrf.mxu0  ;;  %v3209_v30 = vpop.f32.mrf.mxu1 }
 0x2a3   : > { %3466 = vst [vmem:[%s6140_s12 + $0x10] sm:$0xff] %v3218_v32  ;;  %v3210_v9 = vadd.f32 %v3209_v30, %v2921_v4  ;;  %v2980_v4 = vadd.f32 %v6130_v8, %v6108_v47 }
 0x2a4   : > { %v3013_v14 = vpop.f32.mrf.mxu0  ;;  %v3929_v5 = vpop.f32.mrf.mxu1 }
 0x2a5   : > { %3464 = vst [vmem:[%s6140_s12] sm:$0xff] %v3210_v9  ;;  %v3221_v26 = vadd.f32 %v3929_v5, %v2932_v18  ;;  %v2972_v18 = vadd.f32 %v6130_v8, %v6101_v49  ;;  %v2993_v5 = vadd.f32 %v6130_v8, %v6114_v34 }
 0x2a6   : > { %v6146_v42 = vpop.f32.mrf.mxu0  ;;  %v3212_v6 = vpop.f32.mrf.mxu1 }
 0x2a7   : > { %3467 = vst [vmem:[%s6140_s12 + $0x18] sm:$0xff] %v3221_v26  ;;  %v3213_v62 = vadd.f32 %v3212_v6, %v2924_v10  ;;  %v2985_v6 = vadd.f32 %v6130_v8, %v6110_v40 }
 0x2a8   : > { %v3018_v50 = vpop.f32.mrf.mxu0  ;;  %v3932_v3 = vpop.f32.mrf.mxu1 }
 0x2a9   : > { %3465 = vst [vmem:[%s6140_s12 + $0x8] sm:$0xff] %v3213_v62  ;;  %v3234_v54 = vadd.f32 %v3932_v3, %v2945_v17  ;;  %v2996_v50 = vadd.f32 %v6130_v8, %v6116_v61 }
 0x2aa   : > { %v6154_v25 = vpop.f32.mrf.mxu0  ;;  %v3225_v22 = vpop.f32.mrf.mxu1 }
 0x2ab   : > { %3470 = vst [vmem:[%s6140_s12 + $0x30] sm:$0xff] %v3234_v54  ;;  %v3226_v0 = vadd.f32 %v3225_v22, %v2937_v33  ;;  %v2988_v54 = vadd.f32 %v6130_v8, %v6112_v46 }
 0x2ac   : > { %v3021_v31 = vpop.f32.mrf.mxu0  ;;  %v3933_v24 = vpop.f32.mrf.mxu1 }
 0x2ad   : > { %3468 = vst [vmem:[%s6140_s12 + $0x20] sm:$0xff] %v3226_v0  ;;  %v3237_v37 = vadd.f32 %v3933_v24, %v2948_v13  ;;  %v3009_v0 = vadd.f32 %v6130_v8, %v6123_v16 }
 0x2ae   : > { %v6162_v51 = vpop.f32.mrf.mxu0  ;;  %v3228_v19 = vpop.f32.mrf.mxu1 }
 0x2af   : > { %3471 = vst [vmem:[%s6140_s12 + $0x38] sm:$0xff] %v3237_v37  ;;  %v3229_v21 = vadd.f32 %v3228_v19, %v2940_v23  ;;  %v3001_v23 = vadd.f32 %v6130_v8, %v6118_v2 }
 0x2b0   : > { %v3026_v63 = vpop.f32.mrf.mxu0  ;;  %v3936_v7 = vpop.f32.mrf.mxu1 }
 0x2b1   : > { %3469 = vst [vmem:[%s6140_s12 + $0x28] sm:$0xff] %v3229_v21  ;;  %v3250_v56 = vadd.f32 %v3936_v7, %v2961_v60  ;;  %v3012_v60 = vadd.f32 %v6130_v8, %v6136_v20  ;;  %v3004_v7 = vadd.f32 %v6130_v8, %v6120_v11 }
 0x2b2   : > { %v6170_v41 = vpop.f32.mrf.mxu0  ;;  %v3241_v39 = vpop.f32.mrf.mxu1 }
 0x2b3   : > { %3474 = vst [vmem:[%s6140_s12 + $0x50] sm:$0xff] %v3250_v56  ;;  %v3242_v48 = vadd.f32 %v3241_v39, %v2953_v15  ;;  %v3025_v39 = vadd.f32 %v6130_v8, %v6162_v51 }
 0x2b4   : > { %v3029_v38 = vpop.f32.mrf.mxu0  ;;  %v3937_v57 = vpop.f32.mrf.mxu1 }
 0x2b5   : > { %3472 = vst [vmem:[%s6140_s12 + $0x40] sm:$0xff] %v3242_v48  ;;  %v3253_v28 = vadd.f32 %v3937_v57, %v2964_v12  ;;  %v3017_v38 = vadd.f32 %v6130_v8, %v6146_v42 }
 0x2b6   : > { %v6178_v35 = vpop.f32.mrf.mxu0  ;;  %v3244_v43 = vpop.f32.mrf.mxu1 }
 0x2b7   : > { %3475 = vst [vmem:[%s6140_s12 + $0x58] sm:$0xff] %v3253_v28  ;;  %v3245_v52 = vadd.f32 %v3244_v43, %v2956_v59  ;;  %v3028_v28 = vadd.f32 %v6130_v8, %v6170_v41 }
 0x2b8   : > { %v3034_v27 = vpop.f32.mrf.mxu0  ;;  %v3940_v45 = vpop.f32.mrf.mxu1 }
 0x2b9   : > { %3473 = vst [vmem:[%s6140_s12 + $0x48] sm:$0xff] %v3245_v52  ;;  %v3266_v29 = vadd.f32 %v3940_v45, %v2977_v44  ;;  %v3020_v52 = vadd.f32 %v6130_v8, %v6154_v25 }
 0x2ba   : > { %v6186_v58 = vpop.f32.mrf.mxu0  ;;  %v3257_v55 = vpop.f32.mrf.mxu1 }
 0x2bb   : > { %3478 = vst [vmem:[%s6140_s12 + $0x70] sm:$0xff] %v3266_v29  ;;  %v3258_v53 = vadd.f32 %v3257_v55, %v2969_v1 }
 0x2bc   : > { %v3037_v32 = vpop.f32.mrf.mxu0  ;;  %v3941_v30 = vpop.f32.mrf.mxu1 }
 0x2bd   : > { %3476 = vst [vmem:[%s6140_s12 + $0x60] sm:$0xff] %v3258_v53  ;;  %v3269_v36 = vadd.f32 %v3941_v30, %v2980_v4  ;;  %v3033_v30 = vadd.f32 %v6130_v8, %v6178_v35 }
 0x2be   : > { %v6194_v9 = vpop.f32.mrf.mxu0  ;;  %v3260_v14 = vpop.f32.mrf.mxu1 }
 0x2bf   : > { %3479 = vst [vmem:[%s6140_s12 + $0x78] sm:$0xff] %v3269_v36  ;;  %v3261_v47 = vadd.f32 %v3260_v14, %v2972_v18  ;;  %v3041_v53 = vadd.f32 %v6130_v8, %v6194_v9  ;;  %v3036_v9 = vadd.f32 %v6130_v8, %v6186_v58 }
 0x2c0   : > { %v3042_v10 = vpop.f32.mrf.mxu0  ;;  %v3944_v26 = vpop.f32.mrf.mxu1 }
 0x2c1   : > { %3477 = vst [vmem:[%s6140_s12 + $0x68] sm:$0xff] %v3261_v47  ;;  %v3282_v49 = vadd.f32 %v3944_v26, %v2993_v5 }
 0x2c2   : > { %v6202_v17 = vpop.f32.mrf.mxu0  ;;  %v3273_v62 = vpop.f32.mrf.mxu1 }
 0x2c3   : > { %3482 = vst [vmem:[%s6140_s12 + $0x90] sm:$0xff] %v3282_v49  ;;  %v3274_v34 = vadd.f32 %v3273_v62, %v2985_v6  ;;  %v3044_v5 = vadd.f32 %v6130_v8, %v6202_v17 }
 0x2c4   : > { %v3045_v3 = vpop.f32.mrf.mxu0  ;;  %v3945_v33 = vpop.f32.mrf.mxu1 }
 0x2c5   : > { %3480 = vst [vmem:[%s6140_s12 + $0x80] sm:$0xff] %v3274_v34  ;;  %v3285_v40 = vadd.f32 %v3945_v33, %v2996_v50 }
 0x2c6   : > { %v6210_v22 = vpop.f32.mrf.mxu0  ;;  %v3276_v13 = vpop.f32.mrf.mxu1 }
 0x2c7   : > { %3483 = vst [vmem:[%s6140_s12 + $0x98] sm:$0xff] %v3285_v40  ;;  %v3277_v61 = vadd.f32 %v3276_v13, %v2988_v54  ;;  %v3049_v58 = vadd.f32 %v6130_v8, %v6210_v22 }
 0x2c8   : > { %v3050_v31 = vpop.f32.mrf.mxu0  ;;  %v3948_v24 = vpop.f32.mrf.mxu1 }
 0x2c9   : > { %3481 = vst [vmem:[%s6140_s12 + $0x88] sm:$0xff] %v3277_v61  ;;  %v3298_v46 = vadd.f32 %v3948_v24, %v3009_v0 }
 0x2ca   : > { %v6218_v37 = vpop.f32.mrf.mxu0  ;;  %v3289_v19 = vpop.f32.mrf.mxu1 }
 0x2cb   : > { %3486 = vst [vmem:[%s6140_s12 + $0xb0] sm:$0xff] %v3298_v46  ;;  %v3290_v16 = vadd.f32 %v3289_v19, %v3001_v23  ;;  %v3052_v19 = vadd.f32 %v6130_v8, %v6218_v37 }
 0x2cc   : > { %v3053_v21 = vpop.f32.mrf.mxu0  ;;  %v3949_v63 = vpop.f32.mrf.mxu1 }
 0x2cd   : > { %3484 = vst [vmem:[%s6140_s12 + $0xa0] sm:$0xff] %v3290_v16  ;;  %v3301_v2 = vadd.f32 %v3949_v63, %v3012_v60 }
 0x2ce   : > { %v3056_v15 = vpop.f32.mrf.mxu0  ;;  %v3292_v56 = vpop.f32.mrf.mxu1 }
 0x2cf   : > { %3487 = vst [vmem:[%s6140_s12 + $0xb8] sm:$0xff] %v3301_v2  ;;  %v3293_v12 = vadd.f32 %v3292_v56, %v3004_v7  ;;  %v3057_v33 = vadd.f32 %v6130_v8, %v3056_v15 }
 0x2d0   : > { %v3058_v20 = vpop.f32.mrf.mxu0  ;;  %v3952_v48 = vpop.f32.mrf.mxu1 }
 0x2d1   : > { %3485 = vst [vmem:[%s6140_s12 + $0xa8] sm:$0xff] %v3293_v12  ;;  %v3314_v57 = vadd.f32 %v3952_v48, %v3025_v39 }
 0x2d2   : > { %v3059_v11 = vpop.f32.mrf.mxu0  ;;  %v3305_v59 = vpop.f32.mrf.mxu1 }
 0x2d3   : > { %3490 = vst [vmem:[%s6140_s12 + $0xd0] sm:$0xff] %v3314_v57  ;;  %v3306_v43 = vadd.f32 %v3305_v59, %v3017_v38  ;;  %v3060_v31 = vadd.f32 %v6130_v8, %v3059_v11 }
 0x2d4   : > { %v3061_v51 = vpop.f32.mrf.mxu0  ;;  %v3953_v44 = vpop.f32.mrf.mxu1 }
 0x2d5   : > { %3488 = vst [vmem:[%s6140_s12 + $0xc0] sm:$0xff] %v3306_v43  ;;  %v3317_v27 = vadd.f32 %v3953_v44, %v3028_v28 }
 0x2d6   : > { %v3064_v45 = vpop.f32.mrf.mxu0  ;;  %v3308_v1 = vpop.f32.mrf.mxu1 }
 0x2d7   : > { %3491 = vst [vmem:[%s6140_s12 + $0xd8] sm:$0xff] %v3317_v27  ;;  %v3309_v42 = vadd.f32 %v3308_v1, %v3020_v52  ;;  %v3065_v37 = vadd.f32 %v6130_v8, %v3064_v45 }
 0x2d8   : > { %v3066_v29 = vpop.f32.mrf.mxu0 }
 0x2d9   : > { %3489 = vst [vmem:[%s6140_s12 + $0xc8] sm:$0xff] %v3309_v42 }
 0x2da   : > { %v6240_v55 = vpop.f32.mrf.mxu0 }
 0x2db   : > { %v3068_v43 = vadd.f32 %v6130_v8, %v6240_v55 }
 0x2dc   : > { %v3069_v41 = vpop.f32.mrf.mxu0 }
 0x2de   : > { %v3072_v4 = vpop.f32.mrf.mxu0 }
 0x2df   : > { %v3956_v32 = vpop.f32.mrf.mxu1  ;;  %v3073_v56 = vadd.f32 %v6130_v8, %v3072_v4 }
 0x2e0   : > { %v3074_v25 = vpop.f32.mrf.mxu0  ;;  %v3330_v18 = vadd.f32 %v3956_v32, %v3041_v53 }
 0x2e1   : > { %v3321_v36 = vpop.f32.mrf.mxu1 }
 0x2e2   : > { %v3075_v14 = vpop.f32.mrf.mxu0  ;;  %3494 = vst [vmem:[%s6140_s12 + $0xf0] sm:$0xff] %v3330_v18  ;;  %v3322_v47 = vadd.f32 %v3321_v36, %v3033_v30 }
 0x2e3   : > { %v3957_v10 = vpop.f32.mrf.mxu1  ;;  %v3076_v57 = vadd.f32 %v6130_v8, %v3075_v14 }
 0x2e4   : > { %v3077_v26 = vpop.f32.mrf.mxu0  ;;  %3492 = vst [vmem:[%s6140_s12 + $0xe0] sm:$0xff] %v3322_v47  ;;  %v3333_v6 = vadd.f32 %v3957_v10, %v3044_v5 }
 0x2e5   : > { %v3324_v49 = vpop.f32.mrf.mxu1 }
 0x2e6   : > { %v3080_v62 = vpop.f32.mrf.mxu0  ;;  %3495 = vst [vmem:[%s6140_s12 + $0xf8] sm:$0xff] %v3333_v6  ;;  %v3325_v35 = vadd.f32 %v3324_v49, %v3036_v9 }
 0x2e7   : > { %v3081_v55 = vadd.f32 %v6130_v8, %v3080_v62 }
 0x2e8   : > { %v3082_v50 = vpop.f32.mrf.mxu0  ;;  %3493 = vst [vmem:[%s6140_s12 + $0xe8] sm:$0xff] %v3325_v35 }
 0x2ea   : > { %v6254_v34 = vpop.f32.mrf.mxu0 }
 0x2eb   : > { %v3084_v47 = vadd.f32 %v6130_v8, %v6254_v34 }
 0x2ec   : > { %v3085_v17 = vpop.f32.mrf.mxu0 }
 0x2ee   : > { %v3088_v3 = vpop.f32.mrf.mxu0 }
 0x2ef   : > { %v3960_v54 = vpop.f32.mrf.mxu1  ;;  %v3089_v41 = vadd.f32 %v6130_v8, %v3088_v3 }
 0x2f0   : > { %v3090_v40 = vpop.f32.mrf.mxu0  ;;  %v3346_v13 = vadd.f32 %v3960_v54, %v3057_v33 }
 0x2f1   : > { %v3337_v0 = vpop.f32.mrf.mxu1 }
 0x2f2   : > { %v3091_v61 = vpop.f32.mrf.mxu0  ;;  %3498 = vst [vmem:[%s6140_s12 + $0x110] sm:$0xff] %v3346_v13  ;;  %v3338_v24 = vadd.f32 %v3337_v0, %v3049_v58 }
 0x2f3   : > { %v3961_v23 = vpop.f32.mrf.mxu1  ;;  %v3092_v18 = vadd.f32 %v6130_v8, %v3091_v61 }
 0x2f4   : > { %v3093_v46 = vpop.f32.mrf.mxu0  ;;  %3496 = vst [vmem:[%s6140_s12 + $0x100] sm:$0xff] %v3338_v24  ;;  %v3349_v60 = vadd.f32 %v3961_v23, %v3060_v31 }
 0x2f5   : > { %v3340_v16 = vpop.f32.mrf.mxu1 }
 0x2f6   : > { %v3096_v21 = vpop.f32.mrf.mxu0  ;;  %3499 = vst [vmem:[%s6140_s12 + $0x118] sm:$0xff] %v3349_v60  ;;  %v3341_v22 = vadd.f32 %v3340_v16, %v3052_v19 }
 0x2f7   : > { %v3097_v34 = vadd.f32 %v6130_v8, %v3096_v21 }
 0x2f8   : > { %v3098_v63 = vpop.f32.mrf.mxu0  ;;  %3497 = vst [vmem:[%s6140_s12 + $0x108] sm:$0xff] %v3341_v22 }
 0x2fa   : > { %v6266_v7 = vpop.f32.mrf.mxu0 }
 0x2fb   : > { %v3100_v24 = vadd.f32 %v6130_v8, %v6266_v7 }
 0x2fc   : > { %v3101_v2 = vpop.f32.mrf.mxu0 }
 0x2fe   : > { %v3104_v15 = vpop.f32.mrf.mxu0 }
 0x2ff   : > { %v3964_v39 = vpop.f32.mrf.mxu1  ;;  %v3105_v17 = vadd.f32 %v6130_v8, %v3104_v15 }
 0x300   : > { %v3106_v12 = vpop.f32.mrf.mxu0  ;;  %v3362_v20 = vadd.f32 %v3964_v39, %v3073_v56 }
 0x301   : > { %v3353_v48 = vpop.f32.mrf.mxu1 }
 0x302   : > { %v3107_v38 = vpop.f32.mrf.mxu0  ;;  %3502 = vst [vmem:[%s6140_s12 + $0x130] sm:$0xff] %v3362_v20  ;;  %v3354_v11 = vadd.f32 %v3353_v48, %v3065_v37 }
 0x303   : > { %v3965_v59 = vpop.f32.mrf.mxu1  ;;  %v3108_v13 = vadd.f32 %v6130_v8, %v3107_v38 }
 0x304   : > { %v3109_v28 = vpop.f32.mrf.mxu0  ;;  %3500 = vst [vmem:[%s6140_s12 + $0x120] sm:$0xff] %v3354_v11  ;;  %v3365_v51 = vadd.f32 %v3965_v59, %v3076_v57 }
 0x305   : > { %v3356_v44 = vpop.f32.mrf.mxu1 }
 0x306   : > { %v3112_v52 = vpop.f32.mrf.mxu0  ;;  %3503 = vst [vmem:[%s6140_s12 + $0x138] sm:$0xff] %v3365_v51  ;;  %v3357_v27 = vadd.f32 %v3356_v44, %v3068_v43 }
 0x307   : > { %v3113_v7 = vadd.f32 %v6130_v8, %v3112_v52 }
 0x308   : > { %v3114_v45 = vpop.f32.mrf.mxu0  ;;  %3501 = vst [vmem:[%s6140_s12 + $0x128] sm:$0xff] %v3357_v27 }
 0x30a   : > { %v6277_v1 = vpop.f32.mrf.mxu0 }
 0x30b   : > { %v3116_v11 = vadd.f32 %v6130_v8, %v6277_v1 }
 0x30c   : > { %v3117_v42 = vpop.f32.mrf.mxu0 }
 0x30e   : > { %v3120_v29 = vpop.f32.mrf.mxu0 }
 0x30f   : > { %v3968_v4 = vpop.f32.mrf.mxu1  ;;  %v3121_v2 = vadd.f32 %v6130_v8, %v3120_v29 }
 0x310   : > { %v3122_v53 = vpop.f32.mrf.mxu0  ;;  %v3378_v32 = vadd.f32 %v3968_v4, %v3089_v41 }
 0x311   : > { %v3369_v25 = vpop.f32.mrf.mxu1 }
 0x312   : > { %v3123_v30 = vpop.f32.mrf.mxu0  ;;  %3506 = vst [vmem:[%s6140_s12 + $0x150] sm:$0xff] %v3378_v32  ;;  %v3370_v36 = vadd.f32 %v3369_v25, %v3081_v55 }
 0x313   : > { %v3969_v14 = vpop.f32.mrf.mxu1  ;;  %v3124_v20 = vadd.f32 %v6130_v8, %v3123_v30 }
 0x314   : > { %v3125_v5 = vpop.f32.mrf.mxu0  ;;  %3504 = vst [vmem:[%s6140_s12 + $0x140] sm:$0xff] %v3370_v36  ;;  %v3381_v10 = vadd.f32 %v3969_v14, %v3092_v18 }
 0x315   : > { %v3372_v26 = vpop.f32.mrf.mxu1 }
 0x316   : > { %v3128_v9 = vpop.f32.mrf.mxu0  ;;  %3507 = vst [vmem:[%s6140_s12 + $0x158] sm:$0xff] %v3381_v10  ;;  %v3373_v6 = vadd.f32 %v3372_v26, %v3084_v47 }
 0x317   : > { %v3129_v1 = vadd.f32 %v6130_v8, %v3128_v9 }
 0x318   : > { %v3130_v49 = vpop.f32.mrf.mxu0  ;;  %3505 = vst [vmem:[%s6140_s12 + $0x148] sm:$0xff] %v3373_v6 }
 0x31a   : > { %v6288_v62 = vpop.f32.mrf.mxu0 }
 0x31b   : > { %v3132_v36 = vadd.f32 %v6130_v8, %v6288_v62 }
 0x31c   : > { %v3133_v35 = vpop.f32.mrf.mxu0 }
 0x31e   : > { %v3136_v50 = vpop.f32.mrf.mxu0 }
 0x31f   : > { %v3972_v3 = vpop.f32.mrf.mxu1  ;;  %v3137_v42 = vadd.f32 %v6130_v8, %v3136_v50 }
 0x320   : > { %v3138_v33 = vpop.f32.mrf.mxu0  ;;  %v3394_v54 = vadd.f32 %v3972_v3, %v3105_v17 }
 0x321   : > { %v3385_v40 = vpop.f32.mrf.mxu1 }
 0x322   : > { %v3139_v58 = vpop.f32.mrf.mxu0  ;;  %3510 = vst [vmem:[%s6140_s12 + $0x170] sm:$0xff] %v3394_v54  ;;  %v3386_v0 = vadd.f32 %v3385_v40, %v3097_v34 }
 0x323   : > { %v3973_v61 = vpop.f32.mrf.mxu1  ;;  %v3140_v32 = vadd.f32 %v6130_v8, %v3139_v58 }
 0x324   : > { %v3141_v31 = vpop.f32.mrf.mxu0  ;;  %3508 = vst [vmem:[%s6140_s12 + $0x160] sm:$0xff] %v3386_v0  ;;  %v3397_v23 = vadd.f32 %v3973_v61, %v3108_v13 }
 0x325   : > { %v3388_v46 = vpop.f32.mrf.mxu1 }
 0x326   : > { %v3144_v19 = vpop.f32.mrf.mxu0  ;;  %3511 = vst [vmem:[%s6140_s12 + $0x178] sm:$0xff] %v3397_v23  ;;  %v3389_v60 = vadd.f32 %v3388_v46, %v3100_v24 }
 0x327   : > { %v3145_v9 = vadd.f32 %v6130_v8, %v3144_v19 }
 0x328   : > { %v3146_v16 = vpop.f32.mrf.mxu0  ;;  %3509 = vst [vmem:[%s6140_s12 + $0x168] sm:$0xff] %v3389_v60 }
 0x32a   : > { %v3147_v21 = vpop.f32.mrf.mxu0 }
 0x32b   : > { %v3148_v17 = vadd.f32 %v6130_v8, %v3147_v21 }
 0x32c   : > { %v3149_v22 = vpop.f32.mrf.mxu0 }
 0x32e   : > { %v3152_v63 = vpop.f32.mrf.mxu0 }
 0x32f   : > { %v3976_v15 = vpop.f32.mrf.mxu1  ;;  %v3153_v10 = vadd.f32 %v6130_v8, %v3152_v63 }
 0x330   : > { %v3154_v56 = vpop.f32.mrf.mxu0  ;;  %v3410_v39 = vadd.f32 %v3976_v15, %v3121_v2 }
 0x331   : > { %v3401_v12 = vpop.f32.mrf.mxu1 }
 0x332   : > { %v3155_v37 = vpop.f32.mrf.mxu0  ;;  %3514 = vst [vmem:[%s6140_s12 + $0x190] sm:$0xff] %v3410_v39  ;;  %v3402_v48 = vadd.f32 %v3401_v12, %v3113_v7 }
 0x333   : > { %v3977_v38 = vpop.f32.mrf.mxu1  ;;  %v3156_v35 = vadd.f32 %v6130_v8, %v3155_v37 }
 0x334   : > { %v3157_v57 = vpop.f32.mrf.mxu0  ;;  %3512 = vst [vmem:[%s6140_s12 + $0x180] sm:$0xff] %v3402_v48  ;;  %v3413_v59 = vadd.f32 %v3977_v38, %v3124_v20 }
 0x335   : > { %v3404_v28 = vpop.f32.mrf.mxu1 }
 0x336   : > { %v3160_v43 = vpop.f32.mrf.mxu0  ;;  %3515 = vst [vmem:[%s6140_s12 + $0x198] sm:$0xff] %v3413_v59  ;;  %v3405_v51 = vadd.f32 %v3404_v28, %v3116_v11 }
 0x337   : > { %v3161_v58 = vadd.f32 %v6130_v8, %v3160_v43 }
 0x338   : > { %v3162_v44 = vpop.f32.mrf.mxu0  ;;  %3513 = vst [vmem:[%s6140_s12 + $0x188] sm:$0xff] %v3405_v51 }
 0x33a   : > { %v3163_v52 = vpop.f32.mrf.mxu0 }
 0x33b   : > { %v3164_v23 = vadd.f32 %v6130_v8, %v3163_v52 }
 0x33c   : > { %v3165_v27 = vpop.f32.mrf.mxu0 }
 0x33e   : > { %v3168_v45 = vpop.f32.mrf.mxu0 }
 0x33f   : > { %v3980_v29 = vpop.f32.mrf.mxu1  ;;  %v3169_v54 = vadd.f32 %v6130_v8, %v3168_v45 }
 0x340   : > { %v3170_v41 = vpop.f32.mrf.mxu0  ;;  %v3426_v4 = vadd.f32 %v3980_v29, %v3137_v42 }
 0x341   : > { %v3417_v53 = vpop.f32.mrf.mxu1 }
 0x342   : > { %v3171_v55 = vpop.f32.mrf.mxu0  ;;  %3518 = vst [vmem:[%s6140_s12 + $0x1b0] sm:$0xff] %v3426_v4  ;;  %v3418_v25 = vadd.f32 %v3417_v53, %v3129_v1 }
 0x343   : > { %v3981_v30 = vpop.f32.mrf.mxu1  ;;  %v3172_v61 = vadd.f32 %v6130_v8, %v3171_v55 }
 0x344   : > { %v3173_v18 = vpop.f32.mrf.mxu0  ;;  %3516 = vst [vmem:[%s6140_s12 + $0x1a0] sm:$0xff] %v3418_v25  ;;  %v3429_v14 = vadd.f32 %v3981_v30, %v3140_v32 }
 0x345   : > { %v3420_v5 = vpop.f32.mrf.mxu1 }
 0x346   : > { %3519 = vst [vmem:[%s6140_s12 + $0x1b8] sm:$0xff] %v3429_v14  ;;  %v3421_v47 = vadd.f32 %v3420_v5, %v3132_v36 }
 0x348   : > { %3517 = vst [vmem:[%s6140_s12 + $0x1a8] sm:$0xff] %v3421_v47 }
 0x34f   : > { %v3984_v26 = vpop.f32.mrf.mxu1 }
 0x350   : > { %v3442_v6 = vadd.f32 %v3984_v26, %v3153_v10 }
 0x351   : > { %v3433_v49 = vpop.f32.mrf.mxu1 }
 0x352   : > { %3522 = vst [vmem:[%s6140_s12 + $0x1d0] sm:$0xff] %v3442_v6  ;;  %v3434_v62 = vadd.f32 %v3433_v49, %v3145_v9 }
 0x353   : > { %v3985_v50 = vpop.f32.mrf.mxu1 }
 0x354   : > { %3520 = vst [vmem:[%s6140_s12 + $0x1c0] sm:$0xff] %v3434_v62  ;;  %v3445_v3 = vadd.f32 %v3985_v50, %v3156_v35 }
 0x355   : > { %v3436_v33 = vpop.f32.mrf.mxu1 }
 0x356   : > { %3523 = vst [vmem:[%s6140_s12 + $0x1d8] sm:$0xff] %v3445_v3  ;;  %v3437_v34 = vadd.f32 %v3436_v33, %v3148_v17 }
 0x358   : > { %3521 = vst [vmem:[%s6140_s12 + $0x1c8] sm:$0xff] %v3437_v34 }
 0x35f   : > { %v3988_v40 = vpop.f32.mrf.mxu1 }
 0x360   : > { %v3458_v13 = vadd.f32 %v3988_v40, %v3169_v54 }
 0x361   : > { %v3449_v0 = vpop.f32.mrf.mxu1 }
 0x362   : > { %3526 = vst [vmem:[%s6140_s12 + $0x1f0] sm:$0xff] %v3458_v13  ;;  %v3450_v31 = vadd.f32 %v3449_v0, %v3161_v58 }
 0x363   : > { %v3989_v24 = vpop.f32.mrf.mxu1 }
 0x364   : > { %3524 = vst [vmem:[%s6140_s12 + $0x1e0] sm:$0xff] %v3450_v31  ;;  %v3461_v46 = vadd.f32 %v3989_v24, %v3172_v61 }
 0x365   : > { %v3452_v19 = vpop.f32.mrf.mxu1 }
 0x366   : > { %3527 = vst [vmem:[%s6140_s12 + $0x1f8] sm:$0xff] %v3461_v46  ;;  %v3453_v60 = vadd.f32 %v3452_v19, %v3164_v23 }
 0x368   : > { %3525 = vst [vmem:[%s6140_s12 + $0x1e8] sm:$0xff] %v3453_v60 }
 0x369   : > { %4145 = shalt.err (!%p4142_p3)
}
 0x36a   : > { %s4146_s5 = scalar_lea.hbm %s6336_s27, 8192  ;;  %s4150_s8 = scalar_lea.hbm %s6388_s4, 16384 }
 0x36b   : > { %p4147_p4 = scmp.ne.s32.totalorder %s6336_s27, %s4146_s5  ;;  %p4151_p9 = scmp.lt.s32.totalorder %s6336_s27, %s6388_s4 }
 0x36c   : > { %p4152_p10 = scmp.lt.s32.totalorder %s4150_s8, %s4146_s5 }
 0x36d   : > { %p4148_p7 = pnand %p4147_p4, %p4263_p5 }
 0x36e   : > { %p4153_p11 = por %p4152_p10, %p4151_p9 }
 0x36f   : > { %p4149_p8 = pneg %p4148_p7 }
 0x371   : > { %p4154_p12 = pnand %p4153_p11, %p4149_p8 }
 0x373   : > { %4157 = shalt.err (!%p4154_p12)
}
 0x374   : > { %s4198_s11 = smov 128   ;;  %s4199_s12 = smov 8  }
 0x375   : > { %4014 = dma.vmem_to_hbm [thread:$0]  (%p4263_p5), %s6338_s14, 8192, %s6336_s27, %s6344_s19, %s4198_s11, %s4198_s11, %s4199_s12  }
 0x376 PF: > { %p4020_p13 = scmp.ge.s32.totalorder %s4192_s18, 2  ;;  %s3557_s13 = sand.u32 1, %s4180_s15  }
 0x377   : > { %s3558_s22 = scalar_lea.sflag [#allocation3], %s3557_s13 }
 0x378   : > { %p4017_p0 = pnand %p4020_p13, %p4267_p6 }
 0x37a   : > { %p4018_p1 = pneg %p4017_p0 }
 0x37c   : > { %4175 = dma.done.wait (%p4018_p1), %s3558_s22, 8192  }
 0x37d   : > { %4177 = vsyncadd (%p4018_p1), %s3558_s22, 4294959104  ;;  %p14_p2 = scmp.ge.s32.totalorder %s4250_s21, 4   ;;  %s6578_s15 = smov %s4184_s16 }
 0x37e   : > { %s6579_s16 = smov %s4188_s17  ;;  %s6580_s17 = smov %s4261_s24 }
 0x37f   : > { %s6581_s18 = smov %s4250_s21  ;;  %16 = sbr.rel (!%p14_p2) target bundleno = 3 (0x3), region = 71 }
 0x384   :  { %3563 = vsyncpa [#allocation3], 1 }
 0x385   :  { %3565 = vsyncpa [#allocation3 + $0x1], 1 }

</bundles_post_ra>
